<compile_context>
chip_gen: v7x
topology: tpu7x:2x2x1
jax: 0.10.0
libtpu: 0.0.40
codegen_flags: <defaults>
</compile_context>

<pallas_src>
import functools

import jax
import jax.numpy as jnp
from jax import lax
from jax.experimental import pallas as pl
from jax.experimental.pallas import tpu as pltpu


# ---------------------------------------------------------------------------
# Fused kernel: channel sum/max reduction + 7x7 conv + bias + sigmoid
# ---------------------------------------------------------------------------
def _spatial_attention_kernel(w_ref, b_ref, yx_ref, x_ref, o_ref, acc_ref, *,
                              h, w, ksize):
    # w_ref : SMEM (2*K*K,) f32  conv weights flat [ci, ky, kx]; plane 0 holds 1/C
    # b_ref : SMEM (1,)     f32  conv bias
    # yx_ref: VMEM (2, HW)  i32  row / col index of each flattened spatial pos
    # x_ref : VMEM (1, TC, HW)   one batch element, one channel tile of x
    # o_ref : VMEM (1, 1, HW)    sigmoid(conv([mean, max])) — lane-dense
    # acc_ref: VMEM (2, HW) f32  row 0 = running channel sum, row 1 = running max
    c_idx = pl.program_id(1)
    hw = h * w
    k = ksize
    pad = k // 2

    x = x_ref[0].astype(jnp.float32)               # (TC, HW)
    psum = jnp.sum(x, axis=0, keepdims=True)       # (1, HW)
    pmax = jnp.max(x, axis=0, keepdims=True)       # (1, HW)

    @pl.when(c_idx == 0)
    def _init():
        acc_ref[0:1, :] = psum
        acc_ref[1:2, :] = pmax

    @pl.when(c_idx > 0)
    def _accumulate():
        acc_ref[0:1, :] = acc_ref[0:1, :] + psum
        acc_ref[1:2, :] = jnp.maximum(acc_ref[1:2, :], pmax)

    @pl.when(c_idx == pl.num_programs(1) - 1)
    def _conv_bias_sigmoid():
        m_all = acc_ref[...]                       # (2, HW): [channel-sum, channel-max]
        ycoord = yx_ref[0:1, :]                    # (1, HW) int32 row index
        xcoord = yx_ref[1:2, :]                    # (1, HW) int32 col index

        # Boundary masks for each vertical / horizontal tap offset (hoisted).
        ymasks = [(ycoord >= -dy) & (ycoord < h - dy) for dy in range(-pad, pad + 1)]
        xmasks = [(xcoord >= -dx) & (xcoord < w - dx) for dx in range(-pad, pad + 1)]

        acc = jnp.full((1, hw), b_ref[0], dtype=jnp.float32)
        for ky in range(k):
            dy = ky - pad
            for kx in range(k):
                dx = kx - pad
                delta = dy * w + dx
                # tap[p] = m_all[:, p + delta], zero outside the image:
                # lane roll (XLU) instead of lane-unaligned slice relayouts.
                shifted = m_all if delta == 0 else pltpu.roll(
                    m_all, shift=(-delta) % hw, axis=1)
                w_avg = w_ref[ky * k + kx]            # plane 0 (1/C pre-folded)
                w_max = w_ref[k * k + ky * k + kx]    # plane 1
                contrib = w_avg * shifted[0:1, :] + w_max * shifted[1:2, :]
                acc = acc + jnp.where(ymasks[ky] & xmasks[kx], contrib, 0.0)

        o_ref[0] = jax.nn.sigmoid(acc).astype(o_ref.dtype)


# ---------------------------------------------------------------------------
# Tile selection helpers
# ---------------------------------------------------------------------------
def _sublane_align(dtype):
    # Native sublane packing: 4-byte -> 8, 2-byte -> 16, 1-byte -> 32.
    return {4: 8, 2: 16, 1: 32}.get(jnp.dtype(dtype).itemsize, 8)


def _pick_channel_tile(c, hw, itemsize, align, budget_bytes):
    """Largest channel tile that divides C, is sublane-aligned (or == C), and
    keeps one (1, tc, hw) input block under the per-block byte budget."""
    max_tc = max(1, budget_bytes // max(1, hw * itemsize))
    if c <= max_tc:
        return c
    best = 0
    t = align
    while t <= max_tc:
        if c % t == 0:
            best = t
        t += align
    if best:
        return best
    # TODO(synk): pad C in the wrapper (0 for the sum plane, -inf for the max
    # plane) when C has no sublane-aligned divisor under the budget, instead
    # of falling back to one full-C block.
    return c


# ---------------------------------------------------------------------------
# Wrapper
# ---------------------------------------------------------------------------
def spatial_attention_forward(x, weight, bias, *, block_budget_bytes=8 << 20):
    """x: (N, C, H, W); weight: (1, 2, K, K); bias: (1,). Returns (N, 1, H, W)."""
    n, c, h, w = x.shape
    _, _, k, _ = weight.shape
    hw = h * w
    itemsize = jnp.dtype(x.dtype).itemsize

    tc = _pick_channel_tile(c, hw, itemsize, _sublane_align(x.dtype),
                            block_budget_bytes)
    num_c_steps = c // tc

    # Lane-dense layout: spatial flattened into the last (lane) axis — free for
    # contiguous NCHW, and every block DMA is one fully contiguous read.
    x_flat = x.reshape(n, c, hw)

    # Fold the 1/C of the channel mean into the plane-0 conv weights so the
    # kernel convolves the running channel-sum directly.
    w_scaled = weight.astype(jnp.float32).at[:, 0].multiply(1.0 / c)
    w_flat = w_scaled.reshape(2 * k * k)
    b_flat = bias.reshape(1).astype(jnp.float32)

    # (y, x) coordinate planes of the flattened spatial axis (conv boundary
    # masks) — avoids in-kernel integer div/mod on vectors.
    yy, xx = jnp.meshgrid(jnp.arange(h, dtype=jnp.int32),
                          jnp.arange(w, dtype=jnp.int32), indexing="ij")
    yx = jnp.stack([yy.reshape(hw), xx.reshape(hw)], axis=0)      # (2, HW) i32

    # Double-buffered input blocks + resident output/accumulator + headroom.
    # Raised above v5e's 16 MiB scoped default; clamped to 64 MiB (v7x VMEM).
    block_bytes = tc * hw * itemsize
    vmem_limit = int(min(64 << 20, max(32 << 20, 3 * block_bytes + (4 << 20))))

    out = pl.pallas_call(
        functools.partial(_spatial_attention_kernel, h=h, w=w, ksize=k),
        out_shape=jax.ShapeDtypeStruct((n, 1, hw), x.dtype),
        grid_spec=pltpu.PrefetchScalarGridSpec(
            num_scalar_prefetch=0,
            # Batch axis "parallel" (megacore-shardable on v7x when N >= 2);
            # channel axis is the reduction -> last + "arbitrary".
            # NOTE: for N == 1 on v7x one TensorCore idles; splitting spatial
            # would forgo the fused conv (halo exchange), not worth it here.
            grid=(n, num_c_steps),
            in_specs=[
                pl.BlockSpec(memory_space=pltpu.MemorySpace.SMEM),   # conv weights
                pl.BlockSpec(memory_space=pltpu.MemorySpace.SMEM),   # conv bias
                pl.BlockSpec((2, hw), lambda b, cc: (0, 0)),         # coord planes
                pl.BlockSpec((1, tc, hw), lambda b, cc: (b, cc, 0)), # x stream
            ],
            out_specs=pl.BlockSpec((1, 1, hw), lambda b, cc: (b, 0, 0)),
            scratch_shapes=[pltpu.VMEM((2, hw), jnp.float32)],
        ),
        compiler_params=pltpu.CompilerParams(
            dimension_semantics=("parallel", "arbitrary"),
            vmem_limit_bytes=vmem_limit,
        ),
    )(w_flat, b_flat, yx, x_flat)

    return out.reshape(n, 1, h, w)


# ---------------------------------------------------------------------------
# Pure-JAX reference mirroring the PyTorch forward
# ---------------------------------------------------------------------------
def spatial_attention_reference(x, weight, bias):
    avg = jnp.mean(x, axis=1, keepdims=True)
    mx = jnp.max(x, axis=1, keepdims=True)
    m = jnp.concatenate([avg, mx], axis=1)                     # (N, 2, H, W)
    k = weight.shape[-1]
    pad = k // 2
    y = lax.conv_general_dilated(
        m, weight,
        window_strides=(1, 1),
        padding=((pad, pad), (pad, pad)),
        dimension_numbers=("NCHW", "OIHW", "NCHW"),
        precision=lax.Precision.HIGHEST,
    )
    y = y + bias.reshape(1, -1, 1, 1)
    return jax.nn.sigmoid(y).astype(x.dtype)


if __name__ == "__main__":
    key = jax.random.PRNGKey(0)
    n, c, h, w, k = 2, 4, 16, 16, 7

    kx, kw, kb = jax.random.split(key, 3)
    x = jax.random.normal(kx, (n, c, h, w), dtype=jnp.float32)
    weight = 0.1 * jax.random.normal(kw, (1, 2, k, k), dtype=jnp.float32)
    bias = 0.1 * jax.random.normal(kb, (1,), dtype=jnp.float32)

    out = spatial_attention_forward(x, weight, bias)
    jax.block_until_ready(out)

    ref = spatial_attention_reference(x, weight, bias)
    assert out.shape == (n, 1, h, w)
    assert jnp.allclose(out, ref, atol=1e-5, rtol=1e-5), "mismatch vs reference"

    print("KERNEL_OK")
</pallas_src>

<mosaic_0001>
module attributes {stable_mosaic.version = 11 : i64} {
  func.func @_spatial_attention_kernel(%arg0: i32, %arg1: i32, %arg2: memref<98xf32, #tpu.memory_space<smem>>, %arg3: memref<1xf32, #tpu.memory_space<smem>>, %arg4: memref<2x256xi32, #tpu.memory_space<vmem>>, %arg5: memref<1x4x256xf32, #tpu.memory_space<vmem>>, %arg6: memref<1x1x256xf32, #tpu.memory_space<vmem>>, %arg7: memref<2x256xf32, #tpu.memory_space<vmem>>) attributes {dimension_semantics = [#tpu.dimension_semantics<parallel>, #tpu.dimension_semantics<arbitrary>], iteration_bounds = array<i64: 2, 1>, scalar_prefetch = 0 : i64, scratch_operands = 1 : i64, tpu.core_type = #tpu.core_type<tc>, window_params = [{transform_indices = @transform_0, window_bounds = array<i64: 98>}, {transform_indices = @transform_1, window_bounds = array<i64: 1>}, {pipeline_mode = #tpu.pipeline_mode<synchronous>, transform_indices = @transform_2, window_bounds = array<i64: 2, 256>}, {transform_indices = @transform_3, window_bounds = array<i64: 1, 4, 256>}, {transform_indices = @transform_4, window_bounds = array<i64: 1, 1, 256>}]} {
    %c0 = arith.constant 0 : index
    %c0_0 = arith.constant 0 : index
    %c0_1 = arith.constant 0 : index
    %0 = vector.load %arg5[%c0, %c0_0, %c0_1] : memref<1x4x256xf32, #tpu.memory_space<vmem>>, vector<1x4x256xf32>
    %1 = vector.shape_cast %0 : vector<1x4x256xf32> to vector<4x256xf32>
    %cst = arith.constant dense<0.000000e+00> : vector<256xf32>
    %2 = vector.multi_reduction <add>, %1, %cst [0] : vector<4x256xf32> to vector<256xf32>
    %3 = vector.shape_cast %2 : vector<256xf32> to vector<1x256xf32>
    %cst_2 = arith.constant dense<0xFF800000> : vector<256xf32>
    %4 = vector.multi_reduction <maximumf>, %1, %cst_2 [0] : vector<4x256xf32> to vector<256xf32>
    %5 = vector.shape_cast %4 : vector<256xf32> to vector<1x256xf32>
    %c0_i32 = arith.constant 0 : i32
    %6 = arith.cmpi eq, %arg1, %c0_i32 : i32
    %7 = arith.extui %6 : i1 to i32
    %c0_i32_3 = arith.constant 0 : i32
    %8 = arith.cmpi ne, %7, %c0_i32_3 : i32
    scf.if %8 {
      %c0_8 = arith.constant 0 : index
      %c0_9 = arith.constant 0 : index
      %15 = vector.load %arg7[%c0_8, %c0_9] : memref<2x256xf32, #tpu.memory_space<vmem>>, vector<1x256xf32>
      tpu.vector_store %arg7[%c0_8, %c0_9], %3 {strides = array<i32>} : memref<2x256xf32, #tpu.memory_space<vmem>>, vector<1x256xf32>,
      %c1 = arith.constant 1 : index
      %c0_10 = arith.constant 0 : index
      %16 = vector.load %arg7[%c1, %c0_10] : memref<2x256xf32, #tpu.memory_space<vmem>>, vector<1x256xf32>
      tpu.vector_store %arg7[%c1, %c0_10], %5 {strides = array<i32>} : memref<2x256xf32, #tpu.memory_space<vmem>>, vector<1x256xf32>,
    } else {
    }
    %c0_i32_4 = arith.constant 0 : i32
    %9 = arith.cmpi sgt, %arg1, %c0_i32_4 : i32
    %10 = arith.extui %9 : i1 to i32
    %c0_i32_5 = arith.constant 0 : i32
    %11 = arith.cmpi ne, %10, %c0_i32_5 : i32
    scf.if %11 {
      %c0_8 = arith.constant 0 : index
      %c0_9 = arith.constant 0 : index
      %15 = vector.load %arg7[%c0_8, %c0_9] : memref<2x256xf32, #tpu.memory_space<vmem>>, vector<1x256xf32>
      %16 = arith.addf %15, %3 : vector<1x256xf32>
      %c0_10 = arith.constant 0 : index
      %c0_11 = arith.constant 0 : index
      %17 = vector.load %arg7[%c0_10, %c0_11] : memref<2x256xf32, #tpu.memory_space<vmem>>, vector<1x256xf32>
      tpu.vector_store %arg7[%c0_10, %c0_11], %16 {strides = array<i32>} : memref<2x256xf32, #tpu.memory_space<vmem>>, vector<1x256xf32>,
      %c1 = arith.constant 1 : index
      %c0_12 = arith.constant 0 : index
      %18 = vector.load %arg7[%c1, %c0_12] : memref<2x256xf32, #tpu.memory_space<vmem>>, vector<1x256xf32>
      %19 = arith.maximumf %18, %5 : vector<1x256xf32>
      %c1_13 = arith.constant 1 : index
      %c0_14 = arith.constant 0 : index
      %20 = vector.load %arg7[%c1_13, %c0_14] : memref<2x256xf32, #tpu.memory_space<vmem>>, vector<1x256xf32>
      tpu.vector_store %arg7[%c1_13, %c0_14], %19 {strides = array<i32>} : memref<2x256xf32, #tpu.memory_space<vmem>>, vector<1x256xf32>,
    } else {
    }
    %c0_i32_6 = arith.constant 0 : i32
    %12 = arith.cmpi eq, %arg1, %c0_i32_6 : i32
    %13 = arith.extui %12 : i1 to i32
    %c0_i32_7 = arith.constant 0 : i32
    %14 = arith.cmpi ne, %13, %c0_i32_7 : i32
    scf.if %14 {
      %c0_8 = arith.constant 0 : index
      %c0_9 = arith.constant 0 : index
      %15 = vector.load %arg7[%c0_8, %c0_9] : memref<2x256xf32, #tpu.memory_space<vmem>>, vector<2x256xf32>
      %c0_10 = arith.constant 0 : index
      %c0_11 = arith.constant 0 : index
      %16 = vector.load %arg4[%c0_10, %c0_11] : memref<2x256xi32, #tpu.memory_space<vmem>>, vector<1x256xi32>
      %c1 = arith.constant 1 : index
      %c0_12 = arith.constant 0 : index
      %17 = vector.load %arg4[%c1, %c0_12] : memref<2x256xi32, #tpu.memory_space<vmem>>, vector<1x256xi32>
      %c3_i32 = arith.constant 3 : i32
      %18 = vector.broadcast %c3_i32 : i32 to vector<1x256xi32>
      %19 = arith.cmpi sge, %16, %18 : vector<1x256xi32>
      %c19_i32 = arith.constant 19 : i32
      %20 = vector.broadcast %c19_i32 : i32 to vector<1x256xi32>
      %21 = arith.cmpi slt, %16, %20 : vector<1x256xi32>
      %22 = arith.andi %19, %21 : vector<1x256xi1>
      %c2_i32 = arith.constant 2 : i32
      %23 = vector.broadcast %c2_i32 : i32 to vector<1x256xi32>
      %24 = arith.cmpi sge, %16, %23 : vector<1x256xi32>
      %c18_i32 = arith.constant 18 : i32
      %25 = vector.broadcast %c18_i32 : i32 to vector<1x256xi32>
      %26 = arith.cmpi slt, %16, %25 : vector<1x256xi32>
      %27 = arith.andi %24, %26 : vector<1x256xi1>
      %c1_i32 = arith.constant 1 : i32
      %28 = vector.broadcast %c1_i32 : i32 to vector<1x256xi32>
      %29 = arith.cmpi sge, %16, %28 : vector<1x256xi32>
      %c17_i32 = arith.constant 17 : i32
      %30 = vector.broadcast %c17_i32 : i32 to vector<1x256xi32>
      %31 = arith.cmpi slt, %16, %30 : vector<1x256xi32>
      %32 = arith.andi %29, %31 : vector<1x256xi1>
      %c0_i32_13 = arith.constant 0 : i32
      %33 = vector.broadcast %c0_i32_13 : i32 to vector<1x256xi32>
      %34 = arith.cmpi sge, %16, %33 : vector<1x256xi32>
      %c16_i32 = arith.constant 16 : i32
      %35 = vector.broadcast %c16_i32 : i32 to vector<1x256xi32>
      %36 = arith.cmpi slt, %16, %35 : vector<1x256xi32>
      %37 = arith.andi %34, %36 : vector<1x256xi1>
      %c-1_i32 = arith.constant -1 : i32
      %38 = vector.broadcast %c-1_i32 : i32 to vector<1x256xi32>
      %39 = arith.cmpi sge, %16, %38 : vector<1x256xi32>
      %c15_i32 = arith.constant 15 : i32
      %40 = vector.broadcast %c15_i32 : i32 to vector<1x256xi32>
      %41 = arith.cmpi slt, %16, %40 : vector<1x256xi32>
      %42 = arith.andi %39, %41 : vector<1x256xi1>
      %c-2_i32 = arith.constant -2 : i32
      %43 = vector.broadcast %c-2_i32 : i32 to vector<1x256xi32>
      %44 = arith.cmpi sge, %16, %43 : vector<1x256xi32>
      %c14_i32 = arith.constant 14 : i32
      %45 = vector.broadcast %c14_i32 : i32 to vector<1x256xi32>
      %46 = arith.cmpi slt, %16, %45 : vector<1x256xi32>
      %47 = arith.andi %44, %46 : vector<1x256xi1>
      %c-3_i32 = arith.constant -3 : i32
      %48 = vector.broadcast %c-3_i32 : i32 to vector<1x256xi32>
      %49 = arith.cmpi sge, %16, %48 : vector<1x256xi32>
      %c13_i32 = arith.constant 13 : i32
      %50 = vector.broadcast %c13_i32 : i32 to vector<1x256xi32>
      %51 = arith.cmpi slt, %16, %50 : vector<1x256xi32>
      %52 = arith.andi %49, %51 : vector<1x256xi1>
      %c3_i32_14 = arith.constant 3 : i32
      %53 = vector.broadcast %c3_i32_14 : i32 to vector<1x256xi32>
      %54 = arith.cmpi sge, %17, %53 : vector<1x256xi32>
      %c19_i32_15 = arith.constant 19 : i32
      %55 = vector.broadcast %c19_i32_15 : i32 to vector<1x256xi32>
      %56 = arith.cmpi slt, %17, %55 : vector<1x256xi32>
      %57 = arith.andi %54, %56 : vector<1x256xi1>
      %c2_i32_16 = arith.constant 2 : i32
      %58 = vector.broadcast %c2_i32_16 : i32 to vector<1x256xi32>
      %59 = arith.cmpi sge, %17, %58 : vector<1x256xi32>
      %c18_i32_17 = arith.constant 18 : i32
      %60 = vector.broadcast %c18_i32_17 : i32 to vector<1x256xi32>
      %61 = arith.cmpi slt, %17, %60 : vector<1x256xi32>
      %62 = arith.andi %59, %61 : vector<1x256xi1>
      %c1_i32_18 = arith.constant 1 : i32
      %63 = vector.broadcast %c1_i32_18 : i32 to vector<1x256xi32>
      %64 = arith.cmpi sge, %17, %63 : vector<1x256xi32>
      %c17_i32_19 = arith.constant 17 : i32
      %65 = vector.broadcast %c17_i32_19 : i32 to vector<1x256xi32>
      %66 = arith.cmpi slt, %17, %65 : vector<1x256xi32>
      %67 = arith.andi %64, %66 : vector<1x256xi1>
      %c0_i32_20 = arith.constant 0 : i32
      %68 = vector.broadcast %c0_i32_20 : i32 to vector<1x256xi32>
      %69 = arith.cmpi sge, %17, %68 : vector<1x256xi32>
      %c16_i32_21 = arith.constant 16 : i32
      %70 = vector.broadcast %c16_i32_21 : i32 to vector<1x256xi32>
      %71 = arith.cmpi slt, %17, %70 : vector<1x256xi32>
      %72 = arith.andi %69, %71 : vector<1x256xi1>
      %c-1_i32_22 = arith.constant -1 : i32
      %73 = vector.broadcast %c-1_i32_22 : i32 to vector<1x256xi32>
      %74 = arith.cmpi sge, %17, %73 : vector<1x256xi32>
      %c15_i32_23 = arith.constant 15 : i32
      %75 = vector.broadcast %c15_i32_23 : i32 to vector<1x256xi32>
      %76 = arith.cmpi slt, %17, %75 : vector<1x256xi32>
      %77 = arith.andi %74, %76 : vector<1x256xi1>
      %c-2_i32_24 = arith.constant -2 : i32
      %78 = vector.broadcast %c-2_i32_24 : i32 to vector<1x256xi32>
      %79 = arith.cmpi sge, %17, %78 : vector<1x256xi32>
      %c14_i32_25 = arith.constant 14 : i32
      %80 = vector.broadcast %c14_i32_25 : i32 to vector<1x256xi32>
      %81 = arith.cmpi slt, %17, %80 : vector<1x256xi32>
      %82 = arith.andi %79, %81 : vector<1x256xi1>
      %c-3_i32_26 = arith.constant -3 : i32
      %83 = vector.broadcast %c-3_i32_26 : i32 to vector<1x256xi32>
      %84 = arith.cmpi sge, %17, %83 : vector<1x256xi32>
      %c13_i32_27 = arith.constant 13 : i32
      %85 = vector.broadcast %c13_i32_27 : i32 to vector<1x256xi32>
      %86 = arith.cmpi slt, %17, %85 : vector<1x256xi32>
      %87 = arith.andi %84, %86 : vector<1x256xi1>
      %c0_28 = arith.constant 0 : index
      %88 = memref.load %arg3[%c0_28] : memref<1xf32, #tpu.memory_space<smem>>
      %89 = vector.broadcast %88 : f32 to vector<1x256xf32>
      %c51_i32 = arith.constant 51 : i32
      %90 = tpu.dynamic_rotate %15 by %c51_i32 dim 1 : vector<2x256xf32>, i32 -> vector<2x256xf32>
      %c0_29 = arith.constant 0 : index
      %91 = memref.load %arg2[%c0_29] : memref<98xf32, #tpu.memory_space<smem>>
      %c49 = arith.constant 49 : index
      %92 = memref.load %arg2[%c49] : memref<98xf32, #tpu.memory_space<smem>>
      %93 = vector.extract_strided_slice %90 {offsets = [0, 0], sizes = [1, 256], strides = [1, 1]} : vector<2x256xf32> to vector<1x256xf32>
      %94 = vector.broadcast %91 : f32 to vector<1x256xf32>
      %95 = arith.mulf %94, %93 : vector<1x256xf32>
      %96 = vector.extract_strided_slice %90 {offsets = [1, 0], sizes = [1, 256], strides = [1, 1]} : vector<2x256xf32> to vector<1x256xf32>
      %97 = vector.broadcast %92 : f32 to vector<1x256xf32>
      %98 = arith.mulf %97, %96 : vector<1x256xf32>
      %99 = arith.addf %95, %98 : vector<1x256xf32>
      %100 = arith.andi %22, %57 : vector<1x256xi1>
      %cst_30 = arith.constant 0.000000e+00 : f32
      %101 = vector.broadcast %cst_30 : f32 to vector<1x256xf32>
      %102 = arith.select %100, %99, %101 : vector<1x256xi1>, vector<1x256xf32>
      %103 = arith.addf %89, %102 : vector<1x256xf32>
      %c50_i32 = arith.constant 50 : i32
      %104 = tpu.dynamic_rotate %15 by %c50_i32 dim 1 : vector<2x256xf32>, i32 -> vector<2x256xf32>
      %c1_31 = arith.constant 1 : index
      %105 = memref.load %arg2[%c1_31] : memref<98xf32, #tpu.memory_space<smem>>
      %c50 = arith.constant 50 : index
      %106 = memref.load %arg2[%c50] : memref<98xf32, #tpu.memory_space<smem>>
      %107 = vector.extract_strided_slice %104 {offsets = [0, 0], sizes = [1, 256], strides = [1, 1]} : vector<2x256xf32> to vector<1x256xf32>
      %108 = vector.broadcast %105 : f32 to vector<1x256xf32>
      %109 = arith.mulf %108, %107 : vector<1x256xf32>
      %110 = vector.extract_strided_slice %104 {offsets = [1, 0], sizes = [1, 256], strides = [1, 1]} : vector<2x256xf32> to vector<1x256xf32>
      %111 = vector.broadcast %106 : f32 to vector<1x256xf32>
      %112 = arith.mulf %111, %110 : vector<1x256xf32>
      %113 = arith.addf %109, %112 : vector<1x256xf32>
      %114 = arith.andi %22, %62 : vector<1x256xi1>
      %cst_32 = arith.constant 0.000000e+00 : f32
      %115 = vector.broadcast %cst_32 : f32 to vector<1x256xf32>
      %116 = arith.select %114, %113, %115 : vector<1x256xi1>, vector<1x256xf32>
      %117 = arith.addf %103, %116 : vector<1x256xf32>
      %c49_i32 = arith.constant 49 : i32
      %118 = tpu.dynamic_rotate %15 by %c49_i32 dim 1 : vector<2x256xf32>, i32 -> vector<2x256xf32>
      %c2 = arith.constant 2 : index
      %119 = memref.load %arg2[%c2] : memref<98xf32, #tpu.memory_space<smem>>
      %c51 = arith.constant 51 : index
      %120 = memref.load %arg2[%c51] : memref<98xf32, #tpu.memory_space<smem>>
      %121 = vector.extract_strided_slice %118 {offsets = [0, 0], sizes = [1, 256], strides = [1, 1]} : vector<2x256xf32> to vector<1x256xf32>
      %122 = vector.broadcast %119 : f32 to vector<1x256xf32>
      %123 = arith.mulf %122, %121 : vector<1x256xf32>
      %124 = vector.extract_strided_slice %118 {offsets = [1, 0], sizes = [1, 256], strides = [1, 1]} : vector<2x256xf32> to vector<1x256xf32>
      %125 = vector.broadcast %120 : f32 to vector<1x256xf32>
      %126 = arith.mulf %125, %124 : vector<1x256xf32>
      %127 = arith.addf %123, %126 : vector<1x256xf32>
      %128 = arith.andi %22, %67 : vector<1x256xi1>
      %cst_33 = arith.constant 0.000000e+00 : f32
      %129 = vector.broadcast %cst_33 : f32 to vector<1x256xf32>
      %130 = arith.select %128, %127, %129 : vector<1x256xi1>, vector<1x256xf32>
      %131 = arith.addf %117, %130 : vector<1x256xf32>
      %c48_i32 = arith.constant 48 : i32
      %132 = tpu.dynamic_rotate %15 by %c48_i32 dim 1 : vector<2x256xf32>, i32 -> vector<2x256xf32>
      %c3 = arith.constant 3 : index
      %133 = memref.load %arg2[%c3] : memref<98xf32, #tpu.memory_space<smem>>
      %c52 = arith.constant 52 : index
      %134 = memref.load %arg2[%c52] : memref<98xf32, #tpu.memory_space<smem>>
      %135 = vector.extract_strided_slice %132 {offsets = [0, 0], sizes = [1, 256], strides = [1, 1]} : vector<2x256xf32> to vector<1x256xf32>
      %136 = vector.broadcast %133 : f32 to vector<1x256xf32>
      %137 = arith.mulf %136, %135 : vector<1x256xf32>
      %138 = vector.extract_strided_slice %132 {offsets = [1, 0], sizes = [1, 256], strides = [1, 1]} : vector<2x256xf32> to vector<1x256xf32>
      %139 = vector.broadcast %134 : f32 to vector<1x256xf32>
      %140 = arith.mulf %139, %138 : vector<1x256xf32>
      %141 = arith.addf %137, %140 : vector<1x256xf32>
      %142 = arith.andi %22, %72 : vector<1x256xi1>
      %cst_34 = arith.constant 0.000000e+00 : f32
      %143 = vector.broadcast %cst_34 : f32 to vector<1x256xf32>
      %144 = arith.select %142, %141, %143 : vector<1x256xi1>, vector<1x256xf32>
      %145 = arith.addf %131, %144 : vector<1x256xf32>
      %c47_i32 = arith.constant 47 : i32
      %146 = tpu.dynamic_rotate %15 by %c47_i32 dim 1 : vector<2x256xf32>, i32 -> vector<2x256xf32>
      %c4 = arith.constant 4 : index
      %147 = memref.load %arg2[%c4] : memref<98xf32, #tpu.memory_space<smem>>
      %c53 = arith.constant 53 : index
      %148 = memref.load %arg2[%c53] : memref<98xf32, #tpu.memory_space<smem>>
      %149 = vector.extract_strided_slice %146 {offsets = [0, 0], sizes = [1, 256], strides = [1, 1]} : vector<2x256xf32> to vector<1x256xf32>
      %150 = vector.broadcast %147 : f32 to vector<1x256xf32>
      %151 = arith.mulf %150, %149 : vector<1x256xf32>
      %152 = vector.extract_strided_slice %146 {offsets = [1, 0], sizes = [1, 256], strides = [1, 1]} : vector<2x256xf32> to vector<1x256xf32>
      %153 = vector.broadcast %148 : f32 to vector<1x256xf32>
      %154 = arith.mulf %153, %152 : vector<1x256xf32>
      %155 = arith.addf %151, %154 : vector<1x256xf32>
      %156 = arith.andi %22, %77 : vector<1x256xi1>
      %cst_35 = arith.constant 0.000000e+00 : f32
      %157 = vector.broadcast %cst_35 : f32 to vector<1x256xf32>
      %158 = arith.select %156, %155, %157 : vector<1x256xi1>, vector<1x256xf32>
      %159 = arith.addf %145, %158 : vector<1x256xf32>
      %c46_i32 = arith.constant 46 : i32
      %160 = tpu.dynamic_rotate %15 by %c46_i32 dim 1 : vector<2x256xf32>, i32 -> vector<2x256xf32>
      %c5 = arith.constant 5 : index
      %161 = memref.load %arg2[%c5] : memref<98xf32, #tpu.memory_space<smem>>
      %c54 = arith.constant 54 : index
      %162 = memref.load %arg2[%c54] : memref<98xf32, #tpu.memory_space<smem>>
      %163 = vector.extract_strided_slice %160 {offsets = [0, 0], sizes = [1, 256], strides = [1, 1]} : vector<2x256xf32> to vector<1x256xf32>
      %164 = vector.broadcast %161 : f32 to vector<1x256xf32>
      %165 = arith.mulf %164, %163 : vector<1x256xf32>
      %166 = vector.extract_strided_slice %160 {offsets = [1, 0], sizes = [1, 256], strides = [1, 1]} : vector<2x256xf32> to vector<1x256xf32>
      %167 = vector.broadcast %162 : f32 to vector<1x256xf32>
      %168 = arith.mulf %167, %166 : vector<1x256xf32>
      %169 = arith.addf %165, %168 : vector<1x256xf32>
      %170 = arith.andi %22, %82 : vector<1x256xi1>
      %cst_36 = arith.constant 0.000000e+00 : f32
      %171 = vector.broadcast %cst_36 : f32 to vector<1x256xf32>
      %172 = arith.select %170, %169, %171 : vector<1x256xi1>, vector<1x256xf32>
      %173 = arith.addf %159, %172 : vector<1x256xf32>
      %c45_i32 = arith.constant 45 : i32
      %174 = tpu.dynamic_rotate %15 by %c45_i32 dim 1 : vector<2x256xf32>, i32 -> vector<2x256xf32>
      %c6 = arith.constant 6 : index
      %175 = memref.load %arg2[%c6] : memref<98xf32, #tpu.memory_space<smem>>
      %c55 = arith.constant 55 : index
      %176 = memref.load %arg2[%c55] : memref<98xf32, #tpu.memory_space<smem>>
      %177 = vector.extract_strided_slice %174 {offsets = [0, 0], sizes = [1, 256], strides = [1, 1]} : vector<2x256xf32> to vector<1x256xf32>
      %178 = vector.broadcast %175 : f32 to vector<1x256xf32>
      %179 = arith.mulf %178, %177 : vector<1x256xf32>
      %180 = vector.extract_strided_slice %174 {offsets = [1, 0], sizes = [1, 256], strides = [1, 1]} : vector<2x256xf32> to vector<1x256xf32>
      %181 = vector.broadcast %176 : f32 to vector<1x256xf32>
      %182 = arith.mulf %181, %180 : vector<1x256xf32>
      %183 = arith.addf %179, %182 : vector<1x256xf32>
      %184 = arith.andi %22, %87 : vector<1x256xi1>
      %cst_37 = arith.constant 0.000000e+00 : f32
      %185 = vector.broadcast %cst_37 : f32 to vector<1x256xf32>
      %186 = arith.select %184, %183, %185 : vector<1x256xi1>, vector<1x256xf32>
      %187 = arith.addf %173, %186 : vector<1x256xf32>
      %c35_i32 = arith.constant 35 : i32
      %188 = tpu.dynamic_rotate %15 by %c35_i32 dim 1 : vector<2x256xf32>, i32 -> vector<2x256xf32>
      %c7 = arith.constant 7 : index
      %189 = memref.load %arg2[%c7] : memref<98xf32, #tpu.memory_space<smem>>
      %c56 = arith.constant 56 : index
      %190 = memref.load %arg2[%c56] : memref<98xf32, #tpu.memory_space<smem>>
      %191 = vector.extract_strided_slice %188 {offsets = [0, 0], sizes = [1, 256], strides = [1, 1]} : vector<2x256xf32> to vector<1x256xf32>
      %192 = vector.broadcast %189 : f32 to vector<1x256xf32>
      %193 = arith.mulf %192, %191 : vector<1x256xf32>
      %194 = vector.extract_strided_slice %188 {offsets = [1, 0], sizes = [1, 256], strides = [1, 1]} : vector<2x256xf32> to vector<1x256xf32>
      %195 = vector.broadcast %190 : f32 to vector<1x256xf32>
      %196 = arith.mulf %195, %194 : vector<1x256xf32>
      %197 = arith.addf %193, %196 : vector<1x256xf32>
      %198 = arith.andi %27, %57 : vector<1x256xi1>
      %cst_38 = arith.constant 0.000000e+00 : f32
      %199 = vector.broadcast %cst_38 : f32 to vector<1x256xf32>
      %200 = arith.select %198, %197, %199 : vector<1x256xi1>, vector<1x256xf32>
      %201 = arith.addf %187, %200 : vector<1x256xf32>
      %c34_i32 = arith.constant 34 : i32
      %202 = tpu.dynamic_rotate %15 by %c34_i32 dim 1 : vector<2x256xf32>, i32 -> vector<2x256xf32>
      %c8 = arith.constant 8 : index
      %203 = memref.load %arg2[%c8] : memref<98xf32, #tpu.memory_space<smem>>
      %c57 = arith.constant 57 : index
      %204 = memref.load %arg2[%c57] : memref<98xf32, #tpu.memory_space<smem>>
      %205 = vector.extract_strided_slice %202 {offsets = [0, 0], sizes = [1, 256], strides = [1, 1]} : vector<2x256xf32> to vector<1x256xf32>
      %206 = vector.broadcast %203 : f32 to vector<1x256xf32>
      %207 = arith.mulf %206, %205 : vector<1x256xf32>
      %208 = vector.extract_strided_slice %202 {offsets = [1, 0], sizes = [1, 256], strides = [1, 1]} : vector<2x256xf32> to vector<1x256xf32>
      %209 = vector.broadcast %204 : f32 to vector<1x256xf32>
      %210 = arith.mulf %209, %208 : vector<1x256xf32>
      %211 = arith.addf %207, %210 : vector<1x256xf32>
      %212 = arith.andi %27, %62 : vector<1x256xi1>
      %cst_39 = arith.constant 0.000000e+00 : f32
      %213 = vector.broadcast %cst_39 : f32 to vector<1x256xf32>
      %214 = arith.select %212, %211, %213 : vector<1x256xi1>, vector<1x256xf32>
      %215 = arith.addf %201, %214 : vector<1x256xf32>
      %c33_i32 = arith.constant 33 : i32
      %216 = tpu.dynamic_rotate %15 by %c33_i32 dim 1 : vector<2x256xf32>, i32 -> vector<2x256xf32>
      %c9 = arith.constant 9 : index
      %217 = memref.load %arg2[%c9] : memref<98xf32, #tpu.memory_space<smem>>
      %c58 = arith.constant 58 : index
      %218 = memref.load %arg2[%c58] : memref<98xf32, #tpu.memory_space<smem>>
      %219 = vector.extract_strided_slice %216 {offsets = [0, 0], sizes = [1, 256], strides = [1, 1]} : vector<2x256xf32> to vector<1x256xf32>
      %220 = vector.broadcast %217 : f32 to vector<1x256xf32>
      %221 = arith.mulf %220, %219 : vector<1x256xf32>
      %222 = vector.extract_strided_slice %216 {offsets = [1, 0], sizes = [1, 256], strides = [1, 1]} : vector<2x256xf32> to vector<1x256xf32>
      %223 = vector.broadcast %218 : f32 to vector<1x256xf32>
      %224 = arith.mulf %223, %222 : vector<1x256xf32>
      %225 = arith.addf %221, %224 : vector<1x256xf32>
      %226 = arith.andi %27, %67 : vector<1x256xi1>
      %cst_40 = arith.constant 0.000000e+00 : f32
      %227 = vector.broadcast %cst_40 : f32 to vector<1x256xf32>
      %228 = arith.select %226, %225, %227 : vector<1x256xi1>, vector<1x256xf32>
      %229 = arith.addf %215, %228 : vector<1x256xf32>
      %c32_i32 = arith.constant 32 : i32
      %230 = tpu.dynamic_rotate %15 by %c32_i32 dim 1 : vector<2x256xf32>, i32 -> vector<2x256xf32>
      %c10 = arith.constant 10 : index
      %231 = memref.load %arg2[%c10] : memref<98xf32, #tpu.memory_space<smem>>
      %c59 = arith.constant 59 : index
      %232 = memref.load %arg2[%c59] : memref<98xf32, #tpu.memory_space<smem>>
      %233 = vector.extract_strided_slice %230 {offsets = [0, 0], sizes = [1, 256], strides = [1, 1]} : vector<2x256xf32> to vector<1x256xf32>
      %234 = vector.broadcast %231 : f32 to vector<1x256xf32>
      %235 = arith.mulf %234, %233 : vector<1x256xf32>
      %236 = vector.extract_strided_slice %230 {offsets = [1, 0], sizes = [1, 256], strides = [1, 1]} : vector<2x256xf32> to vector<1x256xf32>
      %237 = vector.broadcast %232 : f32 to vector<1x256xf32>
      %238 = arith.mulf %237, %236 : vector<1x256xf32>
      %239 = arith.addf %235, %238 : vector<1x256xf32>
      %240 = arith.andi %27, %72 : vector<1x256xi1>
      %cst_41 = arith.constant 0.000000e+00 : f32
      %241 = vector.broadcast %cst_41 : f32 to vector<1x256xf32>
      %242 = arith.select %240, %239, %241 : vector<1x256xi1>, vector<1x256xf32>
      %243 = arith.addf %229, %242 : vector<1x256xf32>
      %c31_i32 = arith.constant 31 : i32
      %244 = tpu.dynamic_rotate %15 by %c31_i32 dim 1 : vector<2x256xf32>, i32 -> vector<2x256xf32>
      %c11 = arith.constant 11 : index
      %245 = memref.load %arg2[%c11] : memref<98xf32, #tpu.memory_space<smem>>
      %c60 = arith.constant 60 : index
      %246 = memref.load %arg2[%c60] : memref<98xf32, #tpu.memory_space<smem>>
      %247 = vector.extract_strided_slice %244 {offsets = [0, 0], sizes = [1, 256], strides = [1, 1]} : vector<2x256xf32> to vector<1x256xf32>
      %248 = vector.broadcast %245 : f32 to vector<1x256xf32>
      %249 = arith.mulf %248, %247 : vector<1x256xf32>
      %250 = vector.extract_strided_slice %244 {offsets = [1, 0], sizes = [1, 256], strides = [1, 1]} : vector<2x256xf32> to vector<1x256xf32>
      %251 = vector.broadcast %246 : f32 to vector<1x256xf32>
      %252 = arith.mulf %251, %250 : vector<1x256xf32>
      %253 = arith.addf %249, %252 : vector<1x256xf32>
      %254 = arith.andi %27, %77 : vector<1x256xi1>
      %cst_42 = arith.constant 0.000000e+00 : f32
      %255 = vector.broadcast %cst_42 : f32 to vector<1x256xf32>
      %256 = arith.select %254, %253, %255 : vector<1x256xi1>, vector<1x256xf32>
      %257 = arith.addf %243, %256 : vector<1x256xf32>
      %c30_i32 = arith.constant 30 : i32
      %258 = tpu.dynamic_rotate %15 by %c30_i32 dim 1 : vector<2x256xf32>, i32 -> vector<2x256xf32>
      %c12 = arith.constant 12 : index
      %259 = memref.load %arg2[%c12] : memref<98xf32, #tpu.memory_space<smem>>
      %c61 = arith.constant 61 : index
      %260 = memref.load %arg2[%c61] : memref<98xf32, #tpu.memory_space<smem>>
      %261 = vector.extract_strided_slice %258 {offsets = [0, 0], sizes = [1, 256], strides = [1, 1]} : vector<2x256xf32> to vector<1x256xf32>
      %262 = vector.broadcast %259 : f32 to vector<1x256xf32>
      %263 = arith.mulf %262, %261 : vector<1x256xf32>
      %264 = vector.extract_strided_slice %258 {offsets = [1, 0], sizes = [1, 256], strides = [1, 1]} : vector<2x256xf32> to vector<1x256xf32>
      %265 = vector.broadcast %260 : f32 to vector<1x256xf32>
      %266 = arith.mulf %265, %264 : vector<1x256xf32>
      %267 = arith.addf %263, %266 : vector<1x256xf32>
      %268 = arith.andi %27, %82 : vector<1x256xi1>
      %cst_43 = arith.constant 0.000000e+00 : f32
      %269 = vector.broadcast %cst_43 : f32 to vector<1x256xf32>
      %270 = arith.select %268, %267, %269 : vector<1x256xi1>, vector<1x256xf32>
      %271 = arith.addf %257, %270 : vector<1x256xf32>
      %c29_i32 = arith.constant 29 : i32
      %272 = tpu.dynamic_rotate %15 by %c29_i32 dim 1 : vector<2x256xf32>, i32 -> vector<2x256xf32>
      %c13 = arith.constant 13 : index
      %273 = memref.load %arg2[%c13] : memref<98xf32, #tpu.memory_space<smem>>
      %c62 = arith.constant 62 : index
      %274 = memref.load %arg2[%c62] : memref<98xf32, #tpu.memory_space<smem>>
      %275 = vector.extract_strided_slice %272 {offsets = [0, 0], sizes = [1, 256], strides = [1, 1]} : vector<2x256xf32> to vector<1x256xf32>
      %276 = vector.broadcast %273 : f32 to vector<1x256xf32>
      %277 = arith.mulf %276, %275 : vector<1x256xf32>
      %278 = vector.extract_strided_slice %272 {offsets = [1, 0], sizes = [1, 256], strides = [1, 1]} : vector<2x256xf32> to vector<1x256xf32>
      %279 = vector.broadcast %274 : f32 to vector<1x256xf32>
      %280 = arith.mulf %279, %278 : vector<1x256xf32>
      %281 = arith.addf %277, %280 : vector<1x256xf32>
      %282 = arith.andi %27, %87 : vector<1x256xi1>
      %cst_44 = arith.constant 0.000000e+00 : f32
      %283 = vector.broadcast %cst_44 : f32 to vector<1x256xf32>
      %284 = arith.select %282, %281, %283 : vector<1x256xi1>, vector<1x256xf32>
      %285 = arith.addf %271, %284 : vector<1x256xf32>
      %c19_i32_45 = arith.constant 19 : i32
      %286 = tpu.dynamic_rotate %15 by %c19_i32_45 dim 1 : vector<2x256xf32>, i32 -> vector<2x256xf32>
      %c14 = arith.constant 14 : index
      %287 = memref.load %arg2[%c14] : memref<98xf32, #tpu.memory_space<smem>>
      %c63 = arith.constant 63 : index
      %288 = memref.load %arg2[%c63] : memref<98xf32, #tpu.memory_space<smem>>
      %289 = vector.extract_strided_slice %286 {offsets = [0, 0], sizes = [1, 256], strides = [1, 1]} : vector<2x256xf32> to vector<1x256xf32>
      %290 = vector.broadcast %287 : f32 to vector<1x256xf32>
      %291 = arith.mulf %290, %289 : vector<1x256xf32>
      %292 = vector.extract_strided_slice %286 {offsets = [1, 0], sizes = [1, 256], strides = [1, 1]} : vector<2x256xf32> to vector<1x256xf32>
      %293 = vector.broadcast %288 : f32 to vector<1x256xf32>
      %294 = arith.mulf %293, %292 : vector<1x256xf32>
      %295 = arith.addf %291, %294 : vector<1x256xf32>
      %296 = arith.andi %32, %57 : vector<1x256xi1>
      %cst_46 = arith.constant 0.000000e+00 : f32
      %297 = vector.broadcast %cst_46 : f32 to vector<1x256xf32>
      %298 = arith.select %296, %295, %297 : vector<1x256xi1>, vector<1x256xf32>
      %299 = arith.addf %285, %298 : vector<1x256xf32>
      %c18_i32_47 = arith.constant 18 : i32
      %300 = tpu.dynamic_rotate %15 by %c18_i32_47 dim 1 : vector<2x256xf32>, i32 -> vector<2x256xf32>
      %c15 = arith.constant 15 : index
      %301 = memref.load %arg2[%c15] : memref<98xf32, #tpu.memory_space<smem>>
      %c64 = arith.constant 64 : index
      %302 = memref.load %arg2[%c64] : memref<98xf32, #tpu.memory_space<smem>>
      %303 = vector.extract_strided_slice %300 {offsets = [0, 0], sizes = [1, 256], strides = [1, 1]} : vector<2x256xf32> to vector<1x256xf32>
      %304 = vector.broadcast %301 : f32 to vector<1x256xf32>
      %305 = arith.mulf %304, %303 : vector<1x256xf32>
      %306 = vector.extract_strided_slice %300 {offsets = [1, 0], sizes = [1, 256], strides = [1, 1]} : vector<2x256xf32> to vector<1x256xf32>
      %307 = vector.broadcast %302 : f32 to vector<1x256xf32>
      %308 = arith.mulf %307, %306 : vector<1x256xf32>
      %309 = arith.addf %305, %308 : vector<1x256xf32>
      %310 = arith.andi %32, %62 : vector<1x256xi1>
      %cst_48 = arith.constant 0.000000e+00 : f32
      %311 = vector.broadcast %cst_48 : f32 to vector<1x256xf32>
      %312 = arith.select %310, %309, %311 : vector<1x256xi1>, vector<1x256xf32>
      %313 = arith.addf %299, %312 : vector<1x256xf32>
      %c17_i32_49 = arith.constant 17 : i32
      %314 = tpu.dynamic_rotate %15 by %c17_i32_49 dim 1 : vector<2x256xf32>, i32 -> vector<2x256xf32>
      %c16 = arith.constant 16 : index
      %315 = memref.load %arg2[%c16] : memref<98xf32, #tpu.memory_space<smem>>
      %c65 = arith.constant 65 : index
      %316 = memref.load %arg2[%c65] : memref<98xf32, #tpu.memory_space<smem>>
      %317 = vector.extract_strided_slice %314 {offsets = [0, 0], sizes = [1, 256], strides = [1, 1]} : vector<2x256xf32> to vector<1x256xf32>
      %318 = vector.broadcast %315 : f32 to vector<1x256xf32>
      %319 = arith.mulf %318, %317 : vector<1x256xf32>
      %320 = vector.extract_strided_slice %314 {offsets = [1, 0], sizes = [1, 256], strides = [1, 1]} : vector<2x256xf32> to vector<1x256xf32>
      %321 = vector.broadcast %316 : f32 to vector<1x256xf32>
      %322 = arith.mulf %321, %320 : vector<1x256xf32>
      %323 = arith.addf %319, %322 : vector<1x256xf32>
      %324 = arith.andi %32, %67 : vector<1x256xi1>
      %cst_50 = arith.constant 0.000000e+00 : f32
      %325 = vector.broadcast %cst_50 : f32 to vector<1x256xf32>
      %326 = arith.select %324, %323, %325 : vector<1x256xi1>, vector<1x256xf32>
      %327 = arith.addf %313, %326 : vector<1x256xf32>
      %c16_i32_51 = arith.constant 16 : i32
      %328 = tpu.dynamic_rotate %15 by %c16_i32_51 dim 1 : vector<2x256xf32>, i32 -> vector<2x256xf32>
      %c17 = arith.constant 17 : index
      %329 = memref.load %arg2[%c17] : memref<98xf32, #tpu.memory_space<smem>>
      %c66 = arith.constant 66 : index
      %330 = memref.load %arg2[%c66] : memref<98xf32, #tpu.memory_space<smem>>
      %331 = vector.extract_strided_slice %328 {offsets = [0, 0], sizes = [1, 256], strides = [1, 1]} : vector<2x256xf32> to vector<1x256xf32>
      %332 = vector.broadcast %329 : f32 to vector<1x256xf32>
      %333 = arith.mulf %332, %331 : vector<1x256xf32>
      %334 = vector.extract_strided_slice %328 {offsets = [1, 0], sizes = [1, 256], strides = [1, 1]} : vector<2x256xf32> to vector<1x256xf32>
      %335 = vector.broadcast %330 : f32 to vector<1x256xf32>
      %336 = arith.mulf %335, %334 : vector<1x256xf32>
      %337 = arith.addf %333, %336 : vector<1x256xf32>
      %338 = arith.andi %32, %72 : vector<1x256xi1>
      %cst_52 = arith.constant 0.000000e+00 : f32
      %339 = vector.broadcast %cst_52 : f32 to vector<1x256xf32>
      %340 = arith.select %338, %337, %339 : vector<1x256xi1>, vector<1x256xf32>
      %341 = arith.addf %327, %340 : vector<1x256xf32>
      %c15_i32_53 = arith.constant 15 : i32
      %342 = tpu.dynamic_rotate %15 by %c15_i32_53 dim 1 : vector<2x256xf32>, i32 -> vector<2x256xf32>
      %c18 = arith.constant 18 : index
      %343 = memref.load %arg2[%c18] : memref<98xf32, #tpu.memory_space<smem>>
      %c67 = arith.constant 67 : index
      %344 = memref.load %arg2[%c67] : memref<98xf32, #tpu.memory_space<smem>>
      %345 = vector.extract_strided_slice %342 {offsets = [0, 0], sizes = [1, 256], strides = [1, 1]} : vector<2x256xf32> to vector<1x256xf32>
      %346 = vector.broadcast %343 : f32 to vector<1x256xf32>
      %347 = arith.mulf %346, %345 : vector<1x256xf32>
      %348 = vector.extract_strided_slice %342 {offsets = [1, 0], sizes = [1, 256], strides = [1, 1]} : vector<2x256xf32> to vector<1x256xf32>
      %349 = vector.broadcast %344 : f32 to vector<1x256xf32>
      %350 = arith.mulf %349, %348 : vector<1x256xf32>
      %351 = arith.addf %347, %350 : vector<1x256xf32>
      %352 = arith.andi %32, %77 : vector<1x256xi1>
      %cst_54 = arith.constant 0.000000e+00 : f32
      %353 = vector.broadcast %cst_54 : f32 to vector<1x256xf32>
      %354 = arith.select %352, %351, %353 : vector<1x256xi1>, vector<1x256xf32>
      %355 = arith.addf %341, %354 : vector<1x256xf32>
      %c14_i32_55 = arith.constant 14 : i32
      %356 = tpu.dynamic_rotate %15 by %c14_i32_55 dim 1 : vector<2x256xf32>, i32 -> vector<2x256xf32>
      %c19 = arith.constant 19 : index
      %357 = memref.load %arg2[%c19] : memref<98xf32, #tpu.memory_space<smem>>
      %c68 = arith.constant 68 : index
      %358 = memref.load %arg2[%c68] : memref<98xf32, #tpu.memory_space<smem>>
      %359 = vector.extract_strided_slice %356 {offsets = [0, 0], sizes = [1, 256], strides = [1, 1]} : vector<2x256xf32> to vector<1x256xf32>
      %360 = vector.broadcast %357 : f32 to vector<1x256xf32>
      %361 = arith.mulf %360, %359 : vector<1x256xf32>
      %362 = vector.extract_strided_slice %356 {offsets = [1, 0], sizes = [1, 256], strides = [1, 1]} : vector<2x256xf32> to vector<1x256xf32>
      %363 = vector.broadcast %358 : f32 to vector<1x256xf32>
      %364 = arith.mulf %363, %362 : vector<1x256xf32>
      %365 = arith.addf %361, %364 : vector<1x256xf32>
      %366 = arith.andi %32, %82 : vector<1x256xi1>
      %cst_56 = arith.constant 0.000000e+00 : f32
      %367 = vector.broadcast %cst_56 : f32 to vector<1x256xf32>
      %368 = arith.select %366, %365, %367 : vector<1x256xi1>, vector<1x256xf32>
      %369 = arith.addf %355, %368 : vector<1x256xf32>
      %c13_i32_57 = arith.constant 13 : i32
      %370 = tpu.dynamic_rotate %15 by %c13_i32_57 dim 1 : vector<2x256xf32>, i32 -> vector<2x256xf32>
      %c20 = arith.constant 20 : index
      %371 = memref.load %arg2[%c20] : memref<98xf32, #tpu.memory_space<smem>>
      %c69 = arith.constant 69 : index
      %372 = memref.load %arg2[%c69] : memref<98xf32, #tpu.memory_space<smem>>
      %373 = vector.extract_strided_slice %370 {offsets = [0, 0], sizes = [1, 256], strides = [1, 1]} : vector<2x256xf32> to vector<1x256xf32>
      %374 = vector.broadcast %371 : f32 to vector<1x256xf32>
      %375 = arith.mulf %374, %373 : vector<1x256xf32>
      %376 = vector.extract_strided_slice %370 {offsets = [1, 0], sizes = [1, 256], strides = [1, 1]} : vector<2x256xf32> to vector<1x256xf32>
      %377 = vector.broadcast %372 : f32 to vector<1x256xf32>
      %378 = arith.mulf %377, %376 : vector<1x256xf32>
      %379 = arith.addf %375, %378 : vector<1x256xf32>
      %380 = arith.andi %32, %87 : vector<1x256xi1>
      %cst_58 = arith.constant 0.000000e+00 : f32
      %381 = vector.broadcast %cst_58 : f32 to vector<1x256xf32>
      %382 = arith.select %380, %379, %381 : vector<1x256xi1>, vector<1x256xf32>
      %383 = arith.addf %369, %382 : vector<1x256xf32>
      %c3_i32_59 = arith.constant 3 : i32
      %384 = tpu.dynamic_rotate %15 by %c3_i32_59 dim 1 : vector<2x256xf32>, i32 -> vector<2x256xf32>
      %c21 = arith.constant 21 : index
      %385 = memref.load %arg2[%c21] : memref<98xf32, #tpu.memory_space<smem>>
      %c70 = arith.constant 70 : index
      %386 = memref.load %arg2[%c70] : memref<98xf32, #tpu.memory_space<smem>>
      %387 = vector.extract_strided_slice %384 {offsets = [0, 0], sizes = [1, 256], strides = [1, 1]} : vector<2x256xf32> to vector<1x256xf32>
      %388 = vector.broadcast %385 : f32 to vector<1x256xf32>
      %389 = arith.mulf %388, %387 : vector<1x256xf32>
      %390 = vector.extract_strided_slice %384 {offsets = [1, 0], sizes = [1, 256], strides = [1, 1]} : vector<2x256xf32> to vector<1x256xf32>
      %391 = vector.broadcast %386 : f32 to vector<1x256xf32>
      %392 = arith.mulf %391, %390 : vector<1x256xf32>
      %393 = arith.addf %389, %392 : vector<1x256xf32>
      %394 = arith.andi %37, %57 : vector<1x256xi1>
      %cst_60 = arith.constant 0.000000e+00 : f32
      %395 = vector.broadcast %cst_60 : f32 to vector<1x256xf32>
      %396 = arith.select %394, %393, %395 : vector<1x256xi1>, vector<1x256xf32>
      %397 = arith.addf %383, %396 : vector<1x256xf32>
      %c2_i32_61 = arith.constant 2 : i32
      %398 = tpu.dynamic_rotate %15 by %c2_i32_61 dim 1 : vector<2x256xf32>, i32 -> vector<2x256xf32>
      %c22 = arith.constant 22 : index
      %399 = memref.load %arg2[%c22] : memref<98xf32, #tpu.memory_space<smem>>
      %c71 = arith.constant 71 : index
      %400 = memref.load %arg2[%c71] : memref<98xf32, #tpu.memory_space<smem>>
      %401 = vector.extract_strided_slice %398 {offsets = [0, 0], sizes = [1, 256], strides = [1, 1]} : vector<2x256xf32> to vector<1x256xf32>
      %402 = vector.broadcast %399 : f32 to vector<1x256xf32>
      %403 = arith.mulf %402, %401 : vector<1x256xf32>
      %404 = vector.extract_strided_slice %398 {offsets = [1, 0], sizes = [1, 256], strides = [1, 1]} : vector<2x256xf32> to vector<1x256xf32>
      %405 = vector.broadcast %400 : f32 to vector<1x256xf32>
      %406 = arith.mulf %405, %404 : vector<1x256xf32>
      %407 = arith.addf %403, %406 : vector<1x256xf32>
      %408 = arith.andi %37, %62 : vector<1x256xi1>
      %cst_62 = arith.constant 0.000000e+00 : f32
      %409 = vector.broadcast %cst_62 : f32 to vector<1x256xf32>
      %410 = arith.select %408, %407, %409 : vector<1x256xi1>, vector<1x256xf32>
      %411 = arith.addf %397, %410 : vector<1x256xf32>
      %c1_i32_63 = arith.constant 1 : i32
      %412 = tpu.dynamic_rotate %15 by %c1_i32_63 dim 1 : vector<2x256xf32>, i32 -> vector<2x256xf32>
      %c23 = arith.constant 23 : index
      %413 = memref.load %arg2[%c23] : memref<98xf32, #tpu.memory_space<smem>>
      %c72 = arith.constant 72 : index
      %414 = memref.load %arg2[%c72] : memref<98xf32, #tpu.memory_space<smem>>
      %415 = vector.extract_strided_slice %412 {offsets = [0, 0], sizes = [1, 256], strides = [1, 1]} : vector<2x256xf32> to vector<1x256xf32>
      %416 = vector.broadcast %413 : f32 to vector<1x256xf32>
      %417 = arith.mulf %416, %415 : vector<1x256xf32>
      %418 = vector.extract_strided_slice %412 {offsets = [1, 0], sizes = [1, 256], strides = [1, 1]} : vector<2x256xf32> to vector<1x256xf32>
      %419 = vector.broadcast %414 : f32 to vector<1x256xf32>
      %420 = arith.mulf %419, %418 : vector<1x256xf32>
      %421 = arith.addf %417, %420 : vector<1x256xf32>
      %422 = arith.andi %37, %67 : vector<1x256xi1>
      %cst_64 = arith.constant 0.000000e+00 : f32
      %423 = vector.broadcast %cst_64 : f32 to vector<1x256xf32>
      %424 = arith.select %422, %421, %423 : vector<1x256xi1>, vector<1x256xf32>
      %425 = arith.addf %411, %424 : vector<1x256xf32>
      %c24 = arith.constant 24 : index
      %426 = memref.load %arg2[%c24] : memref<98xf32, #tpu.memory_space<smem>>
      %c73 = arith.constant 73 : index
      %427 = memref.load %arg2[%c73] : memref<98xf32, #tpu.memory_space<smem>>
      %428 = vector.extract_strided_slice %15 {offsets = [0, 0], sizes = [1, 256], strides = [1, 1]} : vector<2x256xf32> to vector<1x256xf32>
      %429 = vector.broadcast %426 : f32 to vector<1x256xf32>
      %430 = arith.mulf %429, %428 : vector<1x256xf32>
      %431 = vector.extract_strided_slice %15 {offsets = [1, 0], sizes = [1, 256], strides = [1, 1]} : vector<2x256xf32> to vector<1x256xf32>
      %432 = vector.broadcast %427 : f32 to vector<1x256xf32>
      %433 = arith.mulf %432, %431 : vector<1x256xf32>
      %434 = arith.addf %430, %433 : vector<1x256xf32>
      %435 = arith.andi %37, %72 : vector<1x256xi1>
      %cst_65 = arith.constant 0.000000e+00 : f32
      %436 = vector.broadcast %cst_65 : f32 to vector<1x256xf32>
      %437 = arith.select %435, %434, %436 : vector<1x256xi1>, vector<1x256xf32>
      %438 = arith.addf %425, %437 : vector<1x256xf32>
      %c255_i32 = arith.constant 255 : i32
      %439 = tpu.dynamic_rotate %15 by %c255_i32 dim 1 : vector<2x256xf32>, i32 -> vector<2x256xf32>
      %c25 = arith.constant 25 : index
      %440 = memref.load %arg2[%c25] : memref<98xf32, #tpu.memory_space<smem>>
      %c74 = arith.constant 74 : index
      %441 = memref.load %arg2[%c74] : memref<98xf32, #tpu.memory_space<smem>>
      %442 = vector.extract_strided_slice %439 {offsets = [0, 0], sizes = [1, 256], strides = [1, 1]} : vector<2x256xf32> to vector<1x256xf32>
      %443 = vector.broadcast %440 : f32 to vector<1x256xf32>
      %444 = arith.mulf %443, %442 : vector<1x256xf32>
      %445 = vector.extract_strided_slice %439 {offsets = [1, 0], sizes = [1, 256], strides = [1, 1]} : vector<2x256xf32> to vector<1x256xf32>
      %446 = vector.broadcast %441 : f32 to vector<1x256xf32>
      %447 = arith.mulf %446, %445 : vector<1x256xf32>
      %448 = arith.addf %444, %447 : vector<1x256xf32>
      %449 = arith.andi %37, %77 : vector<1x256xi1>
      %cst_66 = arith.constant 0.000000e+00 : f32
      %450 = vector.broadcast %cst_66 : f32 to vector<1x256xf32>
      %451 = arith.select %449, %448, %450 : vector<1x256xi1>, vector<1x256xf32>
      %452 = arith.addf %438, %451 : vector<1x256xf32>
      %c254_i32 = arith.constant 254 : i32
      %453 = tpu.dynamic_rotate %15 by %c254_i32 dim 1 : vector<2x256xf32>, i32 -> vector<2x256xf32>
      %c26 = arith.constant 26 : index
      %454 = memref.load %arg2[%c26] : memref<98xf32, #tpu.memory_space<smem>>
      %c75 = arith.constant 75 : index
      %455 = memref.load %arg2[%c75] : memref<98xf32, #tpu.memory_space<smem>>
      %456 = vector.extract_strided_slice %453 {offsets = [0, 0], sizes = [1, 256], strides = [1, 1]} : vector<2x256xf32> to vector<1x256xf32>
      %457 = vector.broadcast %454 : f32 to vector<1x256xf32>
      %458 = arith.mulf %457, %456 : vector<1x256xf32>
      %459 = vector.extract_strided_slice %453 {offsets = [1, 0], sizes = [1, 256], strides = [1, 1]} : vector<2x256xf32> to vector<1x256xf32>
      %460 = vector.broadcast %455 : f32 to vector<1x256xf32>
      %461 = arith.mulf %460, %459 : vector<1x256xf32>
      %462 = arith.addf %458, %461 : vector<1x256xf32>
      %463 = arith.andi %37, %82 : vector<1x256xi1>
      %cst_67 = arith.constant 0.000000e+00 : f32
      %464 = vector.broadcast %cst_67 : f32 to vector<1x256xf32>
      %465 = arith.select %463, %462, %464 : vector<1x256xi1>, vector<1x256xf32>
      %466 = arith.addf %452, %465 : vector<1x256xf32>
      %c253_i32 = arith.constant 253 : i32
      %467 = tpu.dynamic_rotate %15 by %c253_i32 dim 1 : vector<2x256xf32>, i32 -> vector<2x256xf32>
      %c27 = arith.constant 27 : index
      %468 = memref.load %arg2[%c27] : memref<98xf32, #tpu.memory_space<smem>>
      %c76 = arith.constant 76 : index
      %469 = memref.load %arg2[%c76] : memref<98xf32, #tpu.memory_space<smem>>
      %470 = vector.extract_strided_slice %467 {offsets = [0, 0], sizes = [1, 256], strides = [1, 1]} : vector<2x256xf32> to vector<1x256xf32>
      %471 = vector.broadcast %468 : f32 to vector<1x256xf32>
      %472 = arith.mulf %471, %470 : vector<1x256xf32>
      %473 = vector.extract_strided_slice %467 {offsets = [1, 0], sizes = [1, 256], strides = [1, 1]} : vector<2x256xf32> to vector<1x256xf32>
      %474 = vector.broadcast %469 : f32 to vector<1x256xf32>
      %475 = arith.mulf %474, %473 : vector<1x256xf32>
      %476 = arith.addf %472, %475 : vector<1x256xf32>
      %477 = arith.andi %37, %87 : vector<1x256xi1>
      %cst_68 = arith.constant 0.000000e+00 : f32
      %478 = vector.broadcast %cst_68 : f32 to vector<1x256xf32>
      %479 = arith.select %477, %476, %478 : vector<1x256xi1>, vector<1x256xf32>
      %480 = arith.addf %466, %479 : vector<1x256xf32>
      %c243_i32 = arith.constant 243 : i32
      %481 = tpu.dynamic_rotate %15 by %c243_i32 dim 1 : vector<2x256xf32>, i32 -> vector<2x256xf32>
      %c28 = arith.constant 28 : index
      %482 = memref.load %arg2[%c28] : memref<98xf32, #tpu.memory_space<smem>>
      %c77 = arith.constant 77 : index
      %483 = memref.load %arg2[%c77] : memref<98xf32, #tpu.memory_space<smem>>
      %484 = vector.extract_strided_slice %481 {offsets = [0, 0], sizes = [1, 256], strides = [1, 1]} : vector<2x256xf32> to vector<1x256xf32>
      %485 = vector.broadcast %482 : f32 to vector<1x256xf32>
      %486 = arith.mulf %485, %484 : vector<1x256xf32>
      %487 = vector.extract_strided_slice %481 {offsets = [1, 0], sizes = [1, 256], strides = [1, 1]} : vector<2x256xf32> to vector<1x256xf32>
      %488 = vector.broadcast %483 : f32 to vector<1x256xf32>
      %489 = arith.mulf %488, %487 : vector<1x256xf32>
      %490 = arith.addf %486, %489 : vector<1x256xf32>
      %491 = arith.andi %42, %57 : vector<1x256xi1>
      %cst_69 = arith.constant 0.000000e+00 : f32
      %492 = vector.broadcast %cst_69 : f32 to vector<1x256xf32>
      %493 = arith.select %491, %490, %492 : vector<1x256xi1>, vector<1x256xf32>
      %494 = arith.addf %480, %493 : vector<1x256xf32>
      %c242_i32 = arith.constant 242 : i32
      %495 = tpu.dynamic_rotate %15 by %c242_i32 dim 1 : vector<2x256xf32>, i32 -> vector<2x256xf32>
      %c29 = arith.constant 29 : index
      %496 = memref.load %arg2[%c29] : memref<98xf32, #tpu.memory_space<smem>>
      %c78 = arith.constant 78 : index
      %497 = memref.load %arg2[%c78] : memref<98xf32, #tpu.memory_space<smem>>
      %498 = vector.extract_strided_slice %495 {offsets = [0, 0], sizes = [1, 256], strides = [1, 1]} : vector<2x256xf32> to vector<1x256xf32>
      %499 = vector.broadcast %496 : f32 to vector<1x256xf32>
      %500 = arith.mulf %499, %498 : vector<1x256xf32>
      %501 = vector.extract_strided_slice %495 {offsets = [1, 0], sizes = [1, 256], strides = [1, 1]} : vector<2x256xf32> to vector<1x256xf32>
      %502 = vector.broadcast %497 : f32 to vector<1x256xf32>
      %503 = arith.mulf %502, %501 : vector<1x256xf32>
      %504 = arith.addf %500, %503 : vector<1x256xf32>
      %505 = arith.andi %42, %62 : vector<1x256xi1>
      %cst_70 = arith.constant 0.000000e+00 : f32
      %506 = vector.broadcast %cst_70 : f32 to vector<1x256xf32>
      %507 = arith.select %505, %504, %506 : vector<1x256xi1>, vector<1x256xf32>
      %508 = arith.addf %494, %507 : vector<1x256xf32>
      %c241_i32 = arith.constant 241 : i32
      %509 = tpu.dynamic_rotate %15 by %c241_i32 dim 1 : vector<2x256xf32>, i32 -> vector<2x256xf32>
      %c30 = arith.constant 30 : index
      %510 = memref.load %arg2[%c30] : memref<98xf32, #tpu.memory_space<smem>>
      %c79 = arith.constant 79 : index
      %511 = memref.load %arg2[%c79] : memref<98xf32, #tpu.memory_space<smem>>
      %512 = vector.extract_strided_slice %509 {offsets = [0, 0], sizes = [1, 256], strides = [1, 1]} : vector<2x256xf32> to vector<1x256xf32>
      %513 = vector.broadcast %510 : f32 to vector<1x256xf32>
      %514 = arith.mulf %513, %512 : vector<1x256xf32>
      %515 = vector.extract_strided_slice %509 {offsets = [1, 0], sizes = [1, 256], strides = [1, 1]} : vector<2x256xf32> to vector<1x256xf32>
      %516 = vector.broadcast %511 : f32 to vector<1x256xf32>
      %517 = arith.mulf %516, %515 : vector<1x256xf32>
      %518 = arith.addf %514, %517 : vector<1x256xf32>
      %519 = arith.andi %42, %67 : vector<1x256xi1>
      %cst_71 = arith.constant 0.000000e+00 : f32
      %520 = vector.broadcast %cst_71 : f32 to vector<1x256xf32>
      %521 = arith.select %519, %518, %520 : vector<1x256xi1>, vector<1x256xf32>
      %522 = arith.addf %508, %521 : vector<1x256xf32>
      %c240_i32 = arith.constant 240 : i32
      %523 = tpu.dynamic_rotate %15 by %c240_i32 dim 1 : vector<2x256xf32>, i32 -> vector<2x256xf32>
      %c31 = arith.constant 31 : index
      %524 = memref.load %arg2[%c31] : memref<98xf32, #tpu.memory_space<smem>>
      %c80 = arith.constant 80 : index
      %525 = memref.load %arg2[%c80] : memref<98xf32, #tpu.memory_space<smem>>
      %526 = vector.extract_strided_slice %523 {offsets = [0, 0], sizes = [1, 256], strides = [1, 1]} : vector<2x256xf32> to vector<1x256xf32>
      %527 = vector.broadcast %524 : f32 to vector<1x256xf32>
      %528 = arith.mulf %527, %526 : vector<1x256xf32>
      %529 = vector.extract_strided_slice %523 {offsets = [1, 0], sizes = [1, 256], strides = [1, 1]} : vector<2x256xf32> to vector<1x256xf32>
      %530 = vector.broadcast %525 : f32 to vector<1x256xf32>
      %531 = arith.mulf %530, %529 : vector<1x256xf32>
      %532 = arith.addf %528, %531 : vector<1x256xf32>
      %533 = arith.andi %42, %72 : vector<1x256xi1>
      %cst_72 = arith.constant 0.000000e+00 : f32
      %534 = vector.broadcast %cst_72 : f32 to vector<1x256xf32>
      %535 = arith.select %533, %532, %534 : vector<1x256xi1>, vector<1x256xf32>
      %536 = arith.addf %522, %535 : vector<1x256xf32>
      %c239_i32 = arith.constant 239 : i32
      %537 = tpu.dynamic_rotate %15 by %c239_i32 dim 1 : vector<2x256xf32>, i32 -> vector<2x256xf32>
      %c32 = arith.constant 32 : index
      %538 = memref.load %arg2[%c32] : memref<98xf32, #tpu.memory_space<smem>>
      %c81 = arith.constant 81 : index
      %539 = memref.load %arg2[%c81] : memref<98xf32, #tpu.memory_space<smem>>
      %540 = vector.extract_strided_slice %537 {offsets = [0, 0], sizes = [1, 256], strides = [1, 1]} : vector<2x256xf32> to vector<1x256xf32>
      %541 = vector.broadcast %538 : f32 to vector<1x256xf32>
      %542 = arith.mulf %541, %540 : vector<1x256xf32>
      %543 = vector.extract_strided_slice %537 {offsets = [1, 0], sizes = [1, 256], strides = [1, 1]} : vector<2x256xf32> to vector<1x256xf32>
      %544 = vector.broadcast %539 : f32 to vector<1x256xf32>
      %545 = arith.mulf %544, %543 : vector<1x256xf32>
      %546 = arith.addf %542, %545 : vector<1x256xf32>
      %547 = arith.andi %42, %77 : vector<1x256xi1>
      %cst_73 = arith.constant 0.000000e+00 : f32
      %548 = vector.broadcast %cst_73 : f32 to vector<1x256xf32>
      %549 = arith.select %547, %546, %548 : vector<1x256xi1>, vector<1x256xf32>
      %550 = arith.addf %536, %549 : vector<1x256xf32>
      %c238_i32 = arith.constant 238 : i32
      %551 = tpu.dynamic_rotate %15 by %c238_i32 dim 1 : vector<2x256xf32>, i32 -> vector<2x256xf32>
      %c33 = arith.constant 33 : index
      %552 = memref.load %arg2[%c33] : memref<98xf32, #tpu.memory_space<smem>>
      %c82 = arith.constant 82 : index
      %553 = memref.load %arg2[%c82] : memref<98xf32, #tpu.memory_space<smem>>
      %554 = vector.extract_strided_slice %551 {offsets = [0, 0], sizes = [1, 256], strides = [1, 1]} : vector<2x256xf32> to vector<1x256xf32>
      %555 = vector.broadcast %552 : f32 to vector<1x256xf32>
      %556 = arith.mulf %555, %554 : vector<1x256xf32>
      %557 = vector.extract_strided_slice %551 {offsets = [1, 0], sizes = [1, 256], strides = [1, 1]} : vector<2x256xf32> to vector<1x256xf32>
      %558 = vector.broadcast %553 : f32 to vector<1x256xf32>
      %559 = arith.mulf %558, %557 : vector<1x256xf32>
      %560 = arith.addf %556, %559 : vector<1x256xf32>
      %561 = arith.andi %42, %82 : vector<1x256xi1>
      %cst_74 = arith.constant 0.000000e+00 : f32
      %562 = vector.broadcast %cst_74 : f32 to vector<1x256xf32>
      %563 = arith.select %561, %560, %562 : vector<1x256xi1>, vector<1x256xf32>
      %564 = arith.addf %550, %563 : vector<1x256xf32>
      %c237_i32 = arith.constant 237 : i32
      %565 = tpu.dynamic_rotate %15 by %c237_i32 dim 1 : vector<2x256xf32>, i32 -> vector<2x256xf32>
      %c34 = arith.constant 34 : index
      %566 = memref.load %arg2[%c34] : memref<98xf32, #tpu.memory_space<smem>>
      %c83 = arith.constant 83 : index
      %567 = memref.load %arg2[%c83] : memref<98xf32, #tpu.memory_space<smem>>
      %568 = vector.extract_strided_slice %565 {offsets = [0, 0], sizes = [1, 256], strides = [1, 1]} : vector<2x256xf32> to vector<1x256xf32>
      %569 = vector.broadcast %566 : f32 to vector<1x256xf32>
      %570 = arith.mulf %569, %568 : vector<1x256xf32>
      %571 = vector.extract_strided_slice %565 {offsets = [1, 0], sizes = [1, 256], strides = [1, 1]} : vector<2x256xf32> to vector<1x256xf32>
      %572 = vector.broadcast %567 : f32 to vector<1x256xf32>
      %573 = arith.mulf %572, %571 : vector<1x256xf32>
      %574 = arith.addf %570, %573 : vector<1x256xf32>
      %575 = arith.andi %42, %87 : vector<1x256xi1>
      %cst_75 = arith.constant 0.000000e+00 : f32
      %576 = vector.broadcast %cst_75 : f32 to vector<1x256xf32>
      %577 = arith.select %575, %574, %576 : vector<1x256xi1>, vector<1x256xf32>
      %578 = arith.addf %564, %577 : vector<1x256xf32>
      %c227_i32 = arith.constant 227 : i32
      %579 = tpu.dynamic_rotate %15 by %c227_i32 dim 1 : vector<2x256xf32>, i32 -> vector<2x256xf32>
      %c35 = arith.constant 35 : index
      %580 = memref.load %arg2[%c35] : memref<98xf32, #tpu.memory_space<smem>>
      %c84 = arith.constant 84 : index
      %581 = memref.load %arg2[%c84] : memref<98xf32, #tpu.memory_space<smem>>
      %582 = vector.extract_strided_slice %579 {offsets = [0, 0], sizes = [1, 256], strides = [1, 1]} : vector<2x256xf32> to vector<1x256xf32>
      %583 = vector.broadcast %580 : f32 to vector<1x256xf32>
      %584 = arith.mulf %583, %582 : vector<1x256xf32>
      %585 = vector.extract_strided_slice %579 {offsets = [1, 0], sizes = [1, 256], strides = [1, 1]} : vector<2x256xf32> to vector<1x256xf32>
      %586 = vector.broadcast %581 : f32 to vector<1x256xf32>
      %587 = arith.mulf %586, %585 : vector<1x256xf32>
      %588 = arith.addf %584, %587 : vector<1x256xf32>
      %589 = arith.andi %47, %57 : vector<1x256xi1>
      %cst_76 = arith.constant 0.000000e+00 : f32
      %590 = vector.broadcast %cst_76 : f32 to vector<1x256xf32>
      %591 = arith.select %589, %588, %590 : vector<1x256xi1>, vector<1x256xf32>
      %592 = arith.addf %578, %591 : vector<1x256xf32>
      %c226_i32 = arith.constant 226 : i32
      %593 = tpu.dynamic_rotate %15 by %c226_i32 dim 1 : vector<2x256xf32>, i32 -> vector<2x256xf32>
      %c36 = arith.constant 36 : index
      %594 = memref.load %arg2[%c36] : memref<98xf32, #tpu.memory_space<smem>>
      %c85 = arith.constant 85 : index
      %595 = memref.load %arg2[%c85] : memref<98xf32, #tpu.memory_space<smem>>
      %596 = vector.extract_strided_slice %593 {offsets = [0, 0], sizes = [1, 256], strides = [1, 1]} : vector<2x256xf32> to vector<1x256xf32>
      %597 = vector.broadcast %594 : f32 to vector<1x256xf32>
      %598 = arith.mulf %597, %596 : vector<1x256xf32>
      %599 = vector.extract_strided_slice %593 {offsets = [1, 0], sizes = [1, 256], strides = [1, 1]} : vector<2x256xf32> to vector<1x256xf32>
      %600 = vector.broadcast %595 : f32 to vector<1x256xf32>
      %601 = arith.mulf %600, %599 : vector<1x256xf32>
      %602 = arith.addf %598, %601 : vector<1x256xf32>
      %603 = arith.andi %47, %62 : vector<1x256xi1>
      %cst_77 = arith.constant 0.000000e+00 : f32
      %604 = vector.broadcast %cst_77 : f32 to vector<1x256xf32>
      %605 = arith.select %603, %602, %604 : vector<1x256xi1>, vector<1x256xf32>
      %606 = arith.addf %592, %605 : vector<1x256xf32>
      %c225_i32 = arith.constant 225 : i32
      %607 = tpu.dynamic_rotate %15 by %c225_i32 dim 1 : vector<2x256xf32>, i32 -> vector<2x256xf32>
      %c37 = arith.constant 37 : index
      %608 = memref.load %arg2[%c37] : memref<98xf32, #tpu.memory_space<smem>>
      %c86 = arith.constant 86 : index
      %609 = memref.load %arg2[%c86] : memref<98xf32, #tpu.memory_space<smem>>
      %610 = vector.extract_strided_slice %607 {offsets = [0, 0], sizes = [1, 256], strides = [1, 1]} : vector<2x256xf32> to vector<1x256xf32>
      %611 = vector.broadcast %608 : f32 to vector<1x256xf32>
      %612 = arith.mulf %611, %610 : vector<1x256xf32>
      %613 = vector.extract_strided_slice %607 {offsets = [1, 0], sizes = [1, 256], strides = [1, 1]} : vector<2x256xf32> to vector<1x256xf32>
      %614 = vector.broadcast %609 : f32 to vector<1x256xf32>
      %615 = arith.mulf %614, %613 : vector<1x256xf32>
      %616 = arith.addf %612, %615 : vector<1x256xf32>
      %617 = arith.andi %47, %67 : vector<1x256xi1>
      %cst_78 = arith.constant 0.000000e+00 : f32
      %618 = vector.broadcast %cst_78 : f32 to vector<1x256xf32>
      %619 = arith.select %617, %616, %618 : vector<1x256xi1>, vector<1x256xf32>
      %620 = arith.addf %606, %619 : vector<1x256xf32>
      %c224_i32 = arith.constant 224 : i32
      %621 = tpu.dynamic_rotate %15 by %c224_i32 dim 1 : vector<2x256xf32>, i32 -> vector<2x256xf32>
      %c38 = arith.constant 38 : index
      %622 = memref.load %arg2[%c38] : memref<98xf32, #tpu.memory_space<smem>>
      %c87 = arith.constant 87 : index
      %623 = memref.load %arg2[%c87] : memref<98xf32, #tpu.memory_space<smem>>
      %624 = vector.extract_strided_slice %621 {offsets = [0, 0], sizes = [1, 256], strides = [1, 1]} : vector<2x256xf32> to vector<1x256xf32>
      %625 = vector.broadcast %622 : f32 to vector<1x256xf32>
      %626 = arith.mulf %625, %624 : vector<1x256xf32>
      %627 = vector.extract_strided_slice %621 {offsets = [1, 0], sizes = [1, 256], strides = [1, 1]} : vector<2x256xf32> to vector<1x256xf32>
      %628 = vector.broadcast %623 : f32 to vector<1x256xf32>
      %629 = arith.mulf %628, %627 : vector<1x256xf32>
      %630 = arith.addf %626, %629 : vector<1x256xf32>
      %631 = arith.andi %47, %72 : vector<1x256xi1>
      %cst_79 = arith.constant 0.000000e+00 : f32
      %632 = vector.broadcast %cst_79 : f32 to vector<1x256xf32>
      %633 = arith.select %631, %630, %632 : vector<1x256xi1>, vector<1x256xf32>
      %634 = arith.addf %620, %633 : vector<1x256xf32>
      %c223_i32 = arith.constant 223 : i32
      %635 = tpu.dynamic_rotate %15 by %c223_i32 dim 1 : vector<2x256xf32>, i32 -> vector<2x256xf32>
      %c39 = arith.constant 39 : index
      %636 = memref.load %arg2[%c39] : memref<98xf32, #tpu.memory_space<smem>>
      %c88 = arith.constant 88 : index
      %637 = memref.load %arg2[%c88] : memref<98xf32, #tpu.memory_space<smem>>
      %638 = vector.extract_strided_slice %635 {offsets = [0, 0], sizes = [1, 256], strides = [1, 1]} : vector<2x256xf32> to vector<1x256xf32>
      %639 = vector.broadcast %636 : f32 to vector<1x256xf32>
      %640 = arith.mulf %639, %638 : vector<1x256xf32>
      %641 = vector.extract_strided_slice %635 {offsets = [1, 0], sizes = [1, 256], strides = [1, 1]} : vector<2x256xf32> to vector<1x256xf32>
      %642 = vector.broadcast %637 : f32 to vector<1x256xf32>
      %643 = arith.mulf %642, %641 : vector<1x256xf32>
      %644 = arith.addf %640, %643 : vector<1x256xf32>
      %645 = arith.andi %47, %77 : vector<1x256xi1>
      %cst_80 = arith.constant 0.000000e+00 : f32
      %646 = vector.broadcast %cst_80 : f32 to vector<1x256xf32>
      %647 = arith.select %645, %644, %646 : vector<1x256xi1>, vector<1x256xf32>
      %648 = arith.addf %634, %647 : vector<1x256xf32>
      %c222_i32 = arith.constant 222 : i32
      %649 = tpu.dynamic_rotate %15 by %c222_i32 dim 1 : vector<2x256xf32>, i32 -> vector<2x256xf32>
      %c40 = arith.constant 40 : index
      %650 = memref.load %arg2[%c40] : memref<98xf32, #tpu.memory_space<smem>>
      %c89 = arith.constant 89 : index
      %651 = memref.load %arg2[%c89] : memref<98xf32, #tpu.memory_space<smem>>
      %652 = vector.extract_strided_slice %649 {offsets = [0, 0], sizes = [1, 256], strides = [1, 1]} : vector<2x256xf32> to vector<1x256xf32>
      %653 = vector.broadcast %650 : f32 to vector<1x256xf32>
      %654 = arith.mulf %653, %652 : vector<1x256xf32>
      %655 = vector.extract_strided_slice %649 {offsets = [1, 0], sizes = [1, 256], strides = [1, 1]} : vector<2x256xf32> to vector<1x256xf32>
      %656 = vector.broadcast %651 : f32 to vector<1x256xf32>
      %657 = arith.mulf %656, %655 : vector<1x256xf32>
      %658 = arith.addf %654, %657 : vector<1x256xf32>
      %659 = arith.andi %47, %82 : vector<1x256xi1>
      %cst_81 = arith.constant 0.000000e+00 : f32
      %660 = vector.broadcast %cst_81 : f32 to vector<1x256xf32>
      %661 = arith.select %659, %658, %660 : vector<1x256xi1>, vector<1x256xf32>
      %662 = arith.addf %648, %661 : vector<1x256xf32>
      %c221_i32 = arith.constant 221 : i32
      %663 = tpu.dynamic_rotate %15 by %c221_i32 dim 1 : vector<2x256xf32>, i32 -> vector<2x256xf32>
      %c41 = arith.constant 41 : index
      %664 = memref.load %arg2[%c41] : memref<98xf32, #tpu.memory_space<smem>>
      %c90 = arith.constant 90 : index
      %665 = memref.load %arg2[%c90] : memref<98xf32, #tpu.memory_space<smem>>
      %666 = vector.extract_strided_slice %663 {offsets = [0, 0], sizes = [1, 256], strides = [1, 1]} : vector<2x256xf32> to vector<1x256xf32>
      %667 = vector.broadcast %664 : f32 to vector<1x256xf32>
      %668 = arith.mulf %667, %666 : vector<1x256xf32>
      %669 = vector.extract_strided_slice %663 {offsets = [1, 0], sizes = [1, 256], strides = [1, 1]} : vector<2x256xf32> to vector<1x256xf32>
      %670 = vector.broadcast %665 : f32 to vector<1x256xf32>
      %671 = arith.mulf %670, %669 : vector<1x256xf32>
      %672 = arith.addf %668, %671 : vector<1x256xf32>
      %673 = arith.andi %47, %87 : vector<1x256xi1>
      %cst_82 = arith.constant 0.000000e+00 : f32
      %674 = vector.broadcast %cst_82 : f32 to vector<1x256xf32>
      %675 = arith.select %673, %672, %674 : vector<1x256xi1>, vector<1x256xf32>
      %676 = arith.addf %662, %675 : vector<1x256xf32>
      %c211_i32 = arith.constant 211 : i32
      %677 = tpu.dynamic_rotate %15 by %c211_i32 dim 1 : vector<2x256xf32>, i32 -> vector<2x256xf32>
      %c42 = arith.constant 42 : index
      %678 = memref.load %arg2[%c42] : memref<98xf32, #tpu.memory_space<smem>>
      %c91 = arith.constant 91 : index
      %679 = memref.load %arg2[%c91] : memref<98xf32, #tpu.memory_space<smem>>
      %680 = vector.extract_strided_slice %677 {offsets = [0, 0], sizes = [1, 256], strides = [1, 1]} : vector<2x256xf32> to vector<1x256xf32>
      %681 = vector.broadcast %678 : f32 to vector<1x256xf32>
      %682 = arith.mulf %681, %680 : vector<1x256xf32>
      %683 = vector.extract_strided_slice %677 {offsets = [1, 0], sizes = [1, 256], strides = [1, 1]} : vector<2x256xf32> to vector<1x256xf32>
      %684 = vector.broadcast %679 : f32 to vector<1x256xf32>
      %685 = arith.mulf %684, %683 : vector<1x256xf32>
      %686 = arith.addf %682, %685 : vector<1x256xf32>
      %687 = arith.andi %52, %57 : vector<1x256xi1>
      %cst_83 = arith.constant 0.000000e+00 : f32
      %688 = vector.broadcast %cst_83 : f32 to vector<1x256xf32>
      %689 = arith.select %687, %686, %688 : vector<1x256xi1>, vector<1x256xf32>
      %690 = arith.addf %676, %689 : vector<1x256xf32>
      %c210_i32 = arith.constant 210 : i32
      %691 = tpu.dynamic_rotate %15 by %c210_i32 dim 1 : vector<2x256xf32>, i32 -> vector<2x256xf32>
      %c43 = arith.constant 43 : index
      %692 = memref.load %arg2[%c43] : memref<98xf32, #tpu.memory_space<smem>>
      %c92 = arith.constant 92 : index
      %693 = memref.load %arg2[%c92] : memref<98xf32, #tpu.memory_space<smem>>
      %694 = vector.extract_strided_slice %691 {offsets = [0, 0], sizes = [1, 256], strides = [1, 1]} : vector<2x256xf32> to vector<1x256xf32>
      %695 = vector.broadcast %692 : f32 to vector<1x256xf32>
      %696 = arith.mulf %695, %694 : vector<1x256xf32>
      %697 = vector.extract_strided_slice %691 {offsets = [1, 0], sizes = [1, 256], strides = [1, 1]} : vector<2x256xf32> to vector<1x256xf32>
      %698 = vector.broadcast %693 : f32 to vector<1x256xf32>
      %699 = arith.mulf %698, %697 : vector<1x256xf32>
      %700 = arith.addf %696, %699 : vector<1x256xf32>
      %701 = arith.andi %52, %62 : vector<1x256xi1>
      %cst_84 = arith.constant 0.000000e+00 : f32
      %702 = vector.broadcast %cst_84 : f32 to vector<1x256xf32>
      %703 = arith.select %701, %700, %702 : vector<1x256xi1>, vector<1x256xf32>
      %704 = arith.addf %690, %703 : vector<1x256xf32>
      %c209_i32 = arith.constant 209 : i32
      %705 = tpu.dynamic_rotate %15 by %c209_i32 dim 1 : vector<2x256xf32>, i32 -> vector<2x256xf32>
      %c44 = arith.constant 44 : index
      %706 = memref.load %arg2[%c44] : memref<98xf32, #tpu.memory_space<smem>>
      %c93 = arith.constant 93 : index
      %707 = memref.load %arg2[%c93] : memref<98xf32, #tpu.memory_space<smem>>
      %708 = vector.extract_strided_slice %705 {offsets = [0, 0], sizes = [1, 256], strides = [1, 1]} : vector<2x256xf32> to vector<1x256xf32>
      %709 = vector.broadcast %706 : f32 to vector<1x256xf32>
      %710 = arith.mulf %709, %708 : vector<1x256xf32>
      %711 = vector.extract_strided_slice %705 {offsets = [1, 0], sizes = [1, 256], strides = [1, 1]} : vector<2x256xf32> to vector<1x256xf32>
      %712 = vector.broadcast %707 : f32 to vector<1x256xf32>
      %713 = arith.mulf %712, %711 : vector<1x256xf32>
      %714 = arith.addf %710, %713 : vector<1x256xf32>
      %715 = arith.andi %52, %67 : vector<1x256xi1>
      %cst_85 = arith.constant 0.000000e+00 : f32
      %716 = vector.broadcast %cst_85 : f32 to vector<1x256xf32>
      %717 = arith.select %715, %714, %716 : vector<1x256xi1>, vector<1x256xf32>
      %718 = arith.addf %704, %717 : vector<1x256xf32>
      %c208_i32 = arith.constant 208 : i32
      %719 = tpu.dynamic_rotate %15 by %c208_i32 dim 1 : vector<2x256xf32>, i32 -> vector<2x256xf32>
      %c45 = arith.constant 45 : index
      %720 = memref.load %arg2[%c45] : memref<98xf32, #tpu.memory_space<smem>>
      %c94 = arith.constant 94 : index
      %721 = memref.load %arg2[%c94] : memref<98xf32, #tpu.memory_space<smem>>
      %722 = vector.extract_strided_slice %719 {offsets = [0, 0], sizes = [1, 256], strides = [1, 1]} : vector<2x256xf32> to vector<1x256xf32>
      %723 = vector.broadcast %720 : f32 to vector<1x256xf32>
      %724 = arith.mulf %723, %722 : vector<1x256xf32>
      %725 = vector.extract_strided_slice %719 {offsets = [1, 0], sizes = [1, 256], strides = [1, 1]} : vector<2x256xf32> to vector<1x256xf32>
      %726 = vector.broadcast %721 : f32 to vector<1x256xf32>
      %727 = arith.mulf %726, %725 : vector<1x256xf32>
      %728 = arith.addf %724, %727 : vector<1x256xf32>
      %729 = arith.andi %52, %72 : vector<1x256xi1>
      %cst_86 = arith.constant 0.000000e+00 : f32
      %730 = vector.broadcast %cst_86 : f32 to vector<1x256xf32>
      %731 = arith.select %729, %728, %730 : vector<1x256xi1>, vector<1x256xf32>
      %732 = arith.addf %718, %731 : vector<1x256xf32>
      %c207_i32 = arith.constant 207 : i32
      %733 = tpu.dynamic_rotate %15 by %c207_i32 dim 1 : vector<2x256xf32>, i32 -> vector<2x256xf32>
      %c46 = arith.constant 46 : index
      %734 = memref.load %arg2[%c46] : memref<98xf32, #tpu.memory_space<smem>>
      %c95 = arith.constant 95 : index
      %735 = memref.load %arg2[%c95] : memref<98xf32, #tpu.memory_space<smem>>
      %736 = vector.extract_strided_slice %733 {offsets = [0, 0], sizes = [1, 256], strides = [1, 1]} : vector<2x256xf32> to vector<1x256xf32>
      %737 = vector.broadcast %734 : f32 to vector<1x256xf32>
      %738 = arith.mulf %737, %736 : vector<1x256xf32>
      %739 = vector.extract_strided_slice %733 {offsets = [1, 0], sizes = [1, 256], strides = [1, 1]} : vector<2x256xf32> to vector<1x256xf32>
      %740 = vector.broadcast %735 : f32 to vector<1x256xf32>
      %741 = arith.mulf %740, %739 : vector<1x256xf32>
      %742 = arith.addf %738, %741 : vector<1x256xf32>
      %743 = arith.andi %52, %77 : vector<1x256xi1>
      %cst_87 = arith.constant 0.000000e+00 : f32
      %744 = vector.broadcast %cst_87 : f32 to vector<1x256xf32>
      %745 = arith.select %743, %742, %744 : vector<1x256xi1>, vector<1x256xf32>
      %746 = arith.addf %732, %745 : vector<1x256xf32>
      %c206_i32 = arith.constant 206 : i32
      %747 = tpu.dynamic_rotate %15 by %c206_i32 dim 1 : vector<2x256xf32>, i32 -> vector<2x256xf32>
      %c47 = arith.constant 47 : index
      %748 = memref.load %arg2[%c47] : memref<98xf32, #tpu.memory_space<smem>>
      %c96 = arith.constant 96 : index
      %749 = memref.load %arg2[%c96] : memref<98xf32, #tpu.memory_space<smem>>
      %750 = vector.extract_strided_slice %747 {offsets = [0, 0], sizes = [1, 256], strides = [1, 1]} : vector<2x256xf32> to vector<1x256xf32>
      %751 = vector.broadcast %748 : f32 to vector<1x256xf32>
      %752 = arith.mulf %751, %750 : vector<1x256xf32>
      %753 = vector.extract_strided_slice %747 {offsets = [1, 0], sizes = [1, 256], strides = [1, 1]} : vector<2x256xf32> to vector<1x256xf32>
      %754 = vector.broadcast %749 : f32 to vector<1x256xf32>
      %755 = arith.mulf %754, %753 : vector<1x256xf32>
      %756 = arith.addf %752, %755 : vector<1x256xf32>
      %757 = arith.andi %52, %82 : vector<1x256xi1>
      %cst_88 = arith.constant 0.000000e+00 : f32
      %758 = vector.broadcast %cst_88 : f32 to vector<1x256xf32>
      %759 = arith.select %757, %756, %758 : vector<1x256xi1>, vector<1x256xf32>
      %760 = arith.addf %746, %759 : vector<1x256xf32>
      %c205_i32 = arith.constant 205 : i32
      %761 = tpu.dynamic_rotate %15 by %c205_i32 dim 1 : vector<2x256xf32>, i32 -> vector<2x256xf32>
      %c48 = arith.constant 48 : index
      %762 = memref.load %arg2[%c48] : memref<98xf32, #tpu.memory_space<smem>>
      %c97 = arith.constant 97 : index
      %763 = memref.load %arg2[%c97] : memref<98xf32, #tpu.memory_space<smem>>
      %764 = vector.extract_strided_slice %761 {offsets = [0, 0], sizes = [1, 256], strides = [1, 1]} : vector<2x256xf32> to vector<1x256xf32>
      %765 = vector.broadcast %762 : f32 to vector<1x256xf32>
      %766 = arith.mulf %765, %764 : vector<1x256xf32>
      %767 = vector.extract_strided_slice %761 {offsets = [1, 0], sizes = [1, 256], strides = [1, 1]} : vector<2x256xf32> to vector<1x256xf32>
      %768 = vector.broadcast %763 : f32 to vector<1x256xf32>
      %769 = arith.mulf %768, %767 : vector<1x256xf32>
      %770 = arith.addf %766, %769 : vector<1x256xf32>
      %771 = arith.andi %52, %87 : vector<1x256xi1>
      %cst_89 = arith.constant 0.000000e+00 : f32
      %772 = vector.broadcast %cst_89 : f32 to vector<1x256xf32>
      %773 = arith.select %771, %770, %772 : vector<1x256xi1>, vector<1x256xf32>
      %774 = arith.addf %760, %773 : vector<1x256xf32>
      %775 = arith.negf %774 : vector<1x256xf32>
      %776 = math.exp %775 : vector<1x256xf32>
      %cst_90 = arith.constant 1.000000e+00 : f32
      %777 = vector.broadcast %cst_90 : f32 to vector<1x256xf32>
      %778 = arith.addf %777, %776 : vector<1x256xf32>
      %779 = arith.divf %777, %778 : vector<1x256xf32>
      %c0_91 = arith.constant 0 : index
      %c0_92 = arith.constant 0 : index
      %c0_93 = arith.constant 0 : index
      %780 = vector.load %arg6[%c0_91, %c0_92, %c0_93] : memref<1x1x256xf32, #tpu.memory_space<vmem>>, vector<1x1x256xf32>
      %781 = vector.shape_cast %780 : vector<1x1x256xf32> to vector<1x256xf32>
      %782 = vector.shape_cast %779 : vector<1x256xf32> to vector<1x1x256xf32>
      tpu.vector_store %arg6[%c0_91, %c0_92, %c0_93], %782 {strides = array<i32>} : memref<1x1x256xf32, #tpu.memory_space<vmem>>, vector<1x1x256xf32>,
    } else {
    }
    return
  }
  func.func @transform_0(%arg0: i32, %arg1: i32) -> i32 {
    %c0_i32 = arith.constant 0 : i32
    %c0_i32_0 = arith.constant 0 : i32
    return %c0_i32 : i32
  }
  func.func @transform_1(%arg0: i32, %arg1: i32) -> i32 {
    %c0_i32 = arith.constant 0 : i32
    %c0_i32_0 = arith.constant 0 : i32
    return %c0_i32 : i32
  }
  func.func @transform_2(%arg0: i32, %arg1: i32) -> (i32, i32) {
    %c0_i32 = arith.constant 0 : i32
    %c0_i32_0 = arith.constant 0 : i32
    %c0_i32_1 = arith.constant 0 : i32
    return %c0_i32, %c0_i32_0 : i32, i32
  }
  func.func @transform_3(%arg0: i32, %arg1: i32) -> (i32, i32, i32) {
    %c0_i32 = arith.constant 0 : i32
    %c0_i32_0 = arith.constant 0 : i32
    return %arg0, %arg1, %c0_i32 : i32, i32, i32
  }
  func.func @transform_4(%arg0: i32, %arg1: i32) -> (i32, i32, i32) {
    %c0_i32 = arith.constant 0 : i32
    %c0_i32_0 = arith.constant 0 : i32
    %c0_i32_1 = arith.constant 0 : i32
    return %arg0, %c0_i32, %c0_i32_0 : i32, i32, i32
  }
}

</mosaic_0001>

<bundles_post_ra>
// kernel: tpu_custom_call.1
= control target key start
LH: loop header
LB: loop body
LE: loop exit
PB: predicated region body
PF: predicated region fallthrough
CT: control target
= control target key end

     0   :  { %s4985_s0 = inlined_call_operand.vmem [shape: f32[98], index: 0, kind: input, shape index: {}]   ;;  %s4986_s1 = inlined_call_operand.<no memory space> [shape: f32[1], index: 1, kind: input, shape index: {}]   ;;  %s4987_s2 = inlined_call_operand.vmem [shape: s32[2,256], index: 2, kind: input, shape index: {}]   ;;  %s4988_s3 = inlined_call_operand.hbm [shape: f32[2,4,256], index: 3, kind: input, shape index: {}]   ;;  %s4989_s4 = inlined_call_operand.hbm [shape: f32[2,1,256], index: 4, kind: output, shape index: {}]  }
   0x1   :  { %5088 = sst [smem:[#allocation59_spill]] %s4985_s0 }
   0x2   :  { %5089 = sst [smem:[#allocation60_spill]] %s4987_s2 }
   0x3   :  { %5090 = sst [smem:[#allocation61_spill]] %s4988_s3 }
   0x4   :  { %5091 = sst [smem:[#allocation62_spill]] %s4989_s4 }
   0x5   :  { %9 = sst [smem:[#allocation3]] %s4986_s1 }
   0x6   :  { %10 = vsyncpa [#allocation7], 0 }
   0x7   :  { %11 = vsyncpa [#allocation5], 0 }
   0x8   :  { %13 = vsyncpa [#allocation5 + $0x1], 0 }
   0x9   :  { %14 = vsyncpa [#allocation6], 0 }
   0xa   :  { %16 = vsyncpa [#allocation6 + $0x1], 0  ;;  %s3156_s17 = smov 0   ;;  %s3158_s18 = smov 0  }
   0xb   :  { %s3160_s19 = smov 0   ;;  %s3162_s20 = smov 0  }
   0xc   :  { %s3164_s21 = smov 0   ;;  %s3166_s22 = smov 0  }
   0xd LB: > { %5092 = sst [smem:[#allocation13_spill]] %s3053_s17  ;;  %s2694_s1 = sadd.s32 4294967295, %s3073_s22   ;;  %s3073_s22 = sphi %s3166_s22, %s22_s22   ;;  %s3069_s21 = sphi %s3164_s21, %s5337_s21   ;;  %s3065_s20 = sphi %s3162_s20, %s5336_s20   ;;  %s3061_s19 = sphi %s3160_s19, %s5335_s19   ;;  %s3057_s18 = sphi %s3158_s18, %s5334_s18   ;;  %s3053_s17 = sphi %s3156_s17, %s5333_s17  }
   0xe   : > { %5093 = sst [smem:[#allocation14_spill]] %s3057_s18  ;;  %s2695_s23 = sadd.s32 4294967294, %s3073_s22  }
   0xf   : > { %5094 = sst [smem:[#allocation15_spill]] %s3061_s19  ;;  %p119_p0 = scmp.ne.s32.totalorder %s3057_s18, %s3053_s17 }
  0x10   : > { %5095 = sst [smem:[#allocation16_spill]] %s3065_s20  ;;  %p3190_p1 = scmp.eq.s32.totalorder %s2694_s1, 0 }
  0x11   : > { %5096 = sst [smem:[#allocation17_spill]] %s3069_s21  ;;  %p3194_p2 = scmp.eq.s32.totalorder %s2694_s1, 1 }
  0x12   : > { %5097 = sst [smem:[#allocation18_spill]] %s3073_s22  ;;  %p149_p3 = scmp.eq.s32.totalorder %s2695_s23, 1 }
  0x13   : > { %s5098_s24 = scalar_select %p3190_p1, 1, 0 }
  0x14   : > { %p3200_p4 = por %p3190_p1, %p119_p0  ;;  %p2696_p5 = scmp.ge.s32.totalorder %s3073_s22, 1 }
  0x15   : > { %p3205_p6 = por %p149_p3, %p119_p0  ;;  %p156_p7 = scmp.lt.s32.totalorder %s3073_s22, 3 }
  0x16   : > { %s5100_s26 = scalar_select %p3200_p4, 1, 0 }
  0x17   : > { %s5101_s27 = scalar_select %p3205_p6, 1, 0 }
  0x18   : > { %s5103_s0 = sld [smem:[#allocation59_spill]]  ;;  %p3213_p8 = pnand %p2696_p5, %p156_p7 }
  0x19   : > { %5102 = sst [smem:[#allocation19_spill]] %s5101_s27  ;;  %s34_s7 = sadd.s32 1, %s3069_s21 }
  0x1a   : > { %p2821_p10 = pneg %p3213_p8  ;;  %s106_s8 = sadd.s32 1, %s3061_s19 }
  0x1b   : > { %p36_p12 = scmp.ge.s32.totalorder %s34_s7, 2 }
  0x1c   : > { %p3222_p11 = pnand %p2821_p10, %p3190_p1 }
  0x1e   : > { %s169_s30 = sshll.u32 %s5103_s0, 4  ;;  %p2944_p0 = pneg %p3222_p11  ;;  %s170_s30 = int_to_ptr.vmem [resolvable:$true] %s169_s30 }
  0x1f   : > { %s2942_s9 = scalar_lea.vmem %s170_s30, 16  ;;  %p2950_p7 = scmp.lt.s32.totalorder %s170_s30, %s170_s30 }
  0x20   : > { %p2943_p13 = scmp.ne.s32.totalorder %s170_s30, %s2942_s9  ;;  %p2951_p6 = scmp.lt.s32.totalorder %s2942_s9, %s2942_s9 }
  0x22   : > { %p2945_p3 = pnand %p2944_p0, %p2943_p13  ;;  %p2952_p9 = por %p2951_p6, %p2950_p7 }
  0x24   : > { %p2946_p5 = pneg %p2945_p3 }
  0x26   : > { %p2953_p4 = pnand %p2952_p9, %p2946_p5 }
  0x28   : > { %2956 = shalt.err (!%p2953_p4)
}
  0x29   : > { %s3075_s10 = smov [#allocation4]   ;;  %s5339_s7 = smov (%p36_p12, %s34_s7), 0 }
  0x2a   : > { %2824 = dma.vmem_to_smem (!%p3222_p11), %s170_s30, 16, %s3075_s10, [#allocation7]  }
  0x2b   : > { %5106 = sst [smem:[#allocation20_spill]] %s5339_s7  ;;  %p113_p10 = scmp.ne.s32.totalorder %s3061_s19, %s3057_s18 }
  0x2c   : > { %p114_p6 = scmp.eq.s32.totalorder %s3073_s22, 0  ;;  %s101_s11 = ssub.s32 %s3069_s21, %s5339_s7 }
  0x2d   : > { %p2834_p4 = scmp.lt.s32.totalorder %s3073_s22, 2  ;;  %p104_p9 = scmp.eq.s32.totalorder %s101_s11, 0 }
  0x2e   : > { %p115_p13 = por %p114_p6, %p113_p10  ;;  %p3242_p0 = por %p3194_p2, %p113_p10 }
  0x2f   : > { %s186_s13 = sand.u32 1, %s3061_s19   ;;  %s2811_s16 = sshll.u32 %s3069_s21, 7 }
  0x30   : > { %s5107_s12 = scalar_select %p3242_p0, 1, 0 }
  0x31   : > { %s3248_s14 = scalar_select %p104_p9, %s3061_s19, %s106_s8  }
  0x32   : > { %5108 = sst [smem:[#allocation21_spill]] %s5107_s12  ;;  %s2699_s15 = sshll.u32 %s186_s13, 3 }
  0x33   : > { %5109 = sst [smem:[#allocation22_spill]] %s3248_s14  ;;  %s5110_s3 = sld [smem:[#allocation61_spill]] }
  0x34   : > { %s190_s29 = scalar_lea.vmem [#allocation8], %s2699_s15  ;;  %p3258_p2 = pnand %p2834_p4, %p115_p13 }
  0x35   : > { %s200_s25 = sshll.u32 %s190_s29, 4  ;;  %s187_s6 = scalar_lea.sflag [#allocation5], %s186_s13  ;;  %s3256_s25 = int_to_ptr.vmem [resolvable:$true] %s200_s25 }
  0x36   : > { %p2959_p12 = pneg %p3258_p2 }
  0x39   : > { %s3254_s28 = scalar_lea.hbm %s5110_s3, %s2811_s16  ;;  %s2962_s11 = scalar_lea.hbm %s5110_s3, 256 }
  0x3a   : > { %s2957_s8 = scalar_lea.hbm %s3254_s28, 128  ;;  %p2963_p7 = scmp.lt.u32.totalorder %s3254_s28, %s5110_s3 }
  0x3b   : > { %p2958_p11 = scmp.ne.s32.totalorder %s3254_s28, %s2957_s8  ;;  %p2964_p10 = scmp.lt.u32.totalorder %s2962_s11, %s2957_s8 }
  0x3c   : > { %p2966_p4 = scmp.lt.u32.totalorder %s2957_s8, %s3254_s28 }
  0x3d   : > { %p2960_p3 = pnand %p2959_p12, %p2958_p11  ;;  %p2965_p6 = por %p2964_p10, %p2963_p7 }
  0x3f   : > { %p2961_p5 = pneg %p2960_p3  ;;  %p2967_p9 = por %p2966_p4, %p2965_p6 }
  0x41   : > { %p2968_p13 = pnand %p2967_p9, %p2961_p5 }
  0x43   : > { %2971 = shalt.err (!%p2968_p13)
}
  0x44   : > { %s2972_s13 = scalar_lea.vmem %s3256_s25, 128  ;;  %s3076_s1 = smov [#allocation8]  }
  0x45   : > { %p2973_p11 = scmp.ne.s32.totalorder %s3256_s25, %s2972_s13  ;;  %s2977_s23 = sshll.u32 %s3076_s1, 4  ;;  %s2978_s23 = int_to_ptr.vmem [resolvable:$false] %s2977_s23 }
  0x46   : > { %s2979_s29 = scalar_lea.vmem %s2978_s23, 256  ;;  %p2980_p1 = scmp.lt.s32.totalorder %s3256_s25, %s2978_s23 }
  0x47   : > { %p2975_p3 = pnand %p2973_p11, %p2959_p12  ;;  %p2981_p7 = scmp.lt.s32.totalorder %s2979_s29, %s2972_s13 }
  0x49   : > { %p2976_p0 = pneg %p2975_p3  ;;  %p2982_p10 = por %p2981_p7, %p2980_p1 }
  0x4b   : > { %p2983_p6 = pnand %p2982_p10, %p2976_p0 }
  0x4d   : > { %2986 = shalt.err (!%p2983_p6)
}
  0x4e   : > { %2828 = dma.hbm_to_vmem [thread:$0]  (!%p3258_p2), %s3254_s28, 128, %s3256_s25, %s187_s6  }
  0x4f   : > { %209 = sbr.rel (%p3213_p8) target bundleno = 516 (0x204), region = 36 }
  0x56   : > { %p5112_p12 = scmp.ne.s32.totalorder %s5098_s24, 0 }
  0x58   : > { %3040 = dma.done.wait (%p5112_p12), [#allocation7], 16  }
  0x59   : > { %3042 = vsyncadd (%p5112_p12), [#allocation7], 4294967280  ;;  %s3294_s8 = sand.u32 1, %s3057_s18   ;;  %p5114_p1 = scmp.ne.s32.totalorder %s5100_s26, 0 }
  0x5a   : > { %5113 = sst [smem:[#allocation23_spill]] %s3294_s8  ;;  %s2704_s9 = sshll.u32 %s3294_s8, 3 }
  0x5b   : > { %s216_s30 = scalar_lea.sflag [#allocation5], %s3294_s8  ;;  %s219_s10 = scalar_lea.vmem [#allocation8], %s2704_s9 }
  0x5c   : > { %3044 = dma.done.wait (%p5114_p1), %s216_s30, 128  }
  0x5d   : > { %3046 = vsyncadd (%p5114_p1), %s216_s30, 4294967168 }
  0x5e   : > { %224 = sfence }
  0x5f   : > { %v245_v0 = vld [vmem:[%s219_s10] sm:$0xff]  ;;  %vm249_vm0 = vcmask 1043456   ;;  %v3077_v12 = vmov 1966171168   ;;  %v288_v14 = vlaneseq  ;;  %v3078_v40 = vmov 1983009808  }
  0x60   : > { %v247_v1 = vcombine.high %v245_v0, %v245_v0  ;;  %v250_v2 = vsel %vm249_vm0, %v245_v0, 0.0  ;;  %v264_v3 = vsel %vm249_vm0, %v245_v0, -inf  ;;  %v286_v13 = vunpack.c.l.s4 %v3077_v12  ;;  %s3079_s24 = smov 50   ;;  %s3080_s26 = smov 51  }
  0x61   : > { %v251_v4 = vrot.slane %v250_v2, 4  ;;  %v265_v5 = vrot.slane %v264_v3, 4  ;;  %v289_v24 = vshrl.u32 %v288_v14, 7  ;;  %v429_v41 = vunpack.c.l.s4 %v3078_v40  ;;  %s3081_s5 = smov 49   ;;  %s3082_s28 = smov 48  }
  0x62   : > { %v257_v6 = vsel %vm249_vm0, %v247_v1, 0.0  ;;  %v271_v7 = vsel %vm249_vm0, %v247_v1, -inf  ;;  %v287_v23 = vunpack.c.0.s8 %v286_v13  ;;  %vm3308_vm1 = vcmp.lt.s32.totalorder %v288_v14, 256  ;;  %s3083_s25 = smov 47   ;;  %s3084_s6 = smov 46  }
  0x63   : > { %v252_v8 = vadd.f32 %v251_v4, %v250_v2  ;;  %v258_v9 = vrot.slane %v257_v6, 4  ;;  %v266_v10 = vmax.f32 %v264_v3, %v265_v5  ;;  %v272_v11 = vrot.slane %v271_v7, 4  ;;  %s3085_s11 = smov 45   ;;  %s3086_s15 = smov 35  }
  0x64   : > { %v3303_v35 = vsub.s32 %v287_v23, %v289_v24  ;;  %v430_v45 = vunpack.c.0.s8 %v429_v41  ;;  %s3087_s16 = smov 34   ;;  %s3088_s13 = smov 33   ;;  %v3466_v58 = vand.u32 127, %v288_v14 }
  0x65   : > { %v253_v15 = vrot.slane %v252_v8, 2  ;;  %v259_v16 = vadd.f32 %v258_v9, %v257_v6  ;;  %v267_v17 = vrot.slane %v266_v10, 2  ;;  %v273_v18 = vmax.f32 %v271_v7, %v272_v11  ;;  %s3089_s1 = smov 32   ;;  %s3090_s23 = smov 31  }
  0x66   : > { %v433_v46 = vsub.s32 %v430_v45, %v289_v24  ;;  %s3091_s29 = smov 30   ;;  %s3092_s9 = smov 29   ;;  %vm488_vm2 = vcmp.lt.s32.totalorder %v3466_v58, 50  ;;  %vm532_vm3 = vcmp.lt.s32.totalorder %v3466_v58, 49  ;;  %vm576_vm6 = vcmp.lt.s32.totalorder %v3466_v58, 48 }
  0x67   : > { %v254_v19 = vadd.f32 %v253_v15, %v252_v8  ;;  %v260_v20 = vrot.slane %v259_v16, 2  ;;  %v268_v21 = vmax.f32 %v266_v10, %v267_v17  ;;  %v274_v22 = vrot.slane %v273_v18, 2  ;;  %s3093_s30 = smov 19   ;;  %s3094_s10 = smov 18  }
  0x68   : > { %s3407_s0 = sld [smem:[#allocation4 + $0x39]]  ;;  %s3409_s3 = sld [smem:[#allocation4]]  ;;  %vm620_vm7 = vcmp.lt.s32.totalorder %v3466_v58, 47  ;;  %vm664_vm13 = vcmp.lt.s32.totalorder %v3466_v58, 46 }
  0x69   : > { %v255_v25 = vrot.slane %v254_v19, 1  ;;  %v261_v26 = vadd.f32 %v260_v20, %v259_v16  ;;  %v269_v27 = vrot.slane %v268_v21, 1  ;;  %v275_v28 = vmax.f32 %v273_v18, %v274_v22  ;;  %s3411_s7 = sld [smem:[#allocation4 + $0x31]]  ;;  %s3415_s14 = sld [smem:[#allocation4 + $0x3a]] }
  0x6a   : > { %s3413_s21 = sld [smem:[#allocation4 + $0x9]]  ;;  %s3417_s19 = sld [smem:[#allocation4 + $0xa]] }
  0x6b   : > { %v256_v29 = vadd.f32 %v255_v25, %v254_v19  ;;  %v262_v30 = vrot.slane %v261_v26, 1  ;;  %v270_v31 = vmax.f32 %v268_v21, %v269_v27  ;;  %v276_v32 = vrot.slane %v275_v28, 1  ;;  %s3104_s18 = smov 126   ;;  %s3423_s22 = sld [smem:[#allocation4 + $0x3b]] }
  0x6c   : > { %s3425_s27 = sld [smem:[#allocation4 + $0xb]]  ;;  %s3427_s17 = sld [smem:[#allocation4 + $0x3c]] }
  0x6d   : > { %v263_v33 = vadd.f32 %v262_v30, %v261_v26  ;;  %v277_v34 = vmax.f32 %v275_v28, %v276_v32  ;;  %s3429_s4 = sld [smem:[#allocation4 + $0xc]]  ;;  %s3431_s12 = sld [smem:[#allocation4 + $0x49]] }
  0x6e   : > { %5130 = sst [smem:[#allocation37_spill]] %s3407_s0  ;;  %s3433_s20 = sld [smem:[#allocation4 + $0x3d]]  ;;  %v804_v2 = vstv %s3407_s0  ;;  %v449_v3 = vstv %s3409_s3 }
  0x6f   : > { %v284_v36 = vcombine.low %v256_v29, %v263_v33  ;;  %v307_v37 = vcombine.low %v270_v31, %v277_v34  ;;  %5131 = sst [smem:[#allocation38_spill]] %s3409_s3  ;;  %s3105_s8 = smov 125   ;;  %v452_v5 = vstv %s3411_s7  ;;  %v848_v7 = vstv %s3415_s14 }
  0x70   : > { %5132 = sst [smem:[#allocation39_spill]] %s3411_s7  ;;  %s3439_s2 = sld [smem:[#allocation4 + $0x3e]]  ;;  %v845_v6 = vstv %s3413_s21  ;;  %v889_v8 = vstv %s3417_s19 }
  0x71   : > { %v291_v38 = vrot.slane %v284_v36, %v3303_v35  ;;  %v314_v39 = vrot.slane %v307_v37, %v3303_v35  ;;  %5133 = sst [smem:[#allocation40_spill]] %s3413_s21  ;;  %v892_v10 = vstv %s3423_s22  ;;  %s5153_s7 = sld [smem:[#allocation60_spill]] }
  0x72   : > { %5134 = sst [smem:[#allocation41_spill]] %s3415_s14  ;;  %s3529_s21 = sld [smem:[#allocation4 + $0x47]] }
  0x73   : > { %v298_v43 = vrot.slane %v291_v38, %v3303_v35  ;;  %v321_v44 = vrot.slane %v314_v39, %v3303_v35  ;;  %5135 = sst [smem:[#allocation42_spill]] %s3417_s19  ;;  %v1500_v4 = vstv %s3431_s12  ;;  %s3506_s19 = sld [smem:[#allocation4 + $0x46]] }
  0x74   : > { %5136 = sst [smem:[#allocation43_spill]] %s3425_s27  ;;  %s3445_s27 = sld [smem:[#allocation4 + $0xf]] }
  0x75   : > { %304 = vst.msk [vmem:[#allocation2] ss:$2 sm:$0x3] %vm3308_vm1, %v298_v43  ;;  %324 = vst.msk [vmem:[#allocation2 + $0x1] ss:$2 sm:$0x3] %vm3308_vm1, %v321_v44 }
  0x76   : > { %5137 = sst [smem:[#allocation44_spill]] %s3427_s17  ;;  %s3441_s17 = sld [smem:[#allocation4 + $0xe]]  ;;  %v1024_v20 = vstv %s3439_s2 }
  0x77   : > { %5138 = sst [smem:[#allocation45_spill]] %s3429_s4  ;;  %s3443_s4 = sld [smem:[#allocation4 + $0x3f]]  ;;  %v3511_v11 = vld [vmem:[%s5153_s7 + $0x1] ss:$2 sm:$0x3] }
  0x78   : > { %5139 = sst [smem:[#allocation46_spill]] %s3433_s20  ;;  %s3453_s20 = sld [smem:[#allocation4 + $0x18]]  ;;  %vm413_vm4 = vcmp.ge.s32.totalorder %v3511_v11, 0  ;;  %vm414_vm5 = vcmp.lt.s32.totalorder %v3511_v11, 16  ;;  %vm407_vm15 = vcmp.ge.s32.totalorder %v3511_v11, 2  ;;  %vm408_vm0 = vcmp.lt.s32.totalorder %v3511_v11, 18 }
  0x79   : > { %s5150_s3 = sld [smem:[#allocation46_spill]]  ;;  %s3504_s12 = sld [smem:[#allocation4 + $0x15]]  ;;  %v3558_v39 = vld [vmem:[%s5153_s7] ss:$2 sm:$0x3]  ;;  %vm3609_vm10 = vmand %vm413_vm4, %vm414_vm5  ;;  %vm411_vm4 = vcmp.lt.s32.totalorder %v3511_v11, 17 }
  0x7a   : > { %5141 = sst [smem:[#allocation48_spill]] %s3445_s27  ;;  %v1109_v24 = vstv %s3445_s27  ;;  %s3531_s14 = sld [smem:[#allocation4 + $0x17]]  ;;  %vm392_vm8 = vcmp.ge.s32.totalorder %v3558_v39, 0  ;;  %vm393_vm9 = vcmp.lt.s32.totalorder %v3558_v39, 16  ;;  %vm383_vm11 = vcmp.ge.s32.totalorder %v3558_v39, 3 }
  0x7b   : > { %5155 = sst [smem:[#allocation46_spill]] %s3529_s21  ;;  %s3578_s7 = sld [smem:[#allocation4 + $0x4c]]  ;;  %vm384_vm12 = vcmp.lt.s32.totalorder %v3558_v39, 19  ;;  %vm3631_vm14 = vmand %vm392_vm8, %vm393_vm9  ;;  %vm708_vm5 = vcmp.lt.s32.totalorder %v3466_v58, 45  ;;  %vm417_vm8 = vcmp.lt.s32.totalorder %v3511_v11, 15 }
  0x7c   : > { %v3318_v47 = vld [vmem:[#allocation2] sm:$0xf]  ;;  %v1065_v22 = vstv %s3441_s17  ;;  %s3542_s27 = sld [smem:[#allocation4 + $0x19]]  ;;  %s3617_s21 = sld [smem:[#allocation4 + $0x4e]]  ;;  %vm3723_vm9 = vmand %vm383_vm11, %vm384_vm12 }
  0x7d   : > { %v3321_v48 = vrot.slane %v3318_v47, %v433_v46  ;;  %v1501_v15 = vmul.f32 %v1500_v4, %v3318_v47  ;;  %v1068_v23 = vstv %s3443_s4  ;;  %vm3739_vm11 = vmand %vm407_vm15, %vm408_vm0  ;;  %vm387_vm15 = vcmp.lt.s32.totalorder %v3558_v39, 18  ;;  %s3120_s22 = smov 83   ;;  %s3124_s17 = smov 79  }
  0x7e   : > { %v1498_v21 = vstv %s3453_s20  ;;  %s3540_s20 = sld [smem:[#allocation4 + $0x48]]  ;;  %vm840_vm0 = vcmp.lt.s32.totalorder %v3466_v58, 33  ;;  %vm595_vm12 = vmand %vm3723_vm9, %vm3609_vm10 }
  0x7f   : > { %484 = vrot.lane.b32.xlu1 %v3321_v48, %s3079_s24  ;;  %438 = vrot.lane.b32.xlu0 %v3321_v48, %s3080_s26  ;;  %v3327_v49 = vcombine.high %v3321_v48, %v3321_v48  ;;  %v980_v18 = vstv %s5150_s3  ;;  %v1499_v30 = vmul.f32 %v1498_v21, %v3318_v47  ;;  %v2756_v31 = vrot.slane %v1501_v15, 9  ;;  %s3122_s3 = smov 81  }
  0x81   : > { %5163 = sst [smem:[#allocation58_spill]] %s3578_s7  ;;  %v3584_v15 = vadd.f32 %v2756_v31, %v1499_v30  ;;  %s3112_s7 = smov 109  }
  0x82   : > { %5158 = sst [smem:[#allocation55_spill]] %s3542_s27  ;;  %s3638_s27 = sld [smem:[#allocation4 + $0x1e]] }
  0x83   : > { %528 = vrot.lane.b32.xlu0 %v3321_v48, %s3081_s5  ;;  %486 = vrot.lane.b32.xlu1 %v3327_v49, %s3079_s24  ;;  %s3095_s24 = smov 17   ;;  %s5283_s4 = sld [smem:[#allocation58_spill]] }
  0x84   : > { %5157 = sst [smem:[#allocation54_spill]] %s3540_s20  ;;  %s3670_s20 = sld [smem:[#allocation4 + $0x50]] }
  0x87   : > { %572 = vrot.lane.b32.xlu0 %v3321_v48, %s3082_s28  ;;  %530 = vrot.lane.b32.xlu1 %v3327_v49, %s3081_s5  ;;  %s3097_s5 = smov 15  }
  0x8b   : > { %616 = vrot.lane.b32.xlu0 %v3321_v48, %s3083_s25  ;;  %574 = vrot.lane.b32.xlu1 %v3327_v49, %s3082_s28  ;;  %s3098_s28 = smov 14  }
  0x8f   : > { %660 = vrot.lane.b32.xlu0 %v3321_v48, %s3084_s6  ;;  %618 = vrot.lane.b32.xlu1 %v3327_v49, %s3083_s25  ;;  %s3099_s25 = smov 13  }
  0x93   : > { %704 = vrot.lane.b32.xlu0 %v3321_v48, %s3085_s11  ;;  %662 = vrot.lane.b32.xlu1 %v3327_v49, %s3084_s6  ;;  %s3100_s6 = smov 3  }
  0x97   : > { %748 = vrot.lane.b32.xlu0 %v3321_v48, %s3086_s15  ;;  %706 = vrot.lane.b32.xlu1 %v3327_v49, %s3085_s11  ;;  %s3101_s11 = smov 2  }
  0x9b   : > { %792 = vrot.lane.b32.xlu0 %v3321_v48, %s3087_s16  ;;  %750 = vrot.lane.b32.xlu1 %v3327_v49, %s3086_s15  ;;  %s3373_s15 = sld [smem:[#allocation4 + $0x1]] }
  0x9f   : > { %794 = vrot.lane.b32.xlu1 %v3327_v49, %s3087_s16  ;;  %440 = vrot.lane.b32.xlu0 %v3327_v49, %s3080_s26  ;;  %s3096_s26 = smov 16   ;;  %s3375_s16 = sld [smem:[#allocation4 + $0x32]] }
  0xa1   : > { %5117 = sst [smem:[#allocation24_spill]] %s3373_s15  ;;  %v493_v50 = vstv %s3373_s15  ;;  %s3461_s15 = sld [smem:[#allocation4 + $0x41]] }
  0xa3   : > { %838 = vrot.lane.b32.xlu1 %v3327_v49, %s3088_s13  ;;  %836 = vrot.lane.b32.xlu0 %v3321_v48, %s3088_s13  ;;  %s3377_s13 = sld [smem:[#allocation4 + $0x2]] }
  0xa5   : > { %v496_v51 = vstv %s3375_s16  ;;  %s3590_s16 = sld [smem:[#allocation4 + $0x1c]] }
  0xa7   : > { %882 = vrot.lane.b32.xlu1 %v3327_v49, %s3089_s1  ;;  %880 = vrot.lane.b32.xlu0 %v3321_v48, %s3089_s1  ;;  %s3379_s1 = sld [smem:[#allocation4 + $0x33]]  ;;  %5143 = sst [smem:[#allocation50_spill]] %s3461_s15  ;;  %v1156_v27 = vstv %s3461_s15 }
  0xa8   : > { %s3109_s15 = smov 112  }
  0xa9   : > { %5118 = sst [smem:[#allocation25_spill]] %s3377_s13  ;;  %v537_v52 = vstv %s3377_s13  ;;  %s3106_s13 = smov 115  }
  0xab   : > { %926 = vrot.lane.b32.xlu1 %v3327_v49, %s3090_s23  ;;  %924 = vrot.lane.b32.xlu0 %v3321_v48, %s3090_s23  ;;  %s3381_s23 = sld [smem:[#allocation4 + $0x3]] }
  0xad   : > { %v540_v53 = vstv %s3379_s1  ;;  %s3113_s1 = smov 99  }
  0xaf   : > { %970 = vrot.lane.b32.xlu1 %v3327_v49, %s3091_s29  ;;  %968 = vrot.lane.b32.xlu0 %v3321_v48, %s3091_s29  ;;  %s3102_s29 = smov 1  }
  0xb1   : > { %5119 = sst [smem:[#allocation26_spill]] %s3381_s23  ;;  %v581_v54 = vstv %s3381_s23  ;;  %s3478_s23 = sld [smem:[#allocation4 + $0x12]] }
  0xb3   : > { %1014 = vrot.lane.b32.xlu1 %v3327_v49, %s3092_s9  ;;  %1012 = vrot.lane.b32.xlu0 %v3321_v48, %s3092_s9  ;;  %s3385_s9 = sld [smem:[#allocation4 + $0x34]] }
  0xb7   : > { %1058 = vrot.lane.b32.xlu1 %v3327_v49, %s3093_s30  ;;  %1056 = vrot.lane.b32.xlu0 %v3321_v48, %s3093_s30  ;;  %s3387_s30 = sld [smem:[#allocation4 + $0x4]]  ;;  %5145 = sst [smem:[#allocation52_spill]] %s3478_s23 }
  0xb8   : > { %s3598_s23 = sld [smem:[#allocation4 + $0x4d]] }
  0xb9   : > { %5120 = sst [smem:[#allocation27_spill]] %s3385_s9  ;;  %v584_v55 = vstv %s3385_s9 }
  0xba   : > { %s5147_s9 = sld [smem:[#allocation43_spill]] }
  0xbb   : > { %1102 = vrot.lane.b32.xlu1 %v3327_v49, %s3094_s10  ;;  %1100 = vrot.lane.b32.xlu0 %v3321_v48, %s3094_s10  ;;  %s3389_s10 = sld [smem:[#allocation4 + $0x35]]  ;;  %5152 = sst [smem:[#allocation43_spill]] %s3504_s12 }
  0xbc   : > { %s3672_s12 = sld [smem:[#allocation4 + $0x20]] }
  0xbd   : > { %5121 = sst [smem:[#allocation28_spill]] %s3387_s30  ;;  %v625_v56 = vstv %s3387_s30  ;;  %s3470_s30 = sld [smem:[#allocation4 + $0x11]] }
  0xbf   : > { %1146 = vrot.lane.b32.xlu1 %v3327_v49, %s3095_s24  ;;  %1144 = vrot.lane.b32.xlu0 %v3321_v48, %s3095_s24  ;;  %s3391_s24 = sld [smem:[#allocation4 + $0x5]] }
  0xc0   : > { %v933_v12 = vstv %s5147_s9  ;;  %s3121_s9 = smov 82  }
  0xc1   : > { %5122 = sst [smem:[#allocation29_spill]] %s3389_s10  ;;  %v628_v57 = vstv %s3389_s10  ;;  %s3472_s10 = sld [smem:[#allocation4 + $0x42]] }
  0xc2   : > { %5171 = sst [smem:[#allocation25_spill]] %s3672_s12  ;;  %s4187_s12 = sld [smem:[#allocation4 + $0x52]] }
  0xc3   : > { %1190 = vrot.lane.b32.xlu1 %v3327_v49, %s3096_s26  ;;  %1188 = vrot.lane.b32.xlu0 %v3321_v48, %s3096_s26  ;;  %s3393_s26 = sld [smem:[#allocation4 + $0x36]]  ;;  %v1197_v28 = vstv %s3470_s30 }
  0xc4   : > { %5144 = sst [smem:[#allocation51_spill]] %s3470_s30  ;;  %s3576_s30 = sld [smem:[#allocation4 + $0x1b]] }
  0xc5   : > { %5123 = sst [smem:[#allocation30_spill]] %s3391_s24  ;;  %v669_v59 = vstv %s3391_s24  ;;  %s3485_s24 = sld [smem:[#allocation4 + $0x13]] }
  0xc7   : > { %1234 = vrot.lane.b32.xlu1 %v3327_v49, %s3097_s5  ;;  %1232 = vrot.lane.b32.xlu0 %v3321_v48, %s3097_s5  ;;  %s3395_s5 = sld [smem:[#allocation4 + $0x6]]  ;;  %v1200_v29 = vstv %s3472_s10 }
  0xc8   : > { %s5253_s10 = sld [smem:[#allocation43_spill]] }
  0xc9   : > { %5124 = sst [smem:[#allocation31_spill]] %s3393_s26  ;;  %v672_v60 = vstv %s3393_s26  ;;  %s3487_s26 = sld [smem:[#allocation4 + $0x44]] }
  0xca   : > { %5162 = sst [smem:[#allocation24_spill]] %s3576_s30  ;;  %s3691_s30 = sld [smem:[#allocation4 + $0x21]] }
  0xcb   : > { %1278 = vrot.lane.b32.xlu1 %v3327_v49, %s3098_s28  ;;  %1276 = vrot.lane.b32.xlu0 %v3321_v48, %s3098_s28  ;;  %s3397_s28 = sld [smem:[#allocation4 + $0x37]] }
  0xcd   : > { %5125 = sst [smem:[#allocation32_spill]] %s3395_s5  ;;  %v713_v61 = vstv %s3395_s5  ;;  %s5148_s5 = sld [smem:[#allocation44_spill]] }
  0xcf   : > { %1322 = vrot.lane.b32.xlu1 %v3327_v49, %s3099_s25  ;;  %1320 = vrot.lane.b32.xlu0 %v3321_v48, %s3099_s25  ;;  %s3399_s25 = sld [smem:[#allocation4 + $0x7]] }
  0xd0   : > { %5173 = sst [smem:[#allocation27_spill]] %s3691_s30  ;;  %s3114_s30 = smov 98  }
  0xd1   : > { %5126 = sst [smem:[#allocation33_spill]] %s3397_s28  ;;  %v716_v62 = vstv %s3397_s28  ;;  %s3496_s28 = sld [smem:[#allocation4 + $0x45]] }
  0xd3   : > { %1366 = vrot.lane.b32.xlu1 %v3327_v49, %s3100_s6  ;;  %1364 = vrot.lane.b32.xlu0 %v3321_v48, %s3100_s6  ;;  %s3103_s6 = smov 127   ;;  %v936_v13 = vstv %s5148_s5  ;;  %s4434_s5 = sld [smem:[#allocation4 + $0x55]] }
  0xd5   : > { %5127 = sst [smem:[#allocation34_spill]] %s3399_s25  ;;  %v757_v63 = vstv %s3399_s25  ;;  %s5149_s25 = sld [smem:[#allocation45_spill]] }
  0xd7   : > { %1410 = vrot.lane.b32.xlu1 %v3327_v49, %s3101_s11  ;;  %1408 = vrot.lane.b32.xlu0 %v3321_v48, %s3101_s11  ;;  %s3403_s11 = sld [smem:[#allocation4 + $0x38]] }
  0xdb   : > { %1454 = vrot.lane.b32.xlu1 %v3327_v49, %s3102_s29  ;;  %1452 = vrot.lane.b32.xlu0 %v3321_v48, %s3102_s29  ;;  %s3405_s29 = sld [smem:[#allocation4 + $0x8]]  ;;  %v977_v14 = vstv %s5149_s25  ;;  %s3108_s25 = smov 113  }
  0xdd   : > { %5128 = sst [smem:[#allocation35_spill]] %s3403_s11  ;;  %v760_v0 = vstv %s3403_s11  ;;  %s3494_s11 = sld [smem:[#allocation4 + $0x14]] }
  0xdf   : > { %1521 = vrot.lane.b32.xlu1 %v3327_v49, %s3103_s6  ;;  %1519 = vrot.lane.b32.xlu0 %v3321_v48, %s3103_s6  ;;  %s3421_s6 = sld [smem:[#allocation3]] }
  0xe1   : > { %5129 = sst [smem:[#allocation36_spill]] %s3405_s29  ;;  %v801_v1 = vstv %s3405_s29  ;;  %s3107_s29 = smov 114  }
  0xe3   : > { %1565 = vrot.lane.b32.xlu1 %v3327_v49, %s3104_s18  ;;  %1563 = vrot.lane.b32.xlu0 %v3321_v48, %s3104_s18  ;;  %s3435_s18 = sld [smem:[#allocation4 + $0xd]] }
  0xe5   : > { %v426_v9 = vstv %s3421_s6  ;;  %s3125_s6 = smov 78  }
  0xe7   : > { %1609 = vrot.lane.b32.xlu1 %v3327_v49, %s3105_s8  ;;  %1607 = vrot.lane.b32.xlu0 %v3321_v48, %s3105_s8  ;;  %s3459_s8 = sld [smem:[#allocation4 + $0x10]] }
  0xe9   : > { %5140 = sst [smem:[#allocation47_spill]] %s3435_s18  ;;  %s3451_s18 = sld [smem:[#allocation4 + $0x40]] }
  0xea   : > { %s5151_s0 = sld [smem:[#allocation47_spill]] }
  0xeb   : > { %1653 = vrot.lane.b32.xlu1 %v3327_v49, %s3106_s13  ;;  %1651 = vrot.lane.b32.xlu0 %v3321_v48, %s3106_s13  ;;  %s3480_s13 = sld [smem:[#allocation4 + $0x43]]  ;;  %5156 = sst [smem:[#allocation47_spill]] %s3531_s14 }
  0xec   : > { %s3116_s14 = smov 96  }
  0xed   : > { %5142 = sst [smem:[#allocation49_spill]] %s3459_s8  ;;  %v1153_v26 = vstv %s3459_s8  ;;  %s3553_s8 = sld [smem:[#allocation4 + $0x1a]] }
  0xef   : > { %1697 = vrot.lane.b32.xlu1 %v3327_v49, %s3107_s29  ;;  %1695 = vrot.lane.b32.xlu0 %v3321_v48, %s3107_s29  ;;  %s3516_s29 = sld [smem:[#allocation4 + $0x16]]  ;;  %v1112_v25 = vstv %s3451_s18 }
  0xf0   : > { %v1021_v19 = vstv %s5151_s0  ;;  %s3123_s0 = smov 80  }
  0xf1   : > { %5146 = sst [smem:[#allocation53_spill]] %s3480_s13  ;;  %v485_v16 = vpop.permute.xlu1 %484  ;;  %v3519_v17 = vpop.permute.xlu0 %438  ;;  %v1244_v36 = vstv %s3480_s13  ;;  %s3566_s13 = sld [smem:[#allocation4 + $0x4b]] }
  0xf3   : > { %1741 = vrot.lane.b32.xlu1 %v3327_v49, %s3108_s25  ;;  %1739 = vrot.lane.b32.xlu0 %v3321_v48, %s3108_s25  ;;  %s3547_s25 = sld [smem:[#allocation4 + $0x4a]]  ;;  %5160 = sst [smem:[#allocation57_spill]] %s3553_s8 }
  0xf4   : > { %s3111_s8 = smov 110   ;;  %s5278_s2 = sld [smem:[#allocation57_spill]] }
  0xf5   : > { %5154 = sst [smem:[#allocation44_spill]] %s3516_s29  ;;  %v529_v32 = vpop.permute.xlu0 %528  ;;  %v487_v33 = vpop.permute.xlu1 %486  ;;  %s3615_s29 = sld [smem:[#allocation4 + $0x1d]] }
  0xf6   : > { %v489_v40 = vsel %vm488_vm2, %v485_v16, %v487_v33  ;;  %v490_v41 = vsel %vm488_vm2, %v487_v33, %v485_v16  ;;  %vm1507_vm2 = vmand %vm3631_vm14, %vm3609_vm10 }
  0xf7   : > { %v497_v45 = vmul.f32 %v496_v51, %v490_v41  ;;  %v498_v46 = vmul.f32 %v496_v51, %v489_v40  ;;  %1785 = vrot.lane.b32.xlu1 %v3327_v49, %s3109_s15  ;;  %1783 = vrot.lane.b32.xlu0 %v3321_v48, %s3109_s15  ;;  %v494_v16 = vmul.f32 %v493_v50, %v490_v41  ;;  %s3110_s15 = smov 111  }
  0xf8   : > { %v495_v21 = vmul.f32 %v493_v50, %v489_v40 }
  0xf9   : > { %5159 = sst [smem:[#allocation56_spill]] %s3547_s25  ;;  %v501_v33 = vrot.slane %v497_v45, 1  ;;  %v502_v47 = vrot.slane %v498_v46, 1  ;;  %v573_v4 = vpop.permute.xlu0 %572  ;;  %v531_v43 = vpop.permute.xlu1 %530  ;;  %s3655_s25 = sld [smem:[#allocation4 + $0x1f]] }
  0xfa   : > { %v533_v44 = vsel %vm532_vm3, %v529_v32, %v531_v43  ;;  %v534_v30 = vsel %vm532_vm3, %v531_v43, %v529_v32  ;;  %vm410_vm3 = vcmp.ge.s32.totalorder %v3511_v11, 1 }
  0xfb   : > { %v3600_v50 = vadd.f32 %v501_v33, %v494_v16  ;;  %v3602_v40 = vadd.f32 %v502_v47, %v495_v21  ;;  %1829 = vrot.lane.b32.xlu1 %v3327_v49, %s3110_s15  ;;  %v541_v46 = vmul.f32 %v540_v53, %v534_v30  ;;  %v542_v47 = vmul.f32 %v540_v53, %v533_v44 }
  0xfc   : > { %1827 = vrot.lane.b32.xlu0 %v3321_v48, %s3110_s15  ;;  %v1515_v21 = vrot.slane %v3584_v15, %v3303_v35  ;;  %v538_v43 = vmul.f32 %v537_v52, %v534_v30  ;;  %v539_v41 = vmul.f32 %v537_v52, %v533_v44  ;;  %s3653_s15 = sld [smem:[#allocation4 + $0x4f]] }
  0xfd   : > { %v510_v53 = vcombine.low %v3600_v50, %v3602_v40  ;;  %v617_v32 = vpop.permute.xlu0 %616  ;;  %v575_v51 = vpop.permute.xlu1 %574  ;;  %v545_v52 = vrot.slane %v541_v46, 1  ;;  %v546_v44 = vrot.slane %v542_v47, 1 }
  0xfe   : > { %v577_v30 = vsel %vm576_vm6, %v573_v4, %v575_v51  ;;  %v578_v50 = vsel %vm576_vm6, %v575_v51, %v573_v4  ;;  %v3682_v51 = vsel %vm1507_vm2, %v1515_v21, 0.0  ;;  %vm752_vm6 = vcmp.lt.s32.totalorder %v3466_v58, 35 }
  0xff   : > { %v585_v40 = vmul.f32 %v584_v55, %v578_v50  ;;  %1873 = vrot.lane.b32.xlu1 %v3327_v49, %s3111_s8  ;;  %v549_v47 = vadd.f32 %v545_v52, %v538_v43  ;;  %v550_v31 = vadd.f32 %v546_v44, %v539_v41  ;;  %v586_v4 = vmul.f32 %v584_v55, %v577_v30 }
 0x100   : > { %1871 = vrot.lane.b32.xlu0 %v3321_v48, %s3111_s8  ;;  %v582_v33 = vmul.f32 %v581_v54, %v578_v50  ;;  %v583_v46 = vmul.f32 %v581_v54, %v577_v30  ;;  %s3689_s8 = sld [smem:[#allocation4 + $0x51]]  ;;  %vm5202_vm2 = vcmp.ge.s32.totalorder %v3511_v11, 4294967293 }
 0x101   : > { %v589_v15 = vrot.slane %v585_v40, 1  ;;  %v661_v41 = vpop.permute.xlu0 %660  ;;  %v619_v43 = vpop.permute.xlu1 %618  ;;  %v554_v21 = vcombine.low %v549_v47, %v550_v31  ;;  %v590_v52 = vrot.slane %v586_v4, 1 }
 0x102   : > { %v621_v44 = vsel %vm620_vm7, %v617_v32, %v619_v43  ;;  %v622_v54 = vsel %vm620_vm7, %v619_v43, %v617_v32  ;;  %vm416_vm7 = vcmp.ge.s32.totalorder %v3511_v11, 4294967295 }
 0x103   : > { %v593_v30 = vadd.f32 %v589_v15, %v582_v33  ;;  %1917 = vrot.lane.b32.xlu1 %v3327_v49, %s3112_s7  ;;  %v594_v47 = vadd.f32 %v590_v52, %v583_v46  ;;  %v629_v4 = vmul.f32 %v628_v57, %v622_v54  ;;  %v630_v55 = vmul.f32 %v628_v57, %v621_v44 }
 0x104   : > { %1915 = vrot.lane.b32.xlu0 %v3321_v48, %s3112_s7  ;;  %v3709_v33 = vrot.slane %v510_v53, %v3303_v35  ;;  %v626_v15 = vmul.f32 %v625_v56, %v622_v54  ;;  %v627_v57 = vmul.f32 %v625_v56, %v621_v44  ;;  %s3119_s7 = smov 93  }
 0x105   : > { %v705_v43 = vpop.permute.xlu0 %704  ;;  %v663_v37 = vpop.permute.xlu1 %662  ;;  %v598_v31 = vcombine.low %v593_v30, %v594_v47  ;;  %v633_v46 = vrot.slane %v629_v4, 1  ;;  %v634_v52 = vrot.slane %v630_v55, 1  ;;  %v561_v47 = vrot.slane %v554_v21, %v3303_v35 }
 0x106   : > { %v665_v54 = vsel %vm664_vm13, %v661_v41, %v663_v37  ;;  %v666_v30 = vsel %vm664_vm13, %v663_v37, %v661_v41  ;;  %vm3751_vm13 = vmand %vm410_vm3, %vm411_vm4  ;;  %v524_v50 = vrot.slane %v3709_v33, %v3303_v35 }
 0x107   : > { %1961 = vrot.lane.b32.xlu1 %v3327_v49, %s3113_s1  ;;  %v605_v37 = vrot.slane %v598_v31, %v3303_v35  ;;  %v637_v41 = vadd.f32 %v633_v46, %v626_v15  ;;  %v638_v4 = vadd.f32 %v634_v52, %v627_v57  ;;  %v673_v21 = vmul.f32 %v672_v60, %v666_v30  ;;  %vm507_vm3 = vmand %vm3723_vm9, %vm3739_vm11 }
 0x108   : > { %1959 = vrot.lane.b32.xlu0 %v3321_v48, %s3113_s1  ;;  %v674_v31 = vmul.f32 %v672_v60, %v665_v54  ;;  %v670_v33 = vmul.f32 %v669_v59, %v666_v30  ;;  %s3115_s1 = smov 97  }
 0x109   : > { %v749_v15 = vpop.permute.xlu0 %748  ;;  %v707_v57 = vpop.permute.xlu1 %706  ;;  %v642_v56 = vcombine.low %v637_v41, %v638_v4  ;;  %v671_v41 = vmul.f32 %v669_v59, %v665_v54  ;;  %v677_v4 = vrot.slane %v673_v21, 1  ;;  %v612_v59 = vrot.slane %v605_v37, %v3303_v35 }
 0x10a   : > { %v709_v32 = vsel %vm708_vm5, %v705_v43, %v707_v57  ;;  %v710_v60 = vsel %vm708_vm5, %v707_v57, %v705_v43  ;;  %v678_v52 = vrot.slane %v674_v31, 1  ;;  %vm551_vm5 = vmand %vm3723_vm9, %vm3751_vm13  ;;  %v568_v43 = vrot.slane %v561_v47, %v3303_v35 }
 0x10b   : > { %2005 = vrot.lane.b32.xlu1 %v3327_v49, %s3114_s30  ;;  %v717_v54 = vmul.f32 %v716_v62, %v710_v60  ;;  %v718_v30 = vmul.f32 %v716_v62, %v709_v32  ;;  %v681_v47 = vadd.f32 %v677_v4, %v670_v33  ;;  %v714_v21 = vmul.f32 %v713_v61, %v710_v60 }
 0x10c   : > { %2003 = vrot.lane.b32.xlu0 %v3321_v48, %s3114_s30  ;;  %v682_v37 = vadd.f32 %v678_v52, %v671_v41  ;;  %v715_v62 = vmul.f32 %v713_v61, %v709_v32  ;;  %v3805_v46 = vrot.slane %v642_v56, %v3303_v35  ;;  %v3814_v61 = vsel %vm507_vm3, %v524_v50, 0.0  ;;  %vm3841_vm3 = vmand %vm416_vm7, %vm417_vm8  ;;  %s3126_s30 = smov 77  }
 0x10d   : > { %v793_v31 = vpop.permute.xlu0 %792  ;;  %v751_v57 = vpop.permute.xlu1 %750  ;;  %v721_v40 = vrot.slane %v717_v54, 1  ;;  %v722_v38 = vrot.slane %v718_v30, 1  ;;  %v3826_v60 = vsel %vm551_vm5, %v568_v43, 0.0  ;;  %v3833_v50 = vsel %vm595_vm12, %v612_v59, 0.0 }
 0x10e   : > { %v753_v33 = vsel %vm752_vm6, %v749_v15, %v751_v57  ;;  %v686_v32 = vcombine.low %v681_v47, %v682_v37  ;;  %v754_v52 = vsel %vm752_vm6, %v751_v57, %v749_v15  ;;  %v656_v47 = vrot.slane %v3805_v46, %v3303_v35 }
 0x10f   : > { %v762_v56 = vmul.f32 %v760_v0, %v753_v33  ;;  %2049 = vrot.lane.b32.xlu1 %v3327_v49, %s3115_s1  ;;  %v725_v15 = vadd.f32 %v721_v40, %v714_v21  ;;  %v726_v41 = vadd.f32 %v722_v38, %v715_v62  ;;  %v759_v59 = vmul.f32 %v757_v63, %v753_v33 }
 0x110   : > { %2047 = vrot.lane.b32.xlu0 %v3321_v48, %s3115_s1  ;;  %v3846_v43 = vrot.slane %v686_v32, %v3303_v35  ;;  %v761_v40 = vmul.f32 %v760_v0, %v754_v52  ;;  %vm5190_vm7 = vcmp.lt.s32.totalorder %v3466_v58, 34  ;;  %v758_v57 = vmul.f32 %v757_v63, %v754_v52  ;;  %s3117_s1 = smov 95  }
 0x111   : > { %v766_v38 = vrot.slane %v762_v56, 1  ;;  %v795_v54 = vpop.permute.xlu1 %794  ;;  %v441_v30 = vpop.permute.xlu0 %440  ;;  %v730_v37 = vcombine.low %v725_v15, %v726_v41  ;;  %vm5191_vm8 = vmmov %vm5190_vm7  ;;  %vm5193_vm12 = vcmp.lt.s32.totalorder %v3466_v58, 51  ;;  %vm5200_vm6 = vcmp.lt.s32.totalorder %v3466_v58, 51 }
 0x112   : > { %v797_v21 = vsel %vm5190_vm7, %v793_v31, %v795_v54  ;;  %v798_v62 = vsel %vm5191_vm8, %v795_v54, %v793_v31  ;;  %v765_v0 = vrot.slane %v761_v40, 1  ;;  %v445_v32 = vsel %vm5193_vm12, %v3519_v17, %v441_v30 }
 0x113   : > { %v770_v33 = vadd.f32 %v766_v38, %v759_v59  ;;  %2093 = vrot.lane.b32.xlu1 %v3327_v49, %s3116_s14  ;;  %v700_v31 = vrot.slane %v3846_v43, %v3303_v35  ;;  %v737_v63 = vrot.slane %v730_v37, %v3303_v35  ;;  %v805_v52 = vmul.f32 %v804_v2, %v798_v62 }
 0x114   : > { %v806_v56 = vmul.f32 %v804_v2, %v797_v21  ;;  %2091 = vrot.lane.b32.xlu0 %v3321_v48, %s3116_s14  ;;  %vm5196_vm8 = vcmp.lt.s32.totalorder %v3511_v11, 14  ;;  %vm5197_vm12 = vcmp.ge.s32.totalorder %v3511_v11, 4294967294  ;;  %v769_v41 = vadd.f32 %v765_v0, %v758_v57  ;;  %s3118_s14 = smov 94  }
 0x115   : > { %vm3881_vm5 = vmand %vm5197_vm12, %vm5196_vm8  ;;  %v802_v43 = vmul.f32 %v801_v1, %v798_v62  ;;  %v803_v59 = vmul.f32 %v801_v1, %v797_v21  ;;  %v446_v2 = vsel %vm5200_vm6, %v441_v30, %v3519_v17  ;;  %v839_v40 = vpop.permute.xlu1 %838  ;;  %v837_v38 = vpop.permute.xlu0 %836  ;;  %vm5201_vm7 = vcmp.lt.s32.totalorder %v3511_v11, 13 }
 0x116   : > { %vm3896_vm4 = vmand %vm5202_vm2, %vm5201_vm7  ;;  %v744_v37 = vrot.slane %v737_v63, %v3303_v35  ;;  %v809_v62 = vrot.slane %v805_v52, 1  ;;  %v810_v57 = vrot.slane %v806_v56, 1  ;;  %v451_v1 = vmul.f32 %v449_v3, %v445_v32 }
 0x117   : > { %vm5205_vm6 = vcmp.ge.s32.totalorder %v3558_v39, 2  ;;  %v774_v30 = vcombine.low %v769_v41, %v770_v33  ;;  %v453_v21 = vmul.f32 %v452_v5, %v446_v2  ;;  %v454_v0 = vmul.f32 %v452_v5, %v445_v32  ;;  %2137 = vrot.lane.b32.xlu1 %v3327_v49, %s3117_s1 }
 0x118   : > { %vm3907_vm8 = vmand %vm5205_vm6, %vm387_vm15  ;;  %v841_v63 = vsel %vm840_vm0, %v837_v38, %v839_v40  ;;  %vm5209_vm7 = vcmp.lt.s32.totalorder %v3511_v11, 19  ;;  %vm5210_vm15 = vcmp.ge.s32.totalorder %v3511_v11, 3  ;;  %v813_v52 = vadd.f32 %v809_v62, %v802_v43  ;;  %2135 = vrot.lane.b32.xlu0 %v3321_v48, %s3117_s1  ;;  %s5270_s1 = sld [smem:[#allocation56_spill]] }
 0x119   : > { %vm3923_vm12 = vmand %vm5210_vm15, %vm5209_vm7  ;;  %v814_v5 = vadd.f32 %v810_v57, %v803_v59  ;;  %v450_v32 = vmul.f32 %v449_v3, %v446_v2  ;;  %v842_v56 = vsel %vm840_vm0, %v839_v40, %v837_v38  ;;  %v781_v11 = vrot.slane %v774_v30, %v3303_v35  ;;  %v883_v62 = vpop.permute.xlu1 %882  ;;  %v881_v59 = vpop.permute.xlu0 %880 }
 0x11a   : > { %vm683_vm6 = vmand %vm3723_vm9, %vm3881_vm5  ;;  %v457_v41 = vrot.slane %v453_v21, 1  ;;  %v458_v34 = vrot.slane %v454_v0, 1  ;;  %v846_v43 = vmul.f32 %v845_v6, %v842_v56  ;;  %v847_v2 = vmul.f32 %v845_v6, %v841_v63 }
 0x11b   : > { %vm727_vm0 = vmand %vm3723_vm9, %vm3896_vm4  ;;  %v818_v3 = vcombine.low %v813_v52, %v814_v5  ;;  %v849_v40 = vmul.f32 %v848_v7, %v842_v56  ;;  %v850_v38 = vmul.f32 %v848_v7, %v841_v63  ;;  %v788_v57 = vrot.slane %v781_v11, %v3303_v35  ;;  %2181 = vrot.lane.b32.xlu1 %v3327_v49, %s3118_s14 }
 0x11c   : > { %v461_v30 = vadd.f32 %v457_v41, %v450_v32  ;;  %v462_v21 = vadd.f32 %v458_v34, %v451_v1  ;;  %vm5214_vm15 = vcmp.lt.s32.totalorder %v3466_v58, 32  ;;  %2179 = vrot.lane.b32.xlu0 %v3321_v48, %s3118_s14  ;;  %vm1016_vm7 = vcmp.lt.s32.totalorder %v3466_v58, 29  ;;  %s5290_s14 = sld [smem:[#allocation60_spill]] }
 0x11d   : > { %v885_v0 = vsel %vm5214_vm15, %v881_v59, %v883_v62  ;;  %v825_v6 = vrot.slane %v818_v3, %v3303_v35  ;;  %v853_v52 = vrot.slane %v849_v40, 1  ;;  %v854_v7 = vrot.slane %v850_v38, 1  ;;  %vm5215_vm2 = vmmov %vm5214_vm15  ;;  %v927_v32 = vpop.permute.xlu1 %926  ;;  %v925_v56 = vpop.permute.xlu0 %924 }
 0x11e   : > { %v886_v63 = vsel %vm5215_vm2, %v883_v62, %v881_v59  ;;  %vm5216_vm15 = vmand %vm3723_vm9, %vm3841_vm3  ;;  %v3977_v1 = vsel %vm683_vm6, %v700_v31, 0.0  ;;  %v3984_v46 = vsel %vm727_vm0, %v744_v37, 0.0  ;;  %v466_v5 = vcombine.low %v461_v30, %v462_v21 }
 0x11f   : > { %v3970_v34 = vsel %vm5216_vm15, %v656_v47, 0.0  ;;  %vm5218_vm2 = vmand %vm3907_vm8, %vm3923_vm12  ;;  %v857_v31 = vadd.f32 %v853_v52, %v846_v43  ;;  %v858_v11 = vadd.f32 %v854_v7, %v847_v2  ;;  %v893_v41 = vmul.f32 %v892_v10, %v886_v63  ;;  %2225 = vrot.lane.b32.xlu1 %v3327_v49, %s3119_s7 }
 0x120   : > { %v3991_v47 = vsel %vm5218_vm2, %v788_v57, 0.0  ;;  %v473_v62 = vrot.slane %v466_v5, %v3303_v35  ;;  %v894_v37 = vmul.f32 %v892_v10, %v885_v0  ;;  %vm5219_vm6 = vcmp.lt.s32.totalorder %v3466_v58, 31  ;;  %vm463_vm15 = vmand %vm3723_vm9, %vm3923_vm12  ;;  %2223 = vrot.lane.b32.xlu0 %v3321_v48, %s3119_s7  ;;  %s5238_s7 = sld [smem:[#allocation52_spill]] }
 0x121   : > { %v929_v59 = vsel %vm5219_vm6, %v925_v56, %v927_v32  ;;  %vm5220_vm0 = vmmov %vm5219_vm6  ;;  %v832_v43 = vrot.slane %v825_v6, %v3303_v35  ;;  %v862_v10 = vcombine.low %v857_v31, %v858_v11  ;;  %v890_v2 = vmul.f32 %v889_v8, %v886_v63  ;;  %v971_v6 = vpop.permute.xlu1 %970  ;;  %v969_v52 = vpop.permute.xlu0 %968 }
 0x122   : > { %v930_v3 = vsel %vm5220_vm0, %v927_v32, %v925_v56  ;;  %v897_v40 = vrot.slane %v893_v41, 1  ;;  %vm815_vm6 = vmand %vm3907_vm8, %vm3739_vm11  ;;  %v480_v38 = vrot.slane %v473_v62, %v3303_v35  ;;  %v891_v57 = vmul.f32 %v889_v8, %v885_v0 }
 0x123   : > { %v898_v30 = vrot.slane %v894_v37, 1  ;;  %v937_v21 = vmul.f32 %v936_v13, %v930_v3  ;;  %v934_v63 = vmul.f32 %v933_v12, %v930_v3  ;;  %v938_v5 = vmul.f32 %v936_v13, %v929_v59  ;;  %2269 = vrot.lane.b32.xlu1 %v3327_v49, %s3120_s22 }
 0x124   : > { %v901_v7 = vadd.f32 %v897_v40, %v890_v2  ;;  %vm5221_vm0 = vcmp.lt.s32.totalorder %v3466_v58, 30  ;;  %v482_v8 = vsel %vm463_vm15, %v480_v38, 0.0  ;;  %v4040_v13 = vsel %vm815_vm6, %v832_v43, 0.0  ;;  %2267 = vrot.lane.b32.xlu0 %v3321_v48, %s3120_s22  ;;  %s5267_s22 = sld [smem:[#allocation47_spill]] }
 0x125   : > { %v973_v32 = vsel %vm5221_vm0, %v969_v52, %v971_v6  ;;  %v902_v0 = vadd.f32 %v898_v30, %v891_v57  ;;  %v941_v56 = vrot.slane %v937_v21, 1  ;;  %vm5222_vm2 = vmmov %vm5221_vm0  ;;  %v483_v53 = vadd.f32 %v482_v8, %v426_v9  ;;  %v1015_v40 = vpop.permute.xlu1 %1014  ;;  %v1013_v38 = vpop.permute.xlu0 %1012 }
 0x126   : > { %v974_v31 = vsel %vm5222_vm2, %v971_v6, %v969_v52  ;;  %v935_v11 = vmul.f32 %v933_v12, %v929_v59  ;;  %v942_v41 = vrot.slane %v938_v5, 1  ;;  %vm1104_vm9 = vcmp.lt.s32.totalorder %v3466_v58, 18 }
 0x127   : > { %v869_v62 = vrot.slane %v862_v10, %v3303_v35  ;;  %v906_v37 = vcombine.low %v901_v7, %v902_v0  ;;  %v945_v3 = vadd.f32 %v941_v56, %v934_v63  ;;  %v981_v2 = vmul.f32 %v980_v18, %v974_v31  ;;  %2313 = vrot.lane.b32.xlu1 %v3327_v49, %s3121_s9 }
 0x128   : > { %v527_v43 = vadd.f32 %v3814_v61, %v483_v53  ;;  %v946_v57 = vadd.f32 %v942_v41, %v935_v11  ;;  %v978_v9 = vmul.f32 %v977_v14, %v974_v31  ;;  %v982_v12 = vmul.f32 %v980_v18, %v973_v32  ;;  %2311 = vrot.lane.b32.xlu0 %v3321_v48, %s3121_s9  ;;  %s5274_s9 = sld [smem:[#allocation55_spill]] }
 0x129   : > { %v913_v59 = vrot.slane %v906_v37, %v3303_v35  ;;  %v985_v30 = vrot.slane %v981_v2, 1  ;;  %v1017_v10 = vsel %vm1016_vm7, %v1013_v38, %v1015_v40  ;;  %v1018_v21 = vsel %vm1016_vm7, %v1015_v40, %v1013_v38  ;;  %v1059_v0 = vpop.permute.xlu1 %1058  ;;  %v1057_v56 = vpop.permute.xlu0 %1056  ;;  %vm859_vm7 = vmand %vm3907_vm8, %vm3751_vm13 }
 0x12a   : > { %v571_v61 = vadd.f32 %v3826_v60, %v527_v43  ;;  %v950_v6 = vcombine.low %v945_v3, %v946_v57  ;;  %v979_v52 = vmul.f32 %v977_v14, %v973_v32  ;;  %v986_v18 = vrot.slane %v982_v12, 1 }
 0x12b   : > { %v876_v7 = vrot.slane %v869_v62, %v3303_v35  ;;  %v989_v63 = vadd.f32 %v985_v30, %v978_v9  ;;  %v1022_v5 = vmul.f32 %v1021_v19, %v1018_v21  ;;  %v1025_v8 = vmul.f32 %v1024_v20, %v1018_v21  ;;  %2357 = vrot.lane.b32.xlu1 %v3327_v49, %s3122_s3 }
 0x12c   : > { %v615_v60 = vadd.f32 %v3833_v50, %v571_v61  ;;  %v957_v14 = vrot.slane %v950_v6, %v3303_v35  ;;  %v990_v32 = vadd.f32 %v986_v18, %v979_v52  ;;  %v1026_v31 = vmul.f32 %v1024_v20, %v1017_v10  ;;  %2355 = vrot.lane.b32.xlu0 %v3321_v48, %s3122_s3  ;;  %s4366_s3 = sld [smem:[#allocation4 + $0x23]] }
 0x12d   : > { %v920_v53 = vrot.slane %v913_v59, %v3303_v35  ;;  %v1029_v11 = vrot.slane %v1025_v8, 1  ;;  %vm5224_vm2 = vcmp.lt.s32.totalorder %v3466_v58, 19  ;;  %v1023_v3 = vmul.f32 %v1021_v19, %v1017_v10  ;;  %v1103_v38 = vpop.permute.xlu1 %1102  ;;  %v1101_v43 = vpop.permute.xlu0 %1100 }
 0x12e   : > { %v1061_v41 = vsel %vm5224_vm2, %v1057_v56, %v1059_v0  ;;  %vm5225_vm6 = vmmov %vm5224_vm2  ;;  %v659_v62 = vadd.f32 %v3970_v34, %v615_v60  ;;  %v994_v37 = vcombine.low %v989_v63, %v990_v32  ;;  %v1030_v20 = vrot.slane %v1026_v31, 1 }
 0x12f   : > { %v1062_v50 = vsel %vm5225_vm6, %v1059_v0, %v1057_v56  ;;  %vm389_vm0 = vcmp.ge.s32.totalorder %v3558_v39, 1  ;;  %vm390_vm15 = vcmp.lt.s32.totalorder %v3558_v39, 17  ;;  %v878_v34 = vsel %vm859_vm7, %v876_v7, 0.0  ;;  %vm903_vm6 = vmand %vm3907_vm8, %vm3609_vm10  ;;  %2401 = vrot.lane.b32.xlu1 %v3327_v49, %s3123_s0 }
 0x130   : > { %v964_v19 = vrot.slane %v957_v14, %v3303_v35  ;;  %v1033_v2 = vadd.f32 %v1029_v11, %v1022_v5  ;;  %v1069_v40 = vmul.f32 %v1068_v23, %v1062_v50  ;;  %v703_v57 = vadd.f32 %v3977_v1, %v659_v62  ;;  %vm947_vm7 = vmand %vm3907_vm8, %vm3841_vm3  ;;  %2399 = vrot.lane.b32.xlu0 %v3321_v48, %s3123_s0  ;;  %s4368_s0 = sld [smem:[#allocation4 + $0x54]] }
 0x131   : > { %v1001_v9 = vrot.slane %v994_v37, %v3303_v35  ;;  %v1034_v12 = vadd.f32 %v1030_v20, %v1023_v3  ;;  %v1066_v59 = vmul.f32 %v1065_v22, %v1062_v50  ;;  %v1070_v30 = vmul.f32 %v1068_v23, %v1061_v41  ;;  %vm991_vm2 = vmand %vm3907_vm8, %vm3881_vm5  ;;  %v1147_v5 = vpop.permute.xlu1 %1146  ;;  %v1145_v8 = vpop.permute.xlu0 %1144 }
 0x132   : > { %v1073_v10 = vrot.slane %v1069_v40, 1  ;;  %v1105_v21 = vsel %vm1104_vm9, %v1101_v43, %v1103_v38  ;;  %v1106_v1 = vsel %vm1104_vm9, %v1103_v38, %v1101_v43  ;;  %v747_v61 = vadd.f32 %v3984_v46, %v703_v57 }
 0x133   : > { %v922_v23 = vsel %vm903_vm6, %v920_v53, 0.0  ;;  %v1008_v6 = vrot.slane %v1001_v9, %v3303_v35  ;;  %v1038_v52 = vcombine.low %v1033_v2, %v1034_v12  ;;  %v1067_v46 = vmul.f32 %v1065_v22, %v1061_v41  ;;  %2445 = vrot.lane.b32.xlu1 %v3327_v49, %s3124_s17 }
 0x134   : > { %v1074_v18 = vrot.slane %v1070_v30, 1  ;;  %v1077_v7 = vadd.f32 %v1073_v10, %v1066_v59  ;;  %v1113_v63 = vmul.f32 %v1112_v25, %v1106_v1  ;;  %v791_v0 = vadd.f32 %v3991_v47, %v747_v61  ;;  %2443 = vrot.lane.b32.xlu0 %v3321_v48, %s3124_s17  ;;  %s4397_s17 = sld [smem:[#allocation4 + $0x24]] }
 0x135   : > { %v966_v56 = vsel %vm947_vm7, %v964_v19, 0.0  ;;  %v1110_v60 = vmul.f32 %v1109_v24, %v1106_v1  ;;  %v1114_v14 = vmul.f32 %v1112_v25, %v1105_v21  ;;  %vm5228_vm6 = vcmp.lt.s32.totalorder %v3466_v58, 17  ;;  %v1189_v20 = vpop.permute.xlu0 %1188 }
 0x136   : > { %v1078_v22 = vadd.f32 %v1074_v18, %v1067_v46  ;;  %v1117_v32 = vrot.slane %v1113_v63, 1  ;;  %v1149_v31 = vsel %vm5228_vm6, %v1145_v8, %v1147_v5  ;;  %vm5229_vm9 = vmmov %vm5228_vm6  ;;  %v835_v47 = vadd.f32 %v4040_v13, %v791_v0  ;;  %v1191_v13 = vpop.permute.xlu1 %1190 }
 0x137   : > { %v1150_v53 = vsel %vm5229_vm9, %v1147_v5, %v1145_v8  ;;  %v1010_v25 = vsel %vm991_vm2, %v1008_v6, 0.0  ;;  %v1111_v11 = vmul.f32 %v1109_v24, %v1105_v21  ;;  %v1118_v41 = vrot.slane %v1114_v14, 1  ;;  %vm4173_vm2 = vmand %vm389_vm0, %vm390_vm15  ;;  %2489 = vrot.lane.b32.xlu1 %v3327_v49, %s3125_s6 }
 0x138   : > { %v1045_v50 = vrot.slane %v1038_v52, %v3303_v35  ;;  %v1082_v62 = vcombine.low %v1077_v7, %v1078_v22  ;;  %v1121_v37 = vadd.f32 %v1117_v32, %v1110_v60  ;;  %v1157_v3 = vmul.f32 %v1156_v27, %v1150_v53  ;;  %2487 = vrot.lane.b32.xlu0 %v3321_v48, %s3125_s6  ;;  %vm1035_vm0 = vmand %vm3907_vm8, %vm3896_vm4  ;;  %s5325_s6 = sld [smem:[#allocation21_spill]] }
 0x139   : > { %v879_v19 = vadd.f32 %v878_v34, %v835_v47  ;;  %v1122_v2 = vadd.f32 %v1118_v41, %v1111_v11  ;;  %v1154_v40 = vmul.f32 %v1153_v26, %v1150_v53  ;;  %v1158_v24 = vmul.f32 %v1156_v27, %v1149_v31  ;;  %v1233_v61 = vpop.permute.xlu0 %1232 }
 0x13a   : > { %v1089_v43 = vrot.slane %v1082_v62, %v3303_v35  ;;  %v1161_v57 = vrot.slane %v1157_v3, 1  ;;  %vm5233_vm9 = vcmp.lt.s32.totalorder %v3466_v58, 16  ;;  %v1155_v39 = vmul.f32 %v1153_v26, %v1149_v31  ;;  %v1235_v1 = vpop.permute.xlu1 %1234 }
 0x13b   : > { %v1193_v34 = vsel %vm5233_vm9, %v1189_v20, %v1191_v13  ;;  %vm5234_vm6 = vmmov %vm5233_vm9  ;;  %v923_v27 = vadd.f32 %v922_v23, %v879_v19  ;;  %v1126_v12 = vcombine.low %v1121_v37, %v1122_v2  ;;  %v1162_v59 = vrot.slane %v1158_v24, 1  ;;  %2533 = vrot.lane.b32.xlu1 %v3327_v49, %s3126_s30 }
 0x13c   : > { %v1194_v9 = vsel %vm5234_vm6, %v1191_v13, %v1189_v20  ;;  %v1052_v30 = vrot.slane %v1045_v50, %v3303_v35  ;;  %v1096_v10 = vrot.slane %v1089_v43, %v3303_v35  ;;  %v1165_v21 = vadd.f32 %v1161_v57, %v1154_v40  ;;  %vm1079_vm9 = vmand %vm4173_vm2, %vm3923_vm12  ;;  %2531 = vrot.lane.b32.xlu0 %v3321_v48, %s3126_s30  ;;  %s4460_s30 = sld [smem:[#allocation4 + $0x56]] }
 0x13d   : > { %v1201_v26 = vmul.f32 %v1200_v29, %v1194_v9  ;;  %v967_v23 = vadd.f32 %v966_v56, %v923_v27  ;;  %v1166_v6 = vadd.f32 %v1162_v59, %v1155_v39  ;;  %v1198_v52 = vmul.f32 %v1197_v28, %v1194_v9  ;;  %v1277_v32 = vpop.permute.xlu0 %1276 }
 0x13e   : > { %v1202_v46 = vmul.f32 %v1200_v29, %v1193_v34  ;;  %v1133_v18 = vrot.slane %v1126_v12, %v3303_v35  ;;  %v1199_v7 = vmul.f32 %v1197_v28, %v1193_v34  ;;  %vm5237_vm6 = vcmp.lt.s32.totalorder %v3466_v58, 15  ;;  %v1279_v22 = vpop.permute.xlu1 %1278  ;;  %p5327_p0 = scmp.ne.s32.totalorder %s5325_s6, 0 }
 0x13f   : > { %v1205_v63 = vrot.slane %v1201_v26, 1  ;;  %v1238_v5 = vsel %vm5237_vm6, %v1235_v1, %v1233_v61  ;;  %vm1368_vm15 = vcmp.lt.s32.totalorder %v3466_v58, 3  ;;  %v1011_v8 = vadd.f32 %v1010_v25, %v967_v23  ;;  %vm5239_vm7 = vmmov %vm5237_vm6 }
 0x140   : > { %v1170_v0 = vcombine.low %v1165_v21, %v1166_v6  ;;  %v1206_v56 = vrot.slane %v1202_v46, 1  ;;  %v1237_v29 = vsel %vm5239_vm7, %v1233_v61, %v1235_v1  ;;  %v1054_v28 = vsel %vm1035_vm0, %v1052_v30, 0.0  ;;  %vm1167_vm6 = vmand %vm4173_vm2, %vm3751_vm13 }
 0x141   : > { %v1098_v49 = vsel %vm1079_vm9, %v1096_v10, 0.0  ;;  %v1209_v60 = vadd.f32 %v1205_v63, %v1198_v52  ;;  %v1245_v14 = vmul.f32 %v1244_v36, %v1238_v5  ;;  %v1055_v48 = vadd.f32 %v1054_v28, %v1011_v8  ;;  %vm1123_vm9 = vmand %vm4173_vm2, %vm3739_vm11  ;;  %v1321_v57 = vpop.permute.xlu0 %1320 }
 0x142   : > { %v1177_v17 = vrot.slane %v1170_v0, %v3303_v35  ;;  %v1210_v31 = vadd.f32 %v1206_v56, %v1199_v7  ;;  %v5240_v53 = vstv %s5238_s7  ;;  %v1246_v25 = vmul.f32 %v1244_v36, %v1237_v29  ;;  %v1323_v43 = vpop.permute.xlu1 %1322  ;;  %s4716_s7 = sld [smem:[#allocation4 + $0x5a]] }
 0x143   : > { %v1242_v47 = vmul.f32 %v5240_v53, %v1238_v5  ;;  %v1249_v11 = vrot.slane %v1245_v14, 1  ;;  %vm5241_vm8 = vcmp.lt.s32.totalorder %v3466_v58, 14  ;;  %v1099_v62 = vadd.f32 %v1098_v49, %v1055_v48 }
 0x144   : > { %v1281_v41 = vsel %vm5241_vm8, %v1277_v32, %v1279_v22  ;;  %vm5242_vm7 = vmmov %vm5241_vm8  ;;  %v1140_v37 = vrot.slane %v1133_v18, %v3303_v35  ;;  %v1214_v3 = vcombine.low %v1209_v60, %v1210_v31  ;;  %v1883_v13 = vstv %s4187_s12  ;;  %s4681_s12 = sld [smem:[#allocation4 + $0x29]] }
 0x145   : > { %v1282_v50 = vsel %vm5242_vm7, %v1279_v22, %v1277_v32  ;;  %v5243_v36 = vmov %v5240_v53  ;;  %v1250_v19 = vrot.slane %v1246_v25, 1  ;;  %v1253_v2 = vadd.f32 %v1249_v11, %v1242_v47  ;;  %v1365_v0 = vpop.permute.xlu0 %1364 }
 0x146   : > { %v1243_v20 = vmul.f32 %v5243_v36, %v1237_v29  ;;  %v5244_v40 = vstv %s3487_s26  ;;  %v1184_v34 = vrot.slane %v1177_v17, %v3303_v35  ;;  %v1221_v9 = vrot.slane %v1214_v3, %v3303_v35  ;;  %v1367_v8 = vpop.permute.xlu1 %1366  ;;  %s5257_s26 = sld [smem:[#allocation46_spill]] }
 0x147   : > { %v1289_v24 = vmul.f32 %v5244_v40, %v1282_v50  ;;  %v5245_v27 = vstv %s3485_s24  ;;  %v5246_v39 = vmov %v5244_v40  ;;  %vm5247_vm8 = vcmp.lt.s32.totalorder %v3466_v58, 13  ;;  %s4293_s24 = sld [smem:[#allocation4 + $0x22]] }
 0x148   : > { %v1286_v12 = vmul.f32 %v5245_v27, %v1282_v50  ;;  %v1290_v59 = vmul.f32 %v5246_v39, %v1281_v41  ;;  %v1254_v30 = vadd.f32 %v1250_v19, %v1243_v20  ;;  %v1325_v21 = vsel %vm5247_vm8, %v1321_v57, %v1323_v43  ;;  %vm5248_vm7 = vmmov %vm5247_vm8 }
 0x149   : > { %v1293_v10 = vrot.slane %v1289_v24, 1  ;;  %v1326_v26 = vsel %vm5248_vm7, %v1323_v43, %v1321_v57  ;;  %vm1456_vm0 = vcmp.lt.s32.totalorder %v3466_v58, 1  ;;  %v1142_v1 = vsel %vm1123_vm9, %v1140_v37, 0.0  ;;  %vm1211_vm8 = vmand %vm4173_vm2, %vm3609_vm10  ;;  %v1409_v19 = vpop.permute.xlu0 %1408 }
 0x14a   : > { %v1228_v61 = vrot.slane %v1221_v9, %v3303_v35  ;;  %v5249_v23 = vmov %v5245_v27  ;;  %v1294_v52 = vrot.slane %v1290_v59, 1  ;;  %v1143_v46 = vadd.f32 %v1142_v1, %v1099_v62  ;;  %v1411_v20 = vpop.permute.xlu1 %1410 }
 0x14b   : > { %v1287_v6 = vmul.f32 %v5249_v23, %v1281_v41  ;;  %v1258_v18 = vcombine.low %v1253_v2, %v1254_v30  ;;  %v1297_v7 = vadd.f32 %v1293_v10, %v1286_v12  ;;  %v5250_v63 = vstv %s3496_s28  ;;  %s4320_s28 = sld [smem:[#allocation4 + $0x53]] }
 0x14c   : > { %v1333_v5 = vmul.f32 %v5250_v63, %v1326_v26  ;;  %v1186_v56 = vsel %vm1167_vm6, %v1184_v34, 0.0  ;;  %v5251_v28 = vmov %v5250_v63  ;;  %v1369_v60 = vsel %vm1368_vm15, %v1365_v0, %v1367_v8  ;;  %vm1255_vm6 = vmand %vm4173_vm2, %vm3841_vm3 }
 0x14d   : > { %v1298_v29 = vadd.f32 %v1294_v52, %v1287_v6  ;;  %v1334_v49 = vmul.f32 %v5251_v28, %v1325_v21  ;;  %v1265_v14 = vrot.slane %v1258_v18, %v3303_v35  ;;  %v5252_v22 = vstv %s3494_s11  ;;  %s5265_s11 = sld [smem:[#allocation54_spill]]  ;;  %v1453_v18 = vpop.permute.xlu0 %1452 }
 0x14e   : > { %v1330_v32 = vmul.f32 %v5252_v22, %v1326_v26  ;;  %v1337_v48 = vrot.slane %v1333_v5, 1  ;;  %v1370_v17 = vsel %vm1368_vm15, %v1367_v8, %v1365_v0  ;;  %vm1523_vm9 = vcmp.lt.s32.totalorder %v3466_v58, 127 }
 0x14f   : > { %v1230_v31 = vsel %vm1211_vm8, %v1228_v61, 0.0  ;;  %v1302_v53 = vcombine.low %v1297_v7, %v1298_v29  ;;  %v5254_v47 = vmov %v5252_v22  ;;  %v1338_v11 = vrot.slane %v1334_v49, 1 }
 0x150   : > { %v1331_v25 = vmul.f32 %v5254_v47, %v1325_v21  ;;  %v1272_v41 = vrot.slane %v1265_v14, %v3303_v35  ;;  %v1341_v50 = vadd.f32 %v1337_v48, %v1330_v32  ;;  %v5255_v62 = vstv %s3506_s19  ;;  %s5262_s19 = sld [smem:[#allocation44_spill]] }
 0x151   : > { %v1377_v37 = vmul.f32 %v5255_v62, %v1370_v17  ;;  %v5256_v3 = vmov %v5255_v62  ;;  %v1309_v2 = vrot.slane %v1302_v53, %v3303_v35  ;;  %vm5258_vm15 = vcmp.lt.s32.totalorder %v3466_v58, 2 }
 0x152   : > { %v1378_v36 = vmul.f32 %v5256_v3, %v1369_v60  ;;  %v1342_v40 = vadd.f32 %v1338_v11, %v1331_v25  ;;  %v1413_v24 = vsel %vm5258_vm15, %v1409_v19, %v1411_v20  ;;  %vm5259_vm7 = vmmov %vm5258_vm15  ;;  %v5260_v57 = vstv %s5253_s10  ;;  %s4728_s10 = sld [smem:[#allocation4 + $0x2a]] }
 0x153   : > { %v1414_v43 = vsel %vm5259_vm7, %v1411_v20, %v1409_v19  ;;  %v1374_v34 = vmul.f32 %v5260_v57, %v1370_v17  ;;  %v5261_v9 = vmov %v5260_v57  ;;  %v1381_v12 = vrot.slane %v1377_v37, 1 }
 0x154   : > { %v1375_v27 = vmul.f32 %v5261_v9, %v1369_v60  ;;  %v1382_v39 = vrot.slane %v1378_v36, 1  ;;  %vm1567_vm8 = vcmp.lt.s32.totalorder %v3466_v58, 126  ;;  %v1187_v59 = vadd.f32 %v1186_v56, %v1143_v46  ;;  %v1455_v46 = vpop.permute.xlu1 %1454 }
 0x155   : > { %v1274_v30 = vsel %vm1255_vm6, %v1272_v41, 0.0  ;;  %v1316_v10 = vrot.slane %v1309_v2, %v3303_v35  ;;  %v1346_v21 = vcombine.low %v1341_v50, %v1342_v40  ;;  %v1385_v26 = vadd.f32 %v1381_v12, %v1374_v34  ;;  %vm1299_vm6 = vmand %vm4173_vm2, %vm3881_vm5  ;;  %v1520_v50 = vpop.permute.xlu0 %1519 }
 0x156   : > { %v1386_v1 = vadd.f32 %v1382_v39, %v1375_v27  ;;  %v5263_v61 = vstv %s5257_s26  ;;  %v1231_v7 = vadd.f32 %v1230_v31, %v1187_v59  ;;  %v5266_v63 = vstv %s5262_s19  ;;  %s4771_s26 = sld [smem:[#allocation4 + $0x5c]]  ;;  %s4786_s19 = sld [smem:[#allocation4 + $0x2b]] }
 0x157   : > { %v1421_v23 = vmul.f32 %v5263_v61, %v1414_v43  ;;  %v5264_v6 = vmov %v5263_v61  ;;  %v1418_v5 = vmul.f32 %v5266_v63, %v1414_v43  ;;  %v1457_v8 = vsel %vm1456_vm0, %v1453_v18, %v1455_v46 }
 0x158   : > { %v1422_v52 = vmul.f32 %v5264_v6, %v1413_v24  ;;  %v1458_v0 = vsel %vm1456_vm0, %v1455_v46, %v1453_v18  ;;  %v1390_v56 = vcombine.low %v1385_v26, %v1386_v1  ;;  %v5268_v29 = vmov %v5266_v63  ;;  %v1522_v41 = vpop.permute.xlu1 %1521 }
 0x159   : > { %v1419_v28 = vmul.f32 %v5268_v29, %v1413_v24  ;;  %v1425_v49 = vrot.slane %v1421_v23, 1  ;;  %vm1611_vm15 = vcmp.lt.s32.totalorder %v3466_v58, 125  ;;  %v1275_v14 = vadd.f32 %v1274_v30, %v1231_v7  ;;  %v1564_v1 = vpop.permute.xlu0 %1563 }
 0x15a   : > { %v1426_v60 = vrot.slane %v1422_v52, 1  ;;  %v1353_v22 = vrot.slane %v1346_v21, %v3303_v35  ;;  %v5269_v32 = vstv %s5265_s11  ;;  %v1924_v17 = vstv %s4293_s24  ;;  %s4740_s24 = sld [smem:[#allocation4 + $0x5b]]  ;;  %s4804_s11 = sld [smem:[#allocation4 + $0x5d]] }
 0x15b   : > { %v1465_v48 = vmul.f32 %v5269_v32, %v1458_v0  ;;  %v1318_v31 = vsel %vm1299_vm6, %v1316_v10, 0.0  ;;  %v1429_v53 = vadd.f32 %v1425_v49, %v1418_v5  ;;  %v5271_v25 = vmov %v5269_v32 }
 0x15c   : > { %v1430_v47 = vadd.f32 %v1426_v60, %v1419_v28  ;;  %v1466_v11 = vmul.f32 %v5271_v25, %v1457_v8  ;;  %v5272_v62 = vstv %s5267_s22  ;;  %v1524_v36 = vsel %vm1523_vm9, %v1520_v50, %v1522_v41  ;;  %v1566_v26 = vpop.permute.xlu1 %1565  ;;  %s4818_s22 = sld [smem:[#allocation4 + $0x2d]] }
 0x15d   : > { %v1462_v37 = vmul.f32 %v5272_v62, %v1458_v0  ;;  %v1469_v3 = vrot.slane %v1465_v48, 1  ;;  %v1525_v20 = vsel %vm1523_vm9, %v1522_v41, %v1520_v50  ;;  %v1397_v19 = vrot.slane %v1390_v56, %v3303_v35  ;;  %vm1343_vm9 = vmand %vm4173_vm2, %vm3896_vm4 }
 0x15e   : > { %v1434_v2 = vcombine.low %v1429_v53, %v1430_v47  ;;  %v5273_v40 = vmov %v5272_v62  ;;  %v1470_v43 = vrot.slane %v1466_v11, 1  ;;  %vm1655_vm0 = vcmp.lt.s32.totalorder %v3466_v58, 115  ;;  %v1608_v53 = vpop.permute.xlu0 %1607  ;;  %vm1431_vm2 = vmand %vm3631_vm14, %vm3739_vm11 }
 0x15f   : > { %v1463_v24 = vmul.f32 %v5273_v40, %v1457_v8  ;;  %v1360_v57 = vrot.slane %v1353_v22, %v3303_v35  ;;  %v1473_v34 = vadd.f32 %v1469_v3, %v1462_v37  ;;  %v5275_v9 = vstv %s5270_s1  ;;  %s4820_s1 = sld [smem:[#allocation4 + $0x5e]] }
 0x160   : > { %v1532_v27 = vmul.f32 %v5275_v9, %v1524_v36  ;;  %v1927_v12 = vstv %s4320_s28  ;;  %v1319_v39 = vadd.f32 %v1318_v31, %v1275_v14  ;;  %v1441_v59 = vrot.slane %v1434_v2, %v3303_v35  ;;  %v1610_v31 = vpop.permute.xlu1 %1609  ;;  %s4802_s28 = sld [smem:[#allocation4 + $0x2c]] }
 0x161   : > { %v1474_v30 = vadd.f32 %v1470_v43, %v1463_v24  ;;  %v5276_v10 = vmov %v5275_v9  ;;  %v5277_v61 = vstv %s5274_s9  ;;  %v1568_v52 = vsel %vm1567_vm8, %v1564_v1, %v1566_v26  ;;  %s4839_s9 = sld [smem:[#allocation4 + $0x5f]] }
 0x162   : > { %v1533_v21 = vmul.f32 %v5276_v10, %v1525_v20  ;;  %v1529_v23 = vmul.f32 %v5277_v61, %v1524_v36  ;;  %v1536_v6 = vrot.slane %v1532_v27, 1  ;;  %v1569_v46 = vsel %vm1567_vm8, %v1566_v26, %v1564_v1  ;;  %vm1387_vm8 = vmand %vm3631_vm14, %vm3923_vm12  ;;  %v1652_v27 = vpop.permute.xlu0 %1651 }
 0x163   : > { %v1404_v18 = vrot.slane %v1397_v19, %v3303_v35  ;;  %v1478_v7 = vcombine.low %v1473_v34, %v1474_v30  ;;  %v5279_v63 = vmov %v5277_v61  ;;  %vm1699_vm7 = vcmp.lt.s32.totalorder %v3466_v58, 114 }
 0x164   : > { %v1530_v5 = vmul.f32 %v5279_v63, %v1525_v20  ;;  %v1537_v8 = vrot.slane %v1533_v21, 1  ;;  %v1362_v0 = vsel %vm1343_vm9, %v1360_v57, 0.0  ;;  %v1540_v56 = vadd.f32 %v1536_v6, %v1529_v23  ;;  %vm1475_vm9 = vmand %vm3631_vm14, %vm3751_vm13  ;;  %v1654_v9 = vpop.permute.xlu1 %1653 }
 0x165   : > { %v5280_v29 = vstv %s3566_s13  ;;  %v1448_v14 = vrot.slane %v1441_v59, %v3303_v35  ;;  %v1485_v22 = vrot.slane %v1478_v7, %v3303_v35  ;;  %v5282_v38 = vstv %s5278_s2  ;;  %s5285_s13 = sld [smem:[#allocation24_spill]]  ;;  %s4857_s2 = sld [smem:[#allocation4 + $0x60]] }
 0x166   : > { %v1576_v28 = vmul.f32 %v5280_v29, %v1568_v52  ;;  %v5281_v49 = vmov %v5280_v29  ;;  %v1541_v32 = vadd.f32 %v1537_v8, %v1530_v5  ;;  %v1573_v48 = vmul.f32 %v5282_v38, %v1568_v52 }
 0x167   : > { %v1577_v60 = vmul.f32 %v5281_v49, %v1569_v46  ;;  %v5284_v47 = vmov %v5282_v38  ;;  %v1612_v50 = vsel %vm1611_vm15, %v1608_v53, %v1610_v31  ;;  %v1363_v62 = vadd.f32 %v1362_v0, %v1319_v39  ;;  %v4441_v0 = vld [vmem:[%s5290_s14] ss:$2 sm:$0x3] }
 0x168   : > { %v1574_v25 = vmul.f32 %v5284_v47, %v1569_v46  ;;  %v1580_v11 = vrot.slane %v1576_v28, 1  ;;  %v1406_v37 = vsel %vm1387_vm8, %v1404_v18, 0.0  ;;  %v1492_v3 = vrot.slane %v1485_v22, %v3303_v35 }
 0x169   : > { %v1581_v41 = vrot.slane %v1577_v60, 1  ;;  %v1613_v36 = vsel %vm1611_vm15, %v1610_v31, %v1608_v53  ;;  %vm1743_vm6 = vcmp.lt.s32.totalorder %v3466_v58, 113  ;;  %v1545_v20 = vcombine.low %v1540_v56, %v1541_v32  ;;  %v1698_v60 = vpop.permute.xlu1 %1697 }
 0x16a   : > { %v1584_v19 = vadd.f32 %v1580_v11, %v1573_v48  ;;  %v5286_v40 = vstv %s5283_s4  ;;  %v1450_v43 = vsel %vm1431_vm2, %v1448_v14, 0.0  ;;  %v1968_v39 = vstv %s4366_s3  ;;  %v1696_v14 = vpop.permute.xlu0 %1695  ;;  %vm1542_vm2 = vmand %vm3631_vm14, %vm3841_vm3  ;;  %s4842_s3 = sld [smem:[#allocation4 + $0x2e]]  ;;  %s4869_s4 = sld [smem:[#allocation4 + $0x30]] }
 0x16b   : > { %v1585_v2 = vadd.f32 %v1581_v41, %v1574_v25  ;;  %v1620_v24 = vmul.f32 %v5286_v40, %v1612_v50  ;;  %v5287_v57 = vmov %v5286_v40  ;;  %v1971_v59 = vstv %s4368_s0  ;;  %s4854_s0 = sld [smem:[#allocation4 + $0x2f]] }
 0x16c   : > { %v1621_v34 = vmul.f32 %v5287_v57, %v1613_v36  ;;  %v1407_v30 = vadd.f32 %v1406_v37, %v1363_v62  ;;  %v5288_v10 = vstv %s5285_s13  ;;  %v1656_v1 = vsel %vm1655_vm0, %v1652_v27, %v1654_v9  ;;  %s5323_s13 = sld [smem:[#allocation23_spill]] }
 0x16d   : > { %v1617_v21 = vmul.f32 %v5288_v10, %v1612_v50  ;;  %v1624_v26 = vrot.slane %v1620_v24, 1  ;;  %v1494_v61 = vsel %vm1475_vm9, %v1492_v3, 0.0  ;;  %v5289_v23 = vmov %v5288_v10 }
 0x16e   : > { %v1618_v6 = vmul.f32 %v5289_v23, %v1613_v36  ;;  %v1625_v52 = vrot.slane %v1621_v34, 1  ;;  %v1657_v46 = vsel %vm1655_vm0, %v1654_v9, %v1652_v27  ;;  %v1451_v18 = vadd.f32 %v1450_v43, %v1407_v30  ;;  %v1742_v9 = vpop.permute.xlu1 %1741  ;;  %v1740_v27 = vpop.permute.xlu0 %1739 }
 0x16f   : > { %v1552_v7 = vrot.slane %v1545_v20, %v3303_v35  ;;  %v1589_v63 = vcombine.low %v1584_v19, %v1585_v2  ;;  %v1628_v5 = vadd.f32 %v1624_v26, %v1617_v21  ;;  %vm1787_vm15 = vcmp.lt.s32.totalorder %v3466_v58, 112 }
 0x170   : > { %v1629_v8 = vadd.f32 %v1625_v52, %v1618_v6  ;;  %vm395_vm8 = vcmp.ge.s32.totalorder %v4441_v0, 4294967295  ;;  %vm396_vm0 = vcmp.lt.s32.totalorder %v4441_v0, 15  ;;  %v5291_v56 = vstv %s3598_s23  ;;  %s4458_s23 = sld [smem:[#allocation4 + $0x25]] }
 0x171   : > { %v1664_v29 = vmul.f32 %v5291_v56, %v1656_v1  ;;  %v5292_v28 = vmov %v5291_v56  ;;  %v2012_v22 = vstv %s4397_s17  ;;  %v1495_v32 = vadd.f32 %v1494_v61, %v1451_v18  ;;  %s4871_s17 = sld [smem:[#allocation4 + $0x61]] }
 0x172   : > { %v1665_v49 = vmul.f32 %v5292_v28, %v1657_v46  ;;  %v5293_v38 = vstv %s3590_s16  ;;  %v1700_v31 = vsel %vm1699_vm7, %v1696_v14, %v1698_v60  ;;  %v1701_v53 = vsel %vm1699_vm7, %v1698_v60, %v1696_v14  ;;  %s4614_s16 = sld [smem:[#allocation4 + $0x58]]  ;;  %s2705_s18 = sshll.u32 %s5323_s13, 1 }
 0x173   : > { %v1661_v48 = vmul.f32 %v5293_v38, %v1656_v1  ;;  %v1633_v47 = vcombine.low %v1628_v5, %v1629_v8  ;;  %v5294_v25 = vmov %v5293_v38  ;;  %v1668_v41 = vrot.slane %v1664_v29, 1 }
 0x174   : > { %v1662_v11 = vmul.f32 %v5294_v25, %v1657_v46  ;;  %v1669_v50 = vrot.slane %v1665_v49, 1  ;;  %v1559_v62 = vrot.slane %v1552_v7, %v3303_v35  ;;  %v1596_v37 = vrot.slane %v1589_v63, %v3303_v35  ;;  %v1786_v49 = vpop.permute.xlu1 %1785 }
 0x175   : > { %v5295_v3 = vstv %s3617_s21  ;;  %vm1831_vm7 = vcmp.lt.s32.totalorder %v3466_v58, 111  ;;  %v1672_v2 = vadd.f32 %v1668_v41, %v1661_v48  ;;  %v5297_v24 = vstv %s3615_s29  ;;  %s4489_s29 = sld [smem:[#allocation4 + $0x26]]  ;;  %s4491_s21 = sld [smem:[#allocation4 + $0x57]] }
 0x176   : > { %v1708_v36 = vmul.f32 %v5295_v3, %v1700_v31  ;;  %v5296_v20 = vmov %v5295_v3  ;;  %v1673_v40 = vadd.f32 %v1669_v50, %v1662_v11  ;;  %v1705_v43 = vmul.f32 %v5297_v24, %v1700_v31  ;;  %v1784_v31 = vpop.permute.xlu0 %1783 }
 0x177   : > { %v1709_v19 = vmul.f32 %v5296_v20, %v1701_v53  ;;  %v5298_v57 = vmov %v5297_v24  ;;  %v1744_v21 = vsel %vm1743_vm6, %v1740_v27, %v1742_v9  ;;  %v1745_v26 = vsel %vm1743_vm6, %v1742_v9, %v1740_v27  ;;  %vm1586_vm6 = vmand %vm3631_vm14, %vm3881_vm5 }
 0x178   : > { %v1706_v34 = vmul.f32 %v5298_v57, %v1701_v53  ;;  %v1712_v30 = vrot.slane %v1708_v36, 1  ;;  %v1518_v1 = vadd.f32 %v3682_v51, %v1495_v32  ;;  %v1640_v61 = vrot.slane %v1633_v47, %v3303_v35 }
 0x179   : > { %v1713_v10 = vrot.slane %v1709_v19, 1  ;;  %v1677_v23 = vcombine.low %v1672_v2, %v1673_v40  ;;  %v2015_v6 = vstv %s4434_s5  ;;  %v5299_v18 = vstv %s3653_s15  ;;  %s4642_s15 = sld [smem:[#allocation4 + $0x28]]  ;;  %s5324_s5 = sld [smem:[#allocation16_spill]] }
 0x17a   : > { %v1716_v52 = vadd.f32 %v1712_v30, %v1705_v43  ;;  %v1752_v7 = vmul.f32 %v5299_v18, %v1744_v21  ;;  %v5300_v63 = vmov %v5299_v18  ;;  %v1561_v51 = vsel %vm1542_vm2, %v1559_v62, 0.0  ;;  %vm4519_vm2 = vmand %vm395_vm8, %vm396_vm0  ;;  %v1830_v43 = vpop.permute.xlu1 %1829 }
 0x17b   : > { %v1717_v46 = vadd.f32 %v1713_v10, %v1706_v34  ;;  %v1753_v5 = vmul.f32 %v5300_v63, %v1745_v26  ;;  %v1603_v8 = vrot.slane %v1596_v37, %v3303_v35  ;;  %v1684_v56 = vrot.slane %v1677_v23, %v3303_v35  ;;  %vm1674_vm8 = vmand %vm4519_vm2, %vm3923_vm12 }
 0x17c   : > { %v5301_v29 = vstv %s3638_s27  ;;  %v1756_v38 = vrot.slane %v1752_v7, 1  ;;  %v1788_v53 = vsel %vm1787_vm15, %v1784_v31, %v1786_v49  ;;  %v1789_v47 = vsel %vm1787_vm15, %v1786_v49, %v1784_v31  ;;  %s4524_s27 = sld [smem:[#allocation4 + $0x27]]  ;;  %vm1630_vm15 = vmand %vm3631_vm14, %vm3896_vm4 }
 0x17d   : > { %v1749_v28 = vmul.f32 %v5301_v29, %v1744_v21  ;;  %v1721_v60 = vcombine.low %v1716_v52, %v1717_v46  ;;  %v5302_v14 = vmov %v5301_v29  ;;  %v1757_v48 = vrot.slane %v1753_v5, 1  ;;  %v1828_v21 = vpop.permute.xlu0 %1827  ;;  %vm1718_vm14 = vmand %vm4519_vm2, %vm3739_vm11 }
 0x17e   : > { %v1750_v32 = vmul.f32 %v5302_v14, %v1745_v26  ;;  %v2056_v25 = vstv %s4458_s23  ;;  %v2059_v11 = vstv %s4460_s30  ;;  %v1562_v41 = vadd.f32 %v1561_v51, %v1518_v1  ;;  %v1874_v29 = vpop.permute.xlu1 %1873  ;;  %s244_s23 = scalar_lea.vmem [#allocation9], %s2705_s18 }
 0x17f   : > { %v1647_v50 = vrot.slane %v1640_v61, %v3303_v35  ;;  %v1760_v37 = vadd.f32 %v1756_v38, %v1749_v28  ;;  %vm1919_vm9 = vcmp.lt.s32.totalorder %v3466_v58, 109  ;;  %v1605_v36 = vsel %vm1586_vm6, %v1603_v8, 0.0  ;;  %s2812_s14 = sshll.u32 %s5324_s5, 5  ;;  %s2601_s30 = sshll.u32 %s244_s23, 4  ;;  %s4936_s30 = int_to_ptr.vmem [resolvable:$true] %s2601_s30 }
 0x180   : > { %v1761_v3 = vadd.f32 %v1757_v48, %v1750_v32  ;;  %v1691_v20 = vrot.slane %v1684_v56, %v3303_v35  ;;  %v5305_v19 = vstv %s3670_s20  ;;  %v1728_v57 = vrot.slane %v1721_v60, %v3303_v35  ;;  %s5309_s20 = sld [smem:[#allocation25_spill]] }
 0x181   : > { %v1796_v2 = vmul.f32 %v5305_v19, %v1788_v53  ;;  %v5306_v40 = vmov %v5305_v19  ;;  %v5307_v9 = vstv %s3655_s25  ;;  %v1832_v61 = vsel %vm1831_vm7, %v1828_v21, %v1830_v43  ;;  %v1872_v38 = vpop.permute.xlu0 %1871  ;;  %s5316_s25 = sld [smem:[#allocation27_spill]] }
 0x182   : > { %v1797_v24 = vmul.f32 %v5306_v40, %v1789_v47  ;;  %v1765_v34 = vcombine.low %v1760_v37, %v1761_v3  ;;  %v1793_v27 = vmul.f32 %v5307_v9, %v1788_v53  ;;  %v5308_v30 = vmov %v5307_v9 }
 0x183   : > { %v1794_v10 = vmul.f32 %v5308_v30, %v1789_v47  ;;  %v1800_v26 = vrot.slane %v1796_v2, 1  ;;  %v1833_v23 = vsel %vm1831_vm7, %v1830_v43, %v1828_v21  ;;  %v1606_v52 = vadd.f32 %v1605_v36, %v1562_v41 }
 0x184   : > { %v1801_v1 = vrot.slane %v1797_v24, 1  ;;  %v1649_v46 = vsel %vm1630_vm15, %v1647_v50, 0.0  ;;  %vm1963_vm0 = vcmp.lt.s32.totalorder %v3466_v58, 99  ;;  %v2100_v18 = vstv %s4489_s29  ;;  %v1918_v24 = vpop.permute.xlu1 %1917 }
 0x185   : > { %v2103_v7 = vstv %s4491_s21  ;;  %v1772_v63 = vrot.slane %v1765_v34, %v3303_v35  ;;  %v1804_v5 = vadd.f32 %v1800_v26, %v1793_v27  ;;  %v5310_v8 = vstv %s3689_s8  ;;  %v1916_v27 = vpop.permute.xlu0 %1915  ;;  %s4644_s8 = sld [smem:[#allocation4 + $0x59]] }
 0x186   : > { %v1805_v51 = vadd.f32 %v1801_v1, %v1794_v10  ;;  %v1840_v56 = vmul.f32 %v5310_v8, %v1832_v61  ;;  %v1693_v28 = vsel %vm1674_vm8, %v1691_v20, 0.0  ;;  %v1735_v16 = vrot.slane %v1728_v57, %v3303_v35  ;;  %vm1762_vm8 = vmand %vm4519_vm2, %vm3751_vm13 }
 0x187   : > { %v5311_v49 = vstv %s5309_s20  ;;  %v5312_v14 = vmov %v5310_v8  ;;  %vm5313_vm7 = vcmp.lt.s32.totalorder %v3466_v58, 110  ;;  %v1650_v41 = vadd.f32 %v1649_v46, %v1606_v52 }
 0x188   : > { %v1837_v60 = vmul.f32 %v5311_v49, %v1832_v61  ;;  %v1841_v32 = vmul.f32 %v5312_v14, %v1833_v23  ;;  %v1809_v48 = vcombine.low %v1804_v5, %v1805_v51  ;;  %v1844_v31 = vrot.slane %v1840_v56, 1  ;;  %vm5314_vm6 = vmmov %vm5313_vm7  ;;  %v1962_v56 = vpop.permute.xlu1 %1961 }
 0x189   : > { %v1876_v53 = vsel %vm5313_vm7, %v1872_v38, %v1874_v29  ;;  %v1877_v47 = vsel %vm5314_vm6, %v1874_v29, %v1872_v38  ;;  %v5315_v50 = vmov %v5311_v49  ;;  %v2144_v36 = vstv %s4524_s27  ;;  %vm1806_vm7 = vmand %vm4519_vm2, %vm3609_vm10  ;;  %s5326_s27 = sld [smem:[#allocation62_spill]] }
 0x18a   : > { %v1838_v37 = vmul.f32 %v5315_v50, %v1833_v23  ;;  %v1845_v3 = vrot.slane %v1841_v32, 1  ;;  %v1779_v20 = vrot.slane %v1772_v63, %v3303_v35  ;;  %v1816_v19 = vrot.slane %v1809_v48, %v3303_v35 }
 0x18b   : > { %v1848_v2 = vadd.f32 %v1844_v31, %v1837_v60  ;;  %v1884_v40 = vmul.f32 %v1883_v13, %v1876_v53  ;;  %vm2007_vm15 = vcmp.lt.s32.totalorder %v3466_v58, 98  ;;  %v1694_v43 = vadd.f32 %v1693_v28, %v1650_v41  ;;  %v1960_v60 = vpop.permute.xlu0 %1959 }
 0x18c   : > { %v1737_v57 = vsel %vm1718_vm14, %v1735_v16, 0.0  ;;  %v1849_v34 = vadd.f32 %v1845_v3, %v1838_v37  ;;  %v1885_v9 = vmul.f32 %v1883_v13, %v1877_v47  ;;  %v5317_v30 = vstv %s5316_s25  ;;  %v2006_v3 = vpop.permute.xlu1 %2005  ;;  %s2587_s25 = scalar_lea.sflag [#allocation6], %s5323_s13 }
 0x18d   : > { %v1881_v10 = vmul.f32 %v5317_v30, %v1876_v53  ;;  %v1888_v21 = vrot.slane %v1884_v40, 1  ;;  %v1920_v26 = vsel %vm1919_vm9, %v1916_v27, %v1918_v24  ;;  %v1921_v1 = vsel %vm1919_vm9, %v1918_v24, %v1916_v27  ;;  %vm1850_vm9 = vmand %vm4519_vm2, %vm3841_vm3 }
 0x18e   : > { %v1823_v61 = vrot.slane %v1816_v19, %v3303_v35  ;;  %v1853_v23 = vcombine.low %v1848_v2, %v1849_v34  ;;  %v5318_v52 = vmov %v5317_v30  ;;  %v1889_v63 = vrot.slane %v1885_v9, 1 }
 0x18f   : > { %v1882_v46 = vmul.f32 %v5318_v52, %v1877_v47  ;;  %vm2051_vm14 = vcmp.lt.s32.totalorder %v3466_v58, 97  ;;  %v1781_v13 = vsel %vm1762_vm8, %v1779_v20, 0.0  ;;  %v1892_v5 = vadd.f32 %v1888_v21, %v1881_v10  ;;  %v2004_v24 = vpop.permute.xlu0 %2003  ;;  %s4934_s20 = scalar_lea.hbm %s5326_s27, %s2812_s14 }
 0x190   : > { %v1928_v51 = vmul.f32 %v1927_v12, %v1920_v26  ;;  %v1929_v8 = vmul.f32 %v1927_v12, %v1921_v1  ;;  %v1860_v29 = vrot.slane %v1853_v23, %v3303_v35  ;;  %v1925_v16 = vmul.f32 %v1924_v17, %v1920_v26 }
 0x191   : > { %v1893_v28 = vadd.f32 %v1889_v63, %v1882_v46  ;;  %v1926_v49 = vmul.f32 %v1924_v17, %v1921_v1  ;;  %v1964_v38 = vsel %vm1963_vm0, %v1960_v60, %v1962_v56  ;;  %v1965_v12 = vsel %vm1963_vm0, %v1962_v56, %v1960_v60  ;;  %v2050_v1 = vpop.permute.xlu1 %2049 }
 0x192   : > { %v1932_v14 = vrot.slane %v1928_v51, 1  ;;  %v1933_v32 = vrot.slane %v1929_v8, 1  ;;  %v1738_v48 = vadd.f32 %v1737_v57, %v1694_v43  ;;  %v1825_v31 = vsel %vm1806_vm7, %v1823_v61, 0.0  ;;  %vm1894_vm7 = vmand %vm4519_vm2, %vm3881_vm5 }
 0x193   : > { %v1867_v17 = vrot.slane %v1860_v29, %v3303_v35  ;;  %v1897_v53 = vcombine.low %v1892_v5, %v1893_v28  ;;  %vm2095_vm6 = vcmp.lt.s32.totalorder %v3466_v58, 96  ;;  %vm398_vm0 = vcmp.ge.s32.totalorder %v4441_v0, 4294967294 }
 0x194   : > { %v1936_v47 = vadd.f32 %v1932_v14, %v1925_v16  ;;  %v1937_v41 = vadd.f32 %v1933_v32, %v1926_v49  ;;  %vm399_vm8 = vcmp.lt.s32.totalorder %v4441_v0, 14  ;;  %v1972_v50 = vmul.f32 %v1971_v59, %v1964_v38 }
 0x195   : > { %v1973_v37 = vmul.f32 %v1971_v59, %v1965_v12  ;;  %v1782_v20 = vadd.f32 %v1781_v13, %v1738_v48  ;;  %v1904_v19 = vrot.slane %v1897_v53, %v3303_v35  ;;  %v1969_v2 = vmul.f32 %v1968_v39, %v1964_v38  ;;  %v2048_v13 = vpop.permute.xlu0 %2047  ;;  %v2094_v60 = vpop.permute.xlu1 %2093 }
 0x196   : > { %v1970_v40 = vmul.f32 %v1968_v39, %v1965_v12  ;;  %v1869_v59 = vsel %vm1850_vm9, %v1867_v17, 0.0  ;;  %v1941_v43 = vcombine.low %v1936_v47, %v1937_v41  ;;  %v1976_v57 = vrot.slane %v1972_v50, 1 }
 0x197   : > { %v1977_v34 = vrot.slane %v1973_v37, 1  ;;  %v1826_v9 = vadd.f32 %v1825_v31, %v1782_v20  ;;  %v1911_v39 = vrot.slane %v1904_v19, %v3303_v35  ;;  %v2008_v27 = vsel %vm2007_vm15, %v2004_v24, %v2006_v3 }
 0x198   : > { %v2009_v30 = vsel %vm2007_vm15, %v2006_v3, %v2004_v24  ;;  %vm2139_vm9 = vcmp.lt.s32.totalorder %v3466_v58, 95  ;;  %v1948_v10 = vrot.slane %v1941_v43, %v3303_v35  ;;  %v1980_v21 = vadd.f32 %v1976_v57, %v1969_v2  ;;  %vm1938_vm15 = vmand %vm4519_vm2, %vm3896_vm4 }
 0x199   : > { %v1981_v26 = vadd.f32 %v1977_v34, %v1970_v40  ;;  %v2147_v61 = vstv %s4614_s16  ;;  %v1870_v23 = vadd.f32 %v1869_v59, %v1826_v9  ;;  %v2013_v52 = vmul.f32 %v2012_v22, %v2008_v27  ;;  %v2092_v17 = vpop.permute.xlu0 %2091  ;;  %v2138_v59 = vpop.permute.xlu1 %2137  ;;  %s2987_s16 = scalar_lea.vmem %s4936_s30, 32 }
 0x19a   : > { %v2016_v46 = vmul.f32 %v2015_v6, %v2008_v27  ;;  %v2017_v63 = vmul.f32 %v2015_v6, %v2009_v30  ;;  %v1913_v5 = vsel %vm1894_vm7, %v1911_v39, 0.0  ;;  %v2014_v8 = vmul.f32 %v2012_v22, %v2009_v30  ;;  %p2988_p8 = scmp.ne.s32.totalorder %s4936_s30, %s2987_s16 }
 0x19b   : > { %v1985_v51 = vcombine.low %v1980_v21, %v1981_v26  ;;  %v2052_v56 = vsel %vm2051_vm14, %v2048_v13, %v2050_v1  ;;  %v1955_v29 = vrot.slane %v1948_v10, %v3303_v35  ;;  %v2053_v49 = vsel %vm2051_vm14, %v2050_v1, %v2048_v13  ;;  %vm4710_vm14 = vmand %vm398_vm0, %vm399_vm8 }
 0x19c   : > { %v2020_v28 = vrot.slane %v2016_v46, 1  ;;  %v2021_v16 = vrot.slane %v2017_v63, 1  ;;  %v2060_v6 = vmul.f32 %v2059_v11, %v2052_v56  ;;  %vm2183_vm7 = vcmp.lt.s32.totalorder %v3466_v58, 94  ;;  %vm1982_vm2 = vmand %vm4710_vm14, %vm3923_vm12  ;;  %p2989_p2 = pnand %p2988_p8, %p5327_p0 }
 0x19d   : > { %v1992_v22 = vrot.slane %v1985_v51, %v3303_v35  ;;  %v2188_v14 = vstv %s4642_s15  ;;  %v2191_v32 = vstv %s4644_s8  ;;  %v1914_v38 = vadd.f32 %v1913_v5, %v1870_v23  ;;  %v2182_v46 = vpop.permute.xlu1 %2181  ;;  %vm2026_vm0 = vmand %vm4710_vm14, %vm3739_vm11  ;;  %s3127_s15 = smov [#allocation9]  }
 0x19e   : > { %v2024_v12 = vadd.f32 %v2020_v28, %v2013_v52  ;;  %v2025_v48 = vadd.f32 %v2021_v16, %v2014_v8  ;;  %v2061_v31 = vmul.f32 %v2059_v11, %v2053_v49  ;;  %v2057_v53 = vmul.f32 %v2056_v25, %v2052_v56  ;;  %p2990_p5 = pneg %p2989_p2  ;;  %s2991_s8 = sshll.u32 %s3127_s15, 4  ;;  %s2992_s8 = int_to_ptr.vmem [resolvable:$false] %s2991_s8 }
 0x19f   : > { %v2064_v47 = vrot.slane %v2060_v6, 1  ;;  %v2096_v41 = vsel %vm2095_vm6, %v2092_v17, %v2094_v60  ;;  %v2097_v50 = vsel %vm2095_vm6, %v2094_v60, %v2092_v17  ;;  %v1957_v37 = vsel %vm1938_vm15, %v1955_v29, 0.0  ;;  %p2994_p4 = scmp.lt.s32.totalorder %s4936_s30, %s2992_s8 }
 0x1a0   : > { %v2029_v3 = vcombine.low %v2024_v12, %v2025_v48  ;;  %v2058_v20 = vmul.f32 %v2056_v25, %v2053_v49  ;;  %v2065_v19 = vrot.slane %v2061_v31, 1  ;;  %v1999_v62 = vrot.slane %v1992_v22, %v3303_v35  ;;  %v2136_v25 = vpop.permute.xlu0 %2135 }
 0x1a1   : > { %v2068_v2 = vadd.f32 %v2064_v47, %v2057_v53  ;;  %v2104_v40 = vmul.f32 %v2103_v7, %v2096_v41  ;;  %v2105_v24 = vmul.f32 %v2103_v7, %v2097_v50  ;;  %v2101_v34 = vmul.f32 %v2100_v18, %v2096_v41  ;;  %v2226_v12 = vpop.permute.xlu1 %2225 }
 0x1a2   : > { %v2036_v43 = vrot.slane %v2029_v3, %v3303_v35  ;;  %v2069_v57 = vadd.f32 %v2065_v19, %v2058_v20  ;;  %v2102_v9 = vmul.f32 %v2100_v18, %v2097_v50  ;;  %v2140_v7 = vsel %vm2139_vm9, %v2136_v25, %v2138_v59 }
 0x1a3   : > { %v2108_v39 = vrot.slane %v2104_v40, 1  ;;  %v2109_v27 = vrot.slane %v2105_v24, 1  ;;  %v2141_v30 = vsel %vm2139_vm9, %v2138_v59, %v2136_v25  ;;  %v1958_v10 = vadd.f32 %v1957_v37, %v1914_v38  ;;  %vm2070_vm9 = vmand %vm4710_vm14, %vm3751_vm13 }
 0x1a4   : > { %v2073_v18 = vcombine.low %v2068_v2, %v2069_v57  ;;  %vm2227_vm6 = vcmp.lt.s32.totalorder %v3466_v58, 93  ;;  %v2232_v21 = vstv %s4681_s12  ;;  %v2148_v23 = vmul.f32 %v2147_v61, %v2140_v7  ;;  %v2180_v8 = vpop.permute.xlu0 %2179  ;;  %s2993_s12 = scalar_lea.vmem %s2992_s8, 64 }
 0x1a5   : > { %v2112_v26 = vadd.f32 %v2108_v39, %v2101_v34  ;;  %v2113_v1 = vadd.f32 %v2109_v27, %v2102_v9  ;;  %v2149_v52 = vmul.f32 %v2147_v61, %v2141_v30  ;;  %v2001_v63 = vsel %vm1982_vm2, %v1999_v62, 0.0  ;;  %v2270_v24 = vpop.permute.xlu1 %2269  ;;  %vm2158_vm2 = vmand %vm4710_vm14, %vm3841_vm3  ;;  %p2995_p9 = scmp.lt.s32.totalorder %s2993_s12, %s2987_s16 }
 0x1a6   : > { %v2043_v13 = vrot.slane %v2036_v43, %v3303_v35  ;;  %v2080_v5 = vrot.slane %v2073_v18, %v3303_v35  ;;  %v2145_v51 = vmul.f32 %v2144_v36, %v2140_v7  ;;  %v2146_v29 = vmul.f32 %v2144_v36, %v2141_v30 }
 0x1a7   : > { %v2117_v56 = vcombine.low %v2112_v26, %v2113_v1  ;;  %v2152_v28 = vrot.slane %v2148_v23, 1  ;;  %v2153_v16 = vrot.slane %v2149_v52, 1  ;;  %v2184_v61 = vsel %vm2183_vm7, %v2180_v8, %v2182_v46  ;;  %p2996_p13 = por %p2995_p9, %p2994_p4 }
 0x1a8   : > { %v2185_v49 = vsel %vm2183_vm7, %v2182_v46, %v2180_v8  ;;  %v2235_v22 = vstv %s4716_s7  ;;  %vm2271_vm8 = vcmp.lt.s32.totalorder %v3466_v58, 83  ;;  %v2002_v36 = vadd.f32 %v2001_v63, %v1958_v10  ;;  %v2224_v53 = vpop.permute.xlu0 %2223  ;;  %vm2114_vm7 = vmand %vm4710_vm14, %vm3609_vm10 }
 0x1a9   : > { %v2087_v6 = vrot.slane %v2080_v5, %v3303_v35  ;;  %v2156_v60 = vadd.f32 %v2152_v28, %v2145_v51  ;;  %v2157_v38 = vadd.f32 %v2153_v16, %v2146_v29  ;;  %v4764_v48 = vrot.slane %v2117_v56, %v3303_v35  ;;  %v2314_v63 = vpop.permute.xlu1 %2313  ;;  %p2997_p11 = pnand %p2996_p13, %p2990_p5 }
 0x1aa   : > { %v2192_v31 = vmul.f32 %v2191_v32, %v2184_v61  ;;  %v2193_v17 = vmul.f32 %v2191_v32, %v2185_v49  ;;  %v2276_v47 = vstv %s4728_s10  ;;  %v2045_v41 = vsel %vm2026_vm0, %v2043_v13, 0.0  ;;  %vm2202_vm0 = vmand %vm4710_vm14, %vm3881_vm5 }
 0x1ab   : > { %v2189_v50 = vmul.f32 %v2188_v14, %v2184_v61  ;;  %v2190_v37 = vmul.f32 %v2188_v14, %v2185_v49  ;;  %v2228_v3 = vsel %vm2227_vm6, %v2224_v53, %v2226_v12  ;;  %v2161_v20 = vcombine.low %v2156_v60, %v2157_v38 }
 0x1ac   : > { %v2196_v32 = vrot.slane %v2192_v31, 1  ;;  %v2197_v19 = vrot.slane %v2193_v17, 1  ;;  %v2229_v62 = vsel %vm2227_vm6, %v2226_v12, %v2224_v53  ;;  %v2089_v2 = vsel %vm2070_vm9, %v2087_v6, 0.0  ;;  %v2268_v9 = vpop.permute.xlu0 %2267 }
 0x1ad   : > { %v2236_v40 = vmul.f32 %v2235_v22, %v2228_v3  ;;  %v2279_v14 = vstv %s4740_s24  ;;  %vm2315_vm15 = vcmp.lt.s32.totalorder %v3466_v58, 82  ;;  %v2131_v59 = vrot.slane %v4764_v48, %v3303_v35  ;;  %v2358_v31 = vpop.permute.xlu1 %2357 }
 0x1ae   : > { %v2200_v43 = vadd.f32 %v2196_v32, %v2189_v50  ;;  %v2201_v57 = vadd.f32 %v2197_v19, %v2190_v37  ;;  %v2237_v34 = vmul.f32 %v2235_v22, %v2229_v62  ;;  %v2233_v25 = vmul.f32 %v2232_v21, %v2228_v3 }
 0x1af   : > { %v2240_v39 = vrot.slane %v2236_v40, 1  ;;  %v2272_v27 = vsel %vm2271_vm8, %v2268_v9, %v2270_v24  ;;  %v2273_v7 = vsel %vm2271_vm8, %v2270_v24, %v2268_v9  ;;  %v2168_v30 = vrot.slane %v2161_v20, %v3303_v35 }
 0x1b0   : > { %v2205_v10 = vcombine.low %v2200_v43, %v2201_v57  ;;  %v2234_v18 = vmul.f32 %v2232_v21, %v2229_v62  ;;  %v2241_v26 = vrot.slane %v2237_v34, 1  ;;  %v2277_v23 = vmul.f32 %v2276_v47, %v2272_v27  ;;  %v2312_v56 = vpop.permute.xlu0 %2311 }
 0x1b1   : > { %v2244_v1 = vadd.f32 %v2240_v39, %v2233_v25  ;;  %v2280_v52 = vmul.f32 %v2279_v14, %v2272_v27  ;;  %v2281_v46 = vmul.f32 %v2279_v14, %v2273_v7  ;;  %v2278_v51 = vmul.f32 %v2276_v47, %v2273_v7 }
 0x1b2   : > { %v2212_v13 = vrot.slane %v2205_v10, %v3303_v35  ;;  %v2245_v5 = vadd.f32 %v2241_v26, %v2234_v18  ;;  %v2323_v8 = vstv %s4771_s26  ;;  %v2316_v28 = vsel %vm2315_vm15, %v2312_v56, %v2314_v63 }
 0x1b3   : > { %v2284_v21 = vrot.slane %v2280_v52, 1  ;;  %v2285_v29 = vrot.slane %v2281_v46, 1  ;;  %v2317_v16 = vsel %vm2315_vm15, %v2314_v63, %v2312_v56  ;;  %v2046_v61 = vadd.f32 %v2045_v41, %v2002_v36 }
 0x1b4   : > { %v2175_v49 = vrot.slane %v2168_v30, %v3303_v35  ;;  %v2249_v22 = vcombine.low %v2244_v1, %v2245_v5  ;;  %v2320_v6 = vstv %s4786_s19  ;;  %v2324_v12 = vmul.f32 %v2323_v8, %v2316_v28  ;;  %v2356_v47 = vpop.permute.xlu0 %2355 }
 0x1b5   : > { %v2288_v60 = vadd.f32 %v2284_v21, %v2277_v23  ;;  %v2289_v38 = vadd.f32 %v2285_v29, %v2278_v51  ;;  %v2325_v48 = vmul.f32 %v2323_v8, %v2317_v16  ;;  %v2090_v17 = vadd.f32 %v2089_v2, %v2046_v61 }
 0x1b6   : > { %v2133_v36 = vsel %vm2114_vm7, %v2131_v59, 0.0  ;;  %v2219_v53 = vrot.slane %v2212_v13, %v3303_v35  ;;  %vm2359_vm6 = vcmp.lt.s32.totalorder %v3466_v58, 81  ;;  %v2321_v41 = vmul.f32 %v2320_v6, %v2316_v28  ;;  %v2402_v59 = vpop.permute.xlu1 %2401  ;;  %vm2246_vm7 = vmand %vm4710_vm14, %vm3896_vm4 }
 0x1b7   : > { %v2322_v50 = vmul.f32 %v2320_v6, %v2317_v16  ;;  %v2328_v37 = vrot.slane %v2324_v12, 1  ;;  %v2329_v3 = vrot.slane %v2325_v48, 1  ;;  %v2364_v20 = vstv %s4802_s28 }
 0x1b8   : > { %v2367_v32 = vstv %s4804_s11  ;;  %v2360_v19 = vsel %vm2359_vm6, %v2356_v47, %v2358_v31  ;;  %v2361_v62 = vsel %vm2359_vm6, %v2358_v31, %v2356_v47  ;;  %v2134_v2 = vadd.f32 %v2133_v36, %v2090_v17  ;;  %v2400_v25 = vpop.permute.xlu0 %2399 }
 0x1b9   : > { %v2177_v40 = vsel %vm2158_vm2, %v2175_v49, 0.0  ;;  %v2256_v24 = vrot.slane %v2249_v22, %v3303_v35  ;;  %v2293_v14 = vcombine.low %v2288_v60, %v2289_v38  ;;  %vm401_vm8 = vcmp.ge.s32.totalorder %v4441_v0, 4294967293 }
 0x1ba   : > { %vm402_vm9 = vcmp.lt.s32.totalorder %v4441_v0, 13  ;;  %v2332_v43 = vadd.f32 %v2328_v37, %v2321_v41  ;;  %v2333_v57 = vadd.f32 %v2329_v3, %v2322_v50  ;;  %v2368_v34 = vmul.f32 %v2367_v32, %v2360_v19  ;;  %v2446_v63 = vpop.permute.xlu1 %2445 }
 0x1bb   : > { %v2369_v9 = vmul.f32 %v2367_v32, %v2361_v62  ;;  %v2221_v39 = vsel %vm2202_vm0, %v2219_v53, 0.0  ;;  %v2365_v27 = vmul.f32 %v2364_v20, %v2360_v19  ;;  %v2366_v7 = vmul.f32 %v2364_v20, %v2361_v62  ;;  %vm4883_vm6 = vmand %vm401_vm8, %vm402_vm9 }
 0x1bc   : > { %vm2403_vm15 = vcmp.lt.s32.totalorder %v3466_v58, 80  ;;  %v2372_v30 = vrot.slane %v2368_v34, 1  ;;  %v2408_v18 = vstv %s4818_s22  ;;  %v2411_v26 = vstv %s4820_s1  ;;  %v2444_v56 = vpop.permute.xlu0 %2443  ;;  %vm2290_vm0 = vmand %vm4883_vm6, %vm3923_vm12 }
 0x1bd   : > { %v2373_v10 = vrot.slane %v2369_v9, 1  ;;  %v2178_v1 = vadd.f32 %v2177_v40, %v2134_v2  ;;  %v2263_v23 = vrot.slane %v2256_v24, %v3303_v35  ;;  %v2404_v52 = vsel %vm2403_vm15, %v2400_v25, %v2402_v59  ;;  %vm2334_vm9 = vmand %vm4883_vm6, %vm3739_vm11 }
 0x1be   : > { %v2405_v46 = vsel %vm2403_vm15, %v2402_v59, %v2400_v25  ;;  %v4860_v13 = vrot.slane %v2293_v14, %v3303_v35  ;;  %v2337_v5 = vcombine.low %v2332_v43, %v2333_v57  ;;  %v2376_v51 = vadd.f32 %v2372_v30, %v2365_v27  ;;  %v2490_v48 = vpop.permute.xlu1 %2489  ;;  %vm2378_vm12 = vmand %vm4883_vm6, %vm3751_vm13 }
 0x1bf   : > { %v2377_v8 = vadd.f32 %v2373_v10, %v2366_v7  ;;  %v2222_v21 = vadd.f32 %v2221_v39, %v2178_v1  ;;  %v2409_v29 = vmul.f32 %v2408_v18, %v2404_v52  ;;  %v2412_v28 = vmul.f32 %v2411_v26, %v2404_v52  ;;  %vm2422_vm11 = vmand %vm4883_vm6, %vm3609_vm10 }
 0x1c0   : > { %v2413_v16 = vmul.f32 %v2411_v26, %v2405_v46  ;;  %v2410_v49 = vmul.f32 %v2408_v18, %v2405_v46  ;;  %vm2447_vm2 = vcmp.lt.s32.totalorder %v3466_v58, 79  ;;  %v2455_v22 = vstv %s4839_s9  ;;  %v2488_v53 = vpop.permute.xlu0 %2487  ;;  %vm2466_vm13 = vmand %vm4883_vm6, %vm3841_vm3 }
 0x1c1   : > { %v2381_v61 = vcombine.low %v2376_v51, %v2377_v8  ;;  %v2416_v6 = vrot.slane %v2412_v28, 1  ;;  %v2452_v38 = vstv %s4842_s3  ;;  %v2448_v12 = vsel %vm2447_vm2, %v2444_v56, %v2446_v63  ;;  %vm2510_vm10 = vmand %vm4883_vm6, %vm3881_vm5 }
 0x1c2   : > { %v2417_v60 = vrot.slane %v2413_v16, 1  ;;  %v2265_v11 = vsel %vm2246_vm7, %v2263_v23, 0.0  ;;  %v2307_v31 = vrot.slane %v4860_v13, %v3303_v35  ;;  %v2344_v17 = vrot.slane %v2337_v5, %v3303_v35  ;;  %v2534_v34 = vpop.permute.xlu1 %2533  ;;  %vm2554_vm3 = vmand %vm4883_vm6, %vm3896_vm4 }
 0x1c3   : > { %v2449_v36 = vsel %vm2447_vm2, %v2446_v63, %v2444_v56  ;;  %v2388_v47 = vrot.slane %v2381_v61, %v3303_v35  ;;  %v2420_v41 = vadd.f32 %v2416_v6, %v2409_v29  ;;  %v2456_v37 = vmul.f32 %v2455_v22, %v2448_v12 }
 0x1c4   : > { %v2421_v50 = vadd.f32 %v2417_v60, %v2410_v49  ;;  %v2453_v3 = vmul.f32 %v2452_v38, %v2448_v12  ;;  %v2457_v20 = vmul.f32 %v2455_v22, %v2449_v36  ;;  %vm2491_vm14 = vcmp.lt.s32.totalorder %v3466_v58, 78  ;;  %v2532_v9 = vpop.permute.xlu0 %2531 }
 0x1c5   : > { %v2496_v32 = vstv %s4854_s0  ;;  %v2460_v2 = vrot.slane %v2456_v37, 1  ;;  %v2499_v40 = vstv %s4857_s2  ;;  %v2492_v24 = vsel %vm2491_vm14, %v2488_v53, %v2490_v48 }
 0x1c6   : > { %v2425_v62 = vcombine.low %v2420_v41, %v2421_v50  ;;  %v2351_v14 = vrot.slane %v2344_v17, %v3303_v35  ;;  %v2454_v59 = vmul.f32 %v2452_v38, %v2449_v36  ;;  %v2461_v43 = vrot.slane %v2457_v20, 1 }
 0x1c7   : > { %v2493_v57 = vsel %vm2491_vm14, %v2490_v48, %v2488_v53  ;;  %v2395_v25 = vrot.slane %v2388_v47, %v3303_v35  ;;  %v2464_v39 = vadd.f32 %v2460_v2, %v2453_v3  ;;  %v2497_v27 = vmul.f32 %v2496_v32, %v2492_v24 }
 0x1c8   : > { %v2432_v0 = vrot.slane %v2425_v62, %v3303_v35  ;;  %v2465_v7 = vadd.f32 %v2461_v43, %v2454_v59  ;;  %v2500_v30 = vmul.f32 %v2499_v40, %v2492_v24  ;;  %v2501_v10 = vmul.f32 %v2499_v40, %v2493_v57 }
 0x1c9   : > { %vm2535_vm8 = vcmp.lt.s32.totalorder %v3466_v58, 77  ;;  %v2498_v18 = vmul.f32 %v2496_v32, %v2493_v57  ;;  %v2540_v26 = vstv %s4869_s4  ;;  %v2543_v1 = vstv %s4871_s17 }
 0x1ca   : > { %v2536_v23 = vsel %vm2535_vm8, %v2532_v9, %v2534_v34  ;;  %v2469_v52 = vcombine.low %v2464_v39, %v2465_v7  ;;  %v2504_v46 = vrot.slane %v2500_v30, 1  ;;  %v2505_v33 = vrot.slane %v2501_v10, 1 }
 0x1cb   : > { %v2537_v63 = vsel %vm2535_vm8, %v2534_v34, %v2532_v9  ;;  %v2266_v13 = vadd.f32 %v2265_v11, %v2222_v21  ;;  %v2309_v5 = vsel %vm2290_vm0, %v2307_v31, 0.0  ;;  %v2544_v58 = vmul.f32 %v2543_v1, %v2536_v23 }
 0x1cc   : > { %v2353_v44 = vsel %vm2334_vm9, %v2351_v14, 0.0  ;;  %v2476_v51 = vrot.slane %v2469_v52, %v3303_v35  ;;  %v2508_v8 = vadd.f32 %v2504_v46, %v2497_v27  ;;  %v2509_v56 = vadd.f32 %v2505_v33, %v2498_v18 }
 0x1cd   : > { %v2439_v29 = vrot.slane %v2432_v0, %v3303_v35  ;;  %v2541_v28 = vmul.f32 %v2540_v26, %v2536_v23  ;;  %v2545_v16 = vmul.f32 %v2543_v1, %v2537_v63  ;;  %v2548_v61 = vrot.slane %v2544_v58, 1 }
 0x1ce   : > { %v2310_v49 = vadd.f32 %v2309_v5, %v2266_v13  ;;  %v2397_v22 = vsel %vm2378_vm12, %v2395_v25, 0.0  ;;  %v2513_v55 = vcombine.low %v2508_v8, %v2509_v56  ;;  %v2483_v21 = vrot.slane %v2476_v51, %v3303_v35 }
 0x1cf   : > { %v2542_v6 = vmul.f32 %v2540_v26, %v2537_v63  ;;  %v2549_v60 = vrot.slane %v2545_v16, 1  ;;  %v2552_v38 = vadd.f32 %v2548_v61, %v2541_v28  ;;  %v2441_v11 = vsel %vm2422_vm11, %v2439_v29, 0.0 }
 0x1d0   : > { %v2354_v12 = vadd.f32 %v2353_v44, %v2310_v49  ;;  %v2520_v48 = vrot.slane %v2513_v55, %v3303_v35  ;;  %v2485_v36 = vsel %vm2466_vm13, %v2483_v21, 0.0 }
 0x1d1   : > { %v2553_v31 = vadd.f32 %v2549_v60, %v2542_v6 }
 0x1d2   : > { %v2398_v45 = vadd.f32 %v2397_v22, %v2354_v12  ;;  %v2527_v17 = vrot.slane %v2520_v48, %v3303_v35 }
 0x1d3   : > { %v2557_v53 = vcombine.low %v2552_v38, %v2553_v31 }
 0x1d4   : > { %v2442_v4 = vadd.f32 %v2441_v11, %v2398_v45  ;;  %v2529_v47 = vsel %vm2510_vm10, %v2527_v17, 0.0 }
 0x1d5   : > { %v2564_v41 = vrot.slane %v2557_v53, %v3303_v35 }
 0x1d6   : > { %v2486_v50 = vadd.f32 %v2485_v36, %v2442_v4 }
 0x1d7   : > { %v2571_v15 = vrot.slane %v2564_v41, %v3303_v35 }
 0x1d8   : > { %v2530_v37 = vadd.f32 %v2529_v47, %v2486_v50 }
 0x1d9   : > { %v2573_v3 = vsel %vm2554_vm3, %v2571_v15, 0.0 }
 0x1da   : > { %v2574_v20 = vadd.f32 %v2573_v3, %v2530_v37 }
 0x1dc   : > { %v2805_v32 = vmul.f32 -1.442695, %v2574_v20 }
 0x1de   : > { %2937 = vpow2.f32 %v2805_v32 }
 0x1e8   : > { %v2938_v62 = vpop.eup %2937 }
 0x1e9   : > { %v2578_v2 = vadd.f32 1.0, %v2938_v62 }
 0x1eb   : > { %2939 = vrcp.f32 %v2578_v2 }
 0x1f5   : > { %v2940_v35 = vpop.eup %2939 }
 0x1f6   : > { %2585 = vst.msk [vmem:[%s244_s23] sm:$0x3] %vm3308_vm1, %v2940_v35 }
 0x1f7   : > { %3000 = shalt.err (!%p2997_p11)
}
 0x1f8   : > { %s3001_s7 = scalar_lea.hbm %s4934_s20, 32  ;;  %s3005_s26 = scalar_lea.hbm %s5326_s27, 64 }
 0x1f9   : > { %p3002_p3 = scmp.ne.s32.totalorder %s4934_s20, %s3001_s7  ;;  %p3006_p6 = scmp.lt.u32.totalorder %s4934_s20, %s5326_s27 }
 0x1fa   : > { %p3007_p12 = scmp.lt.u32.totalorder %s3005_s26, %s3001_s7  ;;  %p3009_p8 = scmp.lt.u32.totalorder %s3001_s7, %s4934_s20 }
 0x1fb   : > { %p3003_p7 = pnand %p3002_p3, %p5327_p0 }
 0x1fc   : > { %p3008_p1 = por %p3007_p12, %p3006_p6 }
 0x1fd   : > { %p3004_p10 = pneg %p3003_p7 }
 0x1fe   : > { %p3010_p2 = por %p3009_p8, %p3008_p1 }
 0x200   : > { %p3011_p5 = pnand %p3010_p2, %p3004_p10 }
 0x202   : > { %3014 = shalt.err (!%p3011_p5)
}
 0x203   : > { %2819 = dma.vmem_to_hbm [thread:$0]  (%p5327_p0), %s4936_s30, 32, %s4934_s20, %s2587_s25  }
 0x204 PF: > { %s5328_s11 = sld [smem:[#allocation13_spill]]  ;;  %s5329_s22 = sld [smem:[#allocation19_spill]] }
 0x205   : > { %s5330_s1 = sld [smem:[#allocation18_spill]] }
 0x20a   : > { %s2613_s9 = sand.u32 1, %s5328_s11   ;;  %p5331_p4 = scmp.ne.s32.totalorder %s5329_s22, 0 }
 0x20b   : > { %p5332_p9 = scmp.ge.s32.totalorder %s5330_s1, 2  ;;  %s2614_s3 = scalar_lea.sflag [#allocation6], %s2613_s9 }
 0x20d   : > { %p2830_p13 = pnand %p5332_p9, %p5331_p4 }
 0x20f   : > { %3048 = dma.done.wait (!%p2830_p13), %s2614_s3, 32  }
 0x210   : > { %3050 = vsyncadd (!%p2830_p13), %s2614_s3, 4294967264  ;;  %s22_s22 = sadd.s32 1, %s5330_s1   ;;  %s5333_s17 = sld [smem:[#allocation14_spill]] }
 0x211   : > { %p19_p11 = scmp.ge.s32.totalorder %s22_s22, 4   ;;  %s5334_s18 = sld [smem:[#allocation15_spill]] }
 0x212   : > { %s5335_s19 = sld [smem:[#allocation22_spill]]  ;;  %s5336_s20 = sld [smem:[#allocation17_spill]] }
 0x213   : > { %s5337_s21 = sld [smem:[#allocation20_spill]]  ;;  %21 = sbr.rel (!%p19_p11) target bundleno = 13 (0xd), region = 101 }
 0x21a   :  { %2619 = vsyncpa [#allocation5], 1 }
 0x21b   :  { %2621 = vsyncpa [#allocation5 + $0x1], 1 }
 0x21c   :  { %2622 = vsyncpa [#allocation6], 1 }
 0x21d   :  { %2624 = vsyncpa [#allocation6 + $0x1], 1 }
 0x21e   :  { %2625 = vsyncpa [#allocation7], 1 }
 0x21f   :  { %2627 = vsyncpa [#allocation7 + $0x1], 1 }

</bundles_post_ra>
